<compile_context>
chip_gen: v7x
topology: tpu7x:2x2x1
jax: 0.10.0
libtpu: 0.0.40
codegen_flags: <defaults>
</compile_context>

<pallas_src>
import functools

import jax
import jax.numpy as jnp
from jax.experimental import pallas as pl
from jax.experimental.pallas import tpu as pltpu

BN_EPS = 1e-5
VMEM_LIMIT = 32 << 20  # safe on v7x (64 MiB physical) and below


def _round_up(x, m):
    return (x + m - 1) // m * m


# ----------------------------------------------------------------------------
# Fused (patches @ W) * scale + shift  [+ ReLU]   --  gridded, bf16 MXU inputs
# ----------------------------------------------------------------------------
def _matmul_bn_act_kernel(a_ref, b_ref, scale_ref, shift_ref, o_ref, acc_ref,
                          *, relu):
    @pl.when(pl.program_id(2) == 0)
    def _():
        acc_ref[...] = jnp.zeros_like(acc_ref)

    acc_ref[...] += jnp.dot(a_ref[...], b_ref[...],
                            preferred_element_type=jnp.float32)

    @pl.when(pl.program_id(2) == pl.num_programs(2) - 1)
    def _():
        out = acc_ref[...] * scale_ref[...] + shift_ref[...]
        if relu:
            out = jnp.maximum(out, 0.0)
        o_ref[...] = out.astype(o_ref.dtype)


def matmul_bn_act(a, b, scale, shift, relu):
    """(M,K) @ (K,N) with fused per-output-channel scale/shift (+ optional ReLU).

    a, b are cast to bf16 for the MXU; accumulation and the BN epilogue are f32.
    """
    M, K = a.shape
    K2, N = b.shape
    assert K == K2

    a = a.astype(jnp.bfloat16)
    b = b.astype(jnp.bfloat16)

    tm = min(256, _round_up(M, 16))          # bf16-friendly sublane multiple
    tk = 128                                 # K reduction chunk
    Mp = _round_up(M, tm)
    Kp = _round_up(K, tk)
    if (Mp, Kp) != (M, K):
        a = jnp.pad(a, ((0, Mp - M), (0, Kp - K)))
    if Kp != K:
        b = jnp.pad(b, ((0, Kp - K), (0, 0)))

    scale2 = scale.reshape(1, N).astype(jnp.float32)
    shift2 = shift.reshape(1, N).astype(jnp.float32)

    grid = (Mp // tm, 1, Kp // tk)
    cost = pl.CostEstimate(
        flops=2 * Mp * N * Kp,
        transcendentals=0,
        bytes_accessed=Mp * Kp * 2 + Kp * N * 2 + Mp * N * 4,
    )

    out = pl.pallas_call(
        functools.partial(_matmul_bn_act_kernel, relu=relu),
        out_shape=jax.ShapeDtypeStruct((Mp, N), jnp.float32),
        grid_spec=pltpu.PrefetchScalarGridSpec(
            num_scalar_prefetch=0,
            grid=grid,
            in_specs=[
                pl.BlockSpec((tm, tk), lambda i, j, k: (i, k)),
                pl.BlockSpec((tk, N), lambda i, j, k: (k, j)),
                pl.BlockSpec((1, N), lambda i, j, k: (0, j)),
                pl.BlockSpec((1, N), lambda i, j, k: (0, j)),
            ],
            out_specs=pl.BlockSpec((tm, N), lambda i, j, k: (i, j)),
            scratch_shapes=[pltpu.VMEM((tm, N), jnp.float32)],
        ),
        compiler_params=pltpu.CompilerParams(
            dimension_semantics=("parallel", "parallel", "arbitrary"),
            vmem_limit_bytes=VMEM_LIMIT,
        ),
        cost_estimate=cost,
    )(a, b, scale2, shift2)

    if Mp != M:
        out = out[:M]
    return out


# ----------------------------------------------------------------------------
# Residual add + ReLU  (lane-dense, gridded over rows)
# ----------------------------------------------------------------------------
def _add_relu_kernel(a_ref, b_ref, o_ref):
    o_ref[...] = jnp.maximum(a_ref[...] + b_ref[...], 0.0)


def _lane_dense_shape(total, fallback_rows, fallback_cols):
    if total % 128 == 0:
        return total // 128, 128
    return fallback_rows, fallback_cols


def add_relu(a, b):
    n, h, w, c = a.shape
    R, C = _lane_dense_shape(n * h * w * c, n * h * w, c)
    a2 = a.reshape(R, C)
    b2 = b.reshape(R, C)

    tr = min(1024, _round_up(R, 8))
    Rp = _round_up(R, tr)
    if Rp != R:
        a2 = jnp.pad(a2, ((0, Rp - R), (0, 0)))
        b2 = jnp.pad(b2, ((0, Rp - R), (0, 0)))

    out = pl.pallas_call(
        _add_relu_kernel,
        out_shape=jax.ShapeDtypeStruct((Rp, C), jnp.float32),
        grid=(Rp // tr,),
        in_specs=[
            pl.BlockSpec((tr, C), lambda i: (i, 0)),
            pl.BlockSpec((tr, C), lambda i: (i, 0)),
        ],
        out_specs=pl.BlockSpec((tr, C), lambda i: (i, 0)),
        compiler_params=pltpu.CompilerParams(
            dimension_semantics=("parallel",),
            vmem_limit_bytes=VMEM_LIMIT,
        ),
    )(a2, b2)

    if Rp != R:
        out = out[:R]
    return out.reshape(n, h, w, c)


# ----------------------------------------------------------------------------
# 3x3 stride-2 pad-1 max-pool: 9-way elementwise max in-kernel (lane-dense)
# ----------------------------------------------------------------------------
def _max9_kernel(*refs):
    o_ref = refs[-1]
    m = refs[0][...]
    for r in refs[1:-1]:
        m = jnp.maximum(m, r[...])
    o_ref[...] = m


def maxpool_3x3_s2_p1(x):
    # TODO(synk): stride-2 window extraction stays in XLA glue (no strided
    # in-kernel loads); the 9x-stacked HBM buffer of the previous version is
    # gone — windows are fed as separate operands and max-reduced in-kernel.
    n, h, w, c = x.shape
    ho = (h + 2 - 3) // 2 + 1
    wo = (w + 2 - 3) // 2 + 1
    neg = jnp.finfo(jnp.float32).min
    xp = jnp.pad(x, ((0, 0), (1, 1), (1, 1), (0, 0)), constant_values=neg)

    wins = []
    for i in range(3):
        for j in range(3):
            wins.append(xp[:, i:i + 2 * (ho - 1) + 1:2,
                           j:j + 2 * (wo - 1) + 1:2, :])

    R, C = _lane_dense_shape(n * ho * wo * c, n * ho * wo, c)
    wins = [wv.reshape(R, C) for wv in wins]

    tr = min(1024, _round_up(R, 8))
    Rp = _round_up(R, tr)
    if Rp != R:
        wins = [jnp.pad(wv, ((0, Rp - R), (0, 0))) for wv in wins]

    out = pl.pallas_call(
        _max9_kernel,
        out_shape=jax.ShapeDtypeStruct((Rp, C), jnp.float32),
        grid=(Rp // tr,),
        in_specs=[pl.BlockSpec((tr, C), lambda i: (i, 0)) for _ in wins],
        out_specs=pl.BlockSpec((tr, C), lambda i: (i, 0)),
        compiler_params=pltpu.CompilerParams(
            dimension_semantics=("parallel",),
            vmem_limit_bytes=VMEM_LIMIT,
        ),
    )(*wins)

    if Rp != R:
        out = out[:R]
    return out.reshape(n, ho, wo, c)


# ----------------------------------------------------------------------------
# Conv = im2col (glue) + fused Pallas matmul.  1x1 convs skip im2col.
# ----------------------------------------------------------------------------
def conv2d_bn_act(x, w, scale, shift, stride, padding, relu):
    """x: (N,H,W,Cin), w: (kh,kw,Cin,Cout) -> (N,Ho,Wo,Cout)."""
    n, h, wd, cin = x.shape
    kh, kw, _, cout = w.shape
    ho = (h + 2 * padding - kh) // stride + 1
    wo = (wd + 2 * padding - kw) // stride + 1

    if kh == 1 and kw == 1 and padding == 0:
        a = x[:, ::stride, ::stride, :].reshape(n * ho * wo, cin)
        b = w.reshape(cin, cout)
    else:
        xp = jnp.pad(x, ((0, 0), (padding, padding), (padding, padding), (0, 0)))
        cols = []
        for i in range(kh):
            for j in range(kw):
                cols.append(
                    xp[:, i:i + stride * (ho - 1) + 1:stride,
                       j:j + stride * (wo - 1) + 1:stride, :])
        patches = jnp.concatenate(cols, axis=-1)        # (N, Ho, Wo, kh*kw*Cin)
        a = patches.reshape(n * ho * wo, kh * kw * cin)
        b = w.reshape(kh * kw * cin, cout)

    out = matmul_bn_act(a, b, scale, shift, relu)
    return out.reshape(n, ho, wo, cout)


# ----------------------------------------------------------------------------
# ResNet-18 backbone (synthetic deterministic weights)
# ----------------------------------------------------------------------------
def init_params(key):
    keys = iter(jax.random.split(key, 64))

    def conv_w(kh, kw, cin, cout):
        std = (2.0 / (kh * kw * cin)) ** 0.5
        return jax.random.normal(next(keys), (kh, kw, cin, cout), jnp.float32) * std

    def bn(c):
        # TODO(synk): BN folded with eval-mode running stats (gamma=1, beta=0,
        # mean=0, var=1); train-mode batch statistics are not reproduced.
        gamma = jnp.ones((c,), jnp.float32)
        beta = jnp.zeros((c,), jnp.float32)
        mean = jnp.zeros((c,), jnp.float32)
        var = jnp.ones((c,), jnp.float32)
        scale = gamma / jnp.sqrt(var + BN_EPS)
        shift = beta - mean * scale
        return scale, shift

    params = {}
    params["conv1_w"] = conv_w(7, 7, 6, 64)             # modified 6-channel stem
    params["bn1_scale"], params["bn1_shift"] = bn(64)

    layers = []
    in_c = 64
    for out_c, stride in [(64, 1), (128, 2), (256, 2), (512, 2)]:
        blocks = []
        for bi in range(2):
            s = stride if bi == 0 else 1
            cin = in_c if bi == 0 else out_c
            blk = {"stride": s}
            blk["conv1_w"] = conv_w(3, 3, cin, out_c)
            blk["bn1_scale"], blk["bn1_shift"] = bn(out_c)
            blk["conv2_w"] = conv_w(3, 3, out_c, out_c)
            blk["bn2_scale"], blk["bn2_shift"] = bn(out_c)
            if s != 1 or cin != out_c:
                blk["down_w"] = conv_w(1, 1, cin, out_c)
                blk["down_scale"], blk["down_shift"] = bn(out_c)
            blocks.append(blk)
        layers.append(blocks)
        in_c = out_c
    params["layers"] = layers

    # fc: weight zeroed, bias = [1,0,0,0,1,0]  (as in BGMotionPredictor.__init__)
    params["fc_w"] = jnp.zeros((512, 6), jnp.float32)
    params["fc_b"] = jnp.array([1., 0., 0., 0., 1., 0.], jnp.float32)
    return params


def basic_block(x, p):
    out = conv2d_bn_act(x, p["conv1_w"], p["bn1_scale"], p["bn1_shift"],
                        stride=p["stride"], padding=1, relu=True)
    out = conv2d_bn_act(out, p["conv2_w"], p["bn2_scale"], p["bn2_shift"],
                        stride=1, padding=1, relu=False)
    if "down_w" in p:
        identity = conv2d_bn_act(x, p["down_w"], p["down_scale"], p["down_shift"],
                                 stride=p["stride"], padding=0, relu=False)
    else:
        identity = x
    return add_relu(out, identity)


def bg_motion_predictor(source_image, driving_image, params):
    """source_image, driving_image: (bs, 3, H, W) NCHW float32 -> (bs, 3, 3)."""
    bs = source_image.shape[0]
    x = jnp.concatenate([source_image, driving_image], axis=1)   # (bs, 6, H, W)
    x = jnp.transpose(x, (0, 2, 3, 1))                           # -> NHWC

    x = conv2d_bn_act(x, params["conv1_w"], params["bn1_scale"], params["bn1_shift"],
                      stride=2, padding=3, relu=True)
    x = maxpool_3x3_s2_p1(x)
    for blocks in params["layers"]:
        for blk in blocks:
            x = basic_block(x, blk)

    feats = jnp.mean(x, axis=(1, 2))                             # adaptive avgpool -> (bs, 512)
    # Final 6-wide FC: lane width 6 is useless on the MXU -> plain XLA dot.
    pred = feats @ params["fc_w"] + params["fc_b"]               # (bs, 6)

    top = pred.reshape(bs, 2, 3)
    bottom = jnp.broadcast_to(jnp.array([[[0., 0., 1.]]], jnp.float32), (bs, 1, 3))
    out = jnp.concatenate([top, bottom], axis=1)                 # (bs, 3, 3)
    return out.astype(source_image.dtype)


# ----------------------------------------------------------------------------
if __name__ == "__main__":
    key = jax.random.PRNGKey(0)
    kp, ks, kd = jax.random.split(key, 3)

    params = init_params(kp)
    source = jax.random.normal(ks, (2, 3, 16, 16), jnp.float32)
    driving = jax.random.normal(kd, (2, 3, 16, 16), jnp.float32)

    fwd = jax.jit(lambda s, d: bg_motion_predictor(s, d, params))
    out = jax.block_until_ready(fwd(source, driving))

    assert out.shape == (2, 3, 3) and out.dtype == jnp.float32
    # fc weight is zero and bias = [1,0,0,0,1,0] -> output must be identity mats.
    expected = jnp.broadcast_to(jnp.eye(3, dtype=jnp.float32), (2, 3, 3))
    assert jnp.allclose(out, expected, atol=1e-4), out
    print("KERNEL_OK")
</pallas_src>

<mosaic_0001>
module attributes {stable_mosaic.version = 11 : i64} {
  func.func @_matmul_bn_act_kernel(%arg0: i32, %arg1: i32, %arg2: i32, %arg3: memref<128x128xbf16, #tpu.memory_space<vmem>>, %arg4: memref<128x64xbf16, #tpu.memory_space<vmem>>, %arg5: memref<1x64xf32, #tpu.memory_space<vmem>>, %arg6: memref<1x64xf32, #tpu.memory_space<vmem>>, %arg7: memref<128x64xf32, #tpu.memory_space<vmem>>, %arg8: memref<128x64xf32, #tpu.memory_space<vmem>>) attributes {dimension_semantics = [#tpu.dimension_semantics<parallel>, #tpu.dimension_semantics<parallel>, #tpu.dimension_semantics<arbitrary>], iteration_bounds = array<i64: 1, 1, 3>, scalar_prefetch = 0 : i64, scratch_operands = 1 : i64, tpu.core_type = #tpu.core_type<tc>, window_params = [{transform_indices = @transform_0, window_bounds = array<i64: 128, 128>}, {transform_indices = @transform_1, window_bounds = array<i64: 128, 64>}, {transform_indices = @transform_2, window_bounds = array<i64: 1, 64>}, {transform_indices = @transform_3, window_bounds = array<i64: 1, 64>}, {transform_indices = @transform_4, window_bounds = array<i64: 128, 64>}]} {
    %c0_i32 = arith.constant 0 : i32
    %0 = arith.cmpi eq, %arg2, %c0_i32 : i32
    %1 = arith.extui %0 : i1 to i32
    %c0_i32_0 = arith.constant 0 : i32
    %2 = arith.cmpi ne, %1, %c0_i32_0 : i32
    scf.if %2 {
      %cst_9 = arith.constant 0.000000e+00 : f32
      %12 = vector.broadcast %cst_9 : f32 to vector<128x64xf32>
      %c0_10 = arith.constant 0 : index
      %c0_11 = arith.constant 0 : index
      %13 = vector.load %arg8[%c0_10, %c0_11] : memref<128x64xf32, #tpu.memory_space<vmem>>, vector<128x64xf32>
      tpu.vector_store %arg8[%c0_10, %c0_11], %12 {strides = array<i32>} : memref<128x64xf32, #tpu.memory_space<vmem>>, vector<128x64xf32>,
    } else {
    }
    %c0 = arith.constant 0 : index
    %c0_1 = arith.constant 0 : index
    %3 = vector.load %arg8[%c0, %c0_1] : memref<128x64xf32, #tpu.memory_space<vmem>>, vector<128x64xf32>
    %c0_2 = arith.constant 0 : index
    %c0_3 = arith.constant 0 : index
    %4 = vector.load %arg3[%c0_2, %c0_3] : memref<128x128xbf16, #tpu.memory_space<vmem>>, vector<128x128xbf16>
    %c0_4 = arith.constant 0 : index
    %c0_5 = arith.constant 0 : index
    %5 = vector.load %arg4[%c0_4, %c0_5] : memref<128x64xbf16, #tpu.memory_space<vmem>>, vector<128x64xbf16>
    %cst = arith.constant dense<0.000000e+00> : vector<128x64xf32>
    %6 = tpu.matmul %4, %5, %cst {dimension_numbers = #tpu.dot_dimension_numbers<[1], [0], [0], [1], [0, 0, 1, 1], [], []>} : vector<128x128xbf16>, vector<128x64xbf16>, vector<128x64xf32> -> vector<128x64xf32>
    %7 = arith.addf %3, %6 : vector<128x64xf32>
    %c0_6 = arith.constant 0 : index
    %c0_7 = arith.constant 0 : index
    %8 = vector.load %arg8[%c0_6, %c0_7] : memref<128x64xf32, #tpu.memory_space<vmem>>, vector<128x64xf32>
    tpu.vector_store %arg8[%c0_6, %c0_7], %7 {strides = array<i32>} : memref<128x64xf32, #tpu.memory_space<vmem>>, vector<128x64xf32>,
    %c2_i32 = arith.constant 2 : i32
    %9 = arith.cmpi eq, %arg2, %c2_i32 : i32
    %10 = arith.extui %9 : i1 to i32
    %c0_i32_8 = arith.constant 0 : i32
    %11 = arith.cmpi ne, %10, %c0_i32_8 : i32
    scf.if %11 {
      %c0_9 = arith.constant 0 : index
      %c0_10 = arith.constant 0 : index
      %12 = vector.load %arg8[%c0_9, %c0_10] : memref<128x64xf32, #tpu.memory_space<vmem>>, vector<128x64xf32>
      %c0_11 = arith.constant 0 : index
      %c0_12 = arith.constant 0 : index
      %13 = vector.load %arg5[%c0_11, %c0_12] : memref<1x64xf32, #tpu.memory_space<vmem>>, vector<1x64xf32>
      %14 = vector.broadcast %13 : vector<1x64xf32> to vector<128x64xf32>
      %15 = arith.mulf %12, %14 : vector<128x64xf32>
      %c0_13 = arith.constant 0 : index
      %c0_14 = arith.constant 0 : index
      %16 = vector.load %arg6[%c0_13, %c0_14] : memref<1x64xf32, #tpu.memory_space<vmem>>, vector<1x64xf32>
      %17 = vector.broadcast %16 : vector<1x64xf32> to vector<128x64xf32>
      %18 = arith.addf %15, %17 : vector<128x64xf32>
      %cst_15 = arith.constant 0.000000e+00 : f32
      %19 = vector.broadcast %cst_15 : f32 to vector<128x64xf32>
      %20 = arith.maximumf %18, %19 : vector<128x64xf32>
      %c0_16 = arith.constant 0 : index
      %c0_17 = arith.constant 0 : index
      %21 = vector.load %arg7[%c0_16, %c0_17] : memref<128x64xf32, #tpu.memory_space<vmem>>, vector<128x64xf32>
      tpu.vector_store %arg7[%c0_16, %c0_17], %20 {strides = array<i32>} : memref<128x64xf32, #tpu.memory_space<vmem>>, vector<128x64xf32>,
    } else {
    }
    return
  }
  func.func @transform_0(%arg0: i32, %arg1: i32, %arg2: i32) -> (i32, i32) {
    %c0_i32 = arith.constant 0 : i32
    return %arg0, %arg2 : i32, i32
  }
  func.func @transform_1(%arg0: i32, %arg1: i32, %arg2: i32) -> (i32, i32) {
    %c0_i32 = arith.constant 0 : i32
    return %arg2, %arg1 : i32, i32
  }
  func.func @transform_2(%arg0: i32, %arg1: i32, %arg2: i32) -> (i32, i32) {
    %c0_i32 = arith.constant 0 : i32
    %c0_i32_0 = arith.constant 0 : i32
    return %c0_i32, %arg1 : i32, i32
  }
  func.func @transform_3(%arg0: i32, %arg1: i32, %arg2: i32) -> (i32, i32) {
    %c0_i32 = arith.constant 0 : i32
    %c0_i32_0 = arith.constant 0 : i32
    return %c0_i32, %arg1 : i32, i32
  }
  func.func @transform_4(%arg0: i32, %arg1: i32, %arg2: i32) -> (i32, i32) {
    %c0_i32 = arith.constant 0 : i32
    return %arg0, %arg1 : i32, i32
  }
}

module attributes {stable_mosaic.version = 11 : i64} {
  func.func @_max9_kernel(%arg0: i32, %arg1: memref<16x128xf32, #tpu.memory_space<vmem>>, %arg2: memref<16x128xf32, #tpu.memory_space<vmem>>, %arg3: memref<16x128xf32, #tpu.memory_space<vmem>>, %arg4: memref<16x128xf32, #tpu.memory_space<vmem>>, %arg5: memref<16x128xf32, #tpu.memory_space<vmem>>, %arg6: memref<16x128xf32, #tpu.memory_space<vmem>>, %arg7: memref<16x128xf32, #tpu.memory_space<vmem>>, %arg8: memref<16x128xf32, #tpu.memory_space<vmem>>, %arg9: memref<16x128xf32, #tpu.memory_space<vmem>>, %arg10: memref<16x128xf32, #tpu.memory_space<vmem>>) attributes {dimension_semantics = [#tpu.dimension_semantics<parallel>], iteration_bounds = array<i64: 1>, scalar_prefetch = 0 : i64, scratch_operands = 0 : i64, tpu.core_type = #tpu.core_type<tc>, window_params = [{transform_indices = @transform_0, window_bounds = array<i64: 16, 128>}, {transform_indices = @transform_1, window_bounds = array<i64: 16, 128>}, {transform_indices = @transform_2, window_bounds = array<i64: 16, 128>}, {transform_indices = @transform_3, window_bounds = array<i64: 16, 128>}, {transform_indices = @transform_4, window_bounds = array<i64: 16, 128>}, {transform_indices = @transform_5, window_bounds = array<i64: 16, 128>}, {transform_indices = @transform_6, window_bounds = array<i64: 16, 128>}, {transform_indices = @transform_7, window_bounds = array<i64: 16, 128>}, {transform_indices = @transform_8, window_bounds = array<i64: 16, 128>}, {transform_indices = @transform_9, window_bounds = array<i64: 16, 128>}]} {
    %c0 = arith.constant 0 : index
    %c0_0 = arith.constant 0 : index
    %0 = vector.load %arg1[%c0, %c0_0] : memref<16x128xf32, #tpu.memory_space<vmem>>, vector<16x128xf32>
    %c0_1 = arith.constant 0 : index
    %c0_2 = arith.constant 0 : index
    %1 = vector.load %arg2[%c0_1, %c0_2] : memref<16x128xf32, #tpu.memory_space<vmem>>, vector<16x128xf32>
    %2 = arith.maximumf %0, %1 : vector<16x128xf32>
    %c0_3 = arith.constant 0 : index
    %c0_4 = arith.constant 0 : index
    %3 = vector.load %arg3[%c0_3, %c0_4] : memref<16x128xf32, #tpu.memory_space<vmem>>, vector<16x128xf32>
    %4 = arith.maximumf %2, %3 : vector<16x128xf32>
    %c0_5 = arith.constant 0 : index
    %c0_6 = arith.constant 0 : index
    %5 = vector.load %arg4[%c0_5, %c0_6] : memref<16x128xf32, #tpu.memory_space<vmem>>, vector<16x128xf32>
    %6 = arith.maximumf %4, %5 : vector<16x128xf32>
    %c0_7 = arith.constant 0 : index
    %c0_8 = arith.constant 0 : index
    %7 = vector.load %arg5[%c0_7, %c0_8] : memref<16x128xf32, #tpu.memory_space<vmem>>, vector<16x128xf32>
    %8 = arith.maximumf %6, %7 : vector<16x128xf32>
    %c0_9 = arith.constant 0 : index
    %c0_10 = arith.constant 0 : index
    %9 = vector.load %arg6[%c0_9, %c0_10] : memref<16x128xf32, #tpu.memory_space<vmem>>, vector<16x128xf32>
    %10 = arith.maximumf %8, %9 : vector<16x128xf32>
    %c0_11 = arith.constant 0 : index
    %c0_12 = arith.constant 0 : index
    %11 = vector.load %arg7[%c0_11, %c0_12] : memref<16x128xf32, #tpu.memory_space<vmem>>, vector<16x128xf32>
    %12 = arith.maximumf %10, %11 : vector<16x128xf32>
    %c0_13 = arith.constant 0 : index
    %c0_14 = arith.constant 0 : index
    %13 = vector.load %arg8[%c0_13, %c0_14] : memref<16x128xf32, #tpu.memory_space<vmem>>, vector<16x128xf32>
    %14 = arith.maximumf %12, %13 : vector<16x128xf32>
    %c0_15 = arith.constant 0 : index
    %c0_16 = arith.constant 0 : index
    %15 = vector.load %arg9[%c0_15, %c0_16] : memref<16x128xf32, #tpu.memory_space<vmem>>, vector<16x128xf32>
    %16 = arith.maximumf %14, %15 : vector<16x128xf32>
    %c0_17 = arith.constant 0 : index
    %c0_18 = arith.constant 0 : index
    %17 = vector.load %arg10[%c0_17, %c0_18] : memref<16x128xf32, #tpu.memory_space<vmem>>, vector<16x128xf32>
    tpu.vector_store %arg10[%c0_17, %c0_18], %16 {strides = array<i32>} : memref<16x128xf32, #tpu.memory_space<vmem>>, vector<16x128xf32>,
    return
  }
  func.func @transform_0(%arg0: i32) -> (i32, i32) {
    %c0_i32 = arith.constant 0 : i32
    %c0_i32_0 = arith.constant 0 : i32
    return %arg0, %c0_i32 : i32, i32
  }
  func.func @transform_1(%arg0: i32) -> (i32, i32) {
    %c0_i32 = arith.constant 0 : i32
    %c0_i32_0 = arith.constant 0 : i32
    return %arg0, %c0_i32 : i32, i32
  }
  func.func @transform_2(%arg0: i32) -> (i32, i32) {
    %c0_i32 = arith.constant 0 : i32
    %c0_i32_0 = arith.constant 0 : i32
    return %arg0, %c0_i32 : i32, i32
  }
  func.func @transform_3(%arg0: i32) -> (i32, i32) {
    %c0_i32 = arith.constant 0 : i32
    %c0_i32_0 = arith.constant 0 : i32
    return %arg0, %c0_i32 : i32, i32
  }
  func.func @transform_4(%arg0: i32) -> (i32, i32) {
    %c0_i32 = arith.constant 0 : i32
    %c0_i32_0 = arith.constant 0 : i32
    return %arg0, %c0_i32 : i32, i32
  }
  func.func @transform_5(%arg0: i32) -> (i32, i32) {
    %c0_i32 = arith.constant 0 : i32
    %c0_i32_0 = arith.constant 0 : i32
    return %arg0, %c0_i32 : i32, i32
  }
  func.func @transform_6(%arg0: i32) -> (i32, i32) {
    %c0_i32 = arith.constant 0 : i32
    %c0_i32_0 = arith.constant 0 : i32
    return %arg0, %c0_i32 : i32, i32
  }
  func.func @transform_7(%arg0: i32) -> (i32, i32) {
    %c0_i32 = arith.constant 0 : i32
    %c0_i32_0 = arith.constant 0 : i32
    return %arg0, %c0_i32 : i32, i32
  }
  func.func @transform_8(%arg0: i32) -> (i32, i32) {
    %c0_i32 = arith.constant 0 : i32
    %c0_i32_0 = arith.constant 0 : i32
    return %arg0, %c0_i32 : i32, i32
  }
  func.func @transform_9(%arg0: i32) -> (i32, i32) {
    %c0_i32 = arith.constant 0 : i32
    %c0_i32_0 = arith.constant 0 : i32
    return %arg0, %c0_i32 : i32, i32
  }
}

module attributes {stable_mosaic.version = 11 : i64} {
  func.func @_matmul_bn_act_kernel(%arg0: i32, %arg1: i32, %arg2: i32, %arg3: memref<32x128xbf16, #tpu.memory_space<vmem>>, %arg4: memref<128x64xbf16, #tpu.memory_space<vmem>>, %arg5: memref<1x64xf32, #tpu.memory_space<vmem>>, %arg6: memref<1x64xf32, #tpu.memory_space<vmem>>, %arg7: memref<32x64xf32, #tpu.memory_space<vmem>>, %arg8: memref<32x64xf32, #tpu.memory_space<vmem>>) attributes {dimension_semantics = [#tpu.dimension_semantics<parallel>, #tpu.dimension_semantics<parallel>, #tpu.dimension_semantics<arbitrary>], iteration_bounds = array<i64: 1, 1, 5>, scalar_prefetch = 0 : i64, scratch_operands = 1 : i64, tpu.core_type = #tpu.core_type<tc>, window_params = [{transform_indices = @transform_0, window_bounds = array<i64: 32, 128>}, {transform_indices = @transform_1, window_bounds = array<i64: 128, 64>}, {transform_indices = @transform_2, window_bounds = array<i64: 1, 64>}, {transform_indices = @transform_3, window_bounds = array<i64: 1, 64>}, {transform_indices = @transform_4, window_bounds = array<i64: 32, 64>}]} {
    %c0_i32 = arith.constant 0 : i32
    %0 = arith.cmpi eq, %arg2, %c0_i32 : i32
    %1 = arith.extui %0 : i1 to i32
    %c0_i32_0 = arith.constant 0 : i32
    %2 = arith.cmpi ne, %1, %c0_i32_0 : i32
    scf.if %2 {
      %cst_9 = arith.constant 0.000000e+00 : f32
      %12 = vector.broadcast %cst_9 : f32 to vector<32x64xf32>
      %c0_10 = arith.constant 0 : index
      %c0_11 = arith.constant 0 : index
      %13 = vector.load %arg8[%c0_10, %c0_11] : memref<32x64xf32, #tpu.memory_space<vmem>>, vector<32x64xf32>
      tpu.vector_store %arg8[%c0_10, %c0_11], %12 {strides = array<i32>} : memref<32x64xf32, #tpu.memory_space<vmem>>, vector<32x64xf32>,
    } else {
    }
    %c0 = arith.constant 0 : index
    %c0_1 = arith.constant 0 : index
    %3 = vector.load %arg8[%c0, %c0_1] : memref<32x64xf32, #tpu.memory_space<vmem>>, vector<32x64xf32>
    %c0_2 = arith.constant 0 : index
    %c0_3 = arith.constant 0 : index
    %4 = vector.load %arg3[%c0_2, %c0_3] : memref<32x128xbf16, #tpu.memory_space<vmem>>, vector<32x128xbf16>
    %c0_4 = arith.constant 0 : index
    %c0_5 = arith.constant 0 : index
    %5 = vector.load %arg4[%c0_4, %c0_5] : memref<128x64xbf16, #tpu.memory_space<vmem>>, vector<128x64xbf16>
    %cst = arith.constant dense<0.000000e+00> : vector<32x64xf32>
    %6 = tpu.matmul %4, %5, %cst {dimension_numbers = #tpu.dot_dimension_numbers<[1], [0], [0], [1], [0, 0, 1, 1], [], []>} : vector<32x128xbf16>, vector<128x64xbf16>, vector<32x64xf32> -> vector<32x64xf32>
    %7 = arith.addf %3, %6 : vector<32x64xf32>
    %c0_6 = arith.constant 0 : index
    %c0_7 = arith.constant 0 : index
    %8 = vector.load %arg8[%c0_6, %c0_7] : memref<32x64xf32, #tpu.memory_space<vmem>>, vector<32x64xf32>
    tpu.vector_store %arg8[%c0_6, %c0_7], %7 {strides = array<i32>} : memref<32x64xf32, #tpu.memory_space<vmem>>, vector<32x64xf32>,
    %c4_i32 = arith.constant 4 : i32
    %9 = arith.cmpi eq, %arg2, %c4_i32 : i32
    %10 = arith.extui %9 : i1 to i32
    %c0_i32_8 = arith.constant 0 : i32
    %11 = arith.cmpi ne, %10, %c0_i32_8 : i32
    scf.if %11 {
      %c0_9 = arith.constant 0 : index
      %c0_10 = arith.constant 0 : index
      %12 = vector.load %arg8[%c0_9, %c0_10] : memref<32x64xf32, #tpu.memory_space<vmem>>, vector<32x64xf32>
      %c0_11 = arith.constant 0 : index
      %c0_12 = arith.constant 0 : index
      %13 = vector.load %arg5[%c0_11, %c0_12] : memref<1x64xf32, #tpu.memory_space<vmem>>, vector<1x64xf32>
      %14 = vector.broadcast %13 : vector<1x64xf32> to vector<32x64xf32>
      %15 = arith.mulf %12, %14 : vector<32x64xf32>
      %c0_13 = arith.constant 0 : index
      %c0_14 = arith.constant 0 : index
      %16 = vector.load %arg6[%c0_13, %c0_14] : memref<1x64xf32, #tpu.memory_space<vmem>>, vector<1x64xf32>
      %17 = vector.broadcast %16 : vector<1x64xf32> to vector<32x64xf32>
      %18 = arith.addf %15, %17 : vector<32x64xf32>
      %c0_15 = arith.constant 0 : index
      %c0_16 = arith.constant 0 : index
      %19 = vector.load %arg7[%c0_15, %c0_16] : memref<32x64xf32, #tpu.memory_space<vmem>>, vector<32x64xf32>
      tpu.vector_store %arg7[%c0_15, %c0_16], %18 {strides = array<i32>} : memref<32x64xf32, #tpu.memory_space<vmem>>, vector<32x64xf32>,
    } else {
    }
    return
  }
  func.func @transform_0(%arg0: i32, %arg1: i32, %arg2: i32) -> (i32, i32) {
    %c0_i32 = arith.constant 0 : i32
    return %arg0, %arg2 : i32, i32
  }
  func.func @transform_1(%arg0: i32, %arg1: i32, %arg2: i32) -> (i32, i32) {
    %c0_i32 = arith.constant 0 : i32
    return %arg2, %arg1 : i32, i32
  }
  func.func @transform_2(%arg0: i32, %arg1: i32, %arg2: i32) -> (i32, i32) {
    %c0_i32 = arith.constant 0 : i32
    %c0_i32_0 = arith.constant 0 : i32
    return %c0_i32, %arg1 : i32, i32
  }
  func.func @transform_3(%arg0: i32, %arg1: i32, %arg2: i32) -> (i32, i32) {
    %c0_i32 = arith.constant 0 : i32
    %c0_i32_0 = arith.constant 0 : i32
    return %c0_i32, %arg1 : i32, i32
  }
  func.func @transform_4(%arg0: i32, %arg1: i32, %arg2: i32) -> (i32, i32) {
    %c0_i32 = arith.constant 0 : i32
    return %arg0, %arg1 : i32, i32
  }
}

module attributes {stable_mosaic.version = 11 : i64} {
  func.func @_matmul_bn_act_kernel(%arg0: i32, %arg1: i32, %arg2: i32, %arg3: memref<32x128xbf16, #tpu.memory_space<vmem>>, %arg4: memref<128x64xbf16, #tpu.memory_space<vmem>>, %arg5: memref<1x64xf32, #tpu.memory_space<vmem>>, %arg6: memref<1x64xf32, #tpu.memory_space<vmem>>, %arg7: memref<32x64xf32, #tpu.memory_space<vmem>>, %arg8: memref<32x64xf32, #tpu.memory_space<vmem>>) attributes {dimension_semantics = [#tpu.dimension_semantics<parallel>, #tpu.dimension_semantics<parallel>, #tpu.dimension_semantics<arbitrary>], iteration_bounds = array<i64: 1, 1, 5>, scalar_prefetch = 0 : i64, scratch_operands = 1 : i64, tpu.core_type = #tpu.core_type<tc>, window_params = [{transform_indices = @transform_0, window_bounds = array<i64: 32, 128>}, {transform_indices = @transform_1, window_bounds = array<i64: 128, 64>}, {transform_indices = @transform_2, window_bounds = array<i64: 1, 64>}, {transform_indices = @transform_3, window_bounds = array<i64: 1, 64>}, {transform_indices = @transform_4, window_bounds = array<i64: 32, 64>}]} {
    %c0_i32 = arith.constant 0 : i32
    %0 = arith.cmpi eq, %arg2, %c0_i32 : i32
    %1 = arith.extui %0 : i1 to i32
    %c0_i32_0 = arith.constant 0 : i32
    %2 = arith.cmpi ne, %1, %c0_i32_0 : i32
    scf.if %2 {
      %cst_9 = arith.constant 0.000000e+00 : f32
      %12 = vector.broadcast %cst_9 : f32 to vector<32x64xf32>
      %c0_10 = arith.constant 0 : index
      %c0_11 = arith.constant 0 : index
      %13 = vector.load %arg8[%c0_10, %c0_11] : memref<32x64xf32, #tpu.memory_space<vmem>>, vector<32x64xf32>
      tpu.vector_store %arg8[%c0_10, %c0_11], %12 {strides = array<i32>} : memref<32x64xf32, #tpu.memory_space<vmem>>, vector<32x64xf32>,
    } else {
    }
    %c0 = arith.constant 0 : index
    %c0_1 = arith.constant 0 : index
    %3 = vector.load %arg8[%c0, %c0_1] : memref<32x64xf32, #tpu.memory_space<vmem>>, vector<32x64xf32>
    %c0_2 = arith.constant 0 : index
    %c0_3 = arith.constant 0 : index
    %4 = vector.load %arg3[%c0_2, %c0_3] : memref<32x128xbf16, #tpu.memory_space<vmem>>, vector<32x128xbf16>
    %c0_4 = arith.constant 0 : index
    %c0_5 = arith.constant 0 : index
    %5 = vector.load %arg4[%c0_4, %c0_5] : memref<128x64xbf16, #tpu.memory_space<vmem>>, vector<128x64xbf16>
    %cst = arith.constant dense<0.000000e+00> : vector<32x64xf32>
    %6 = tpu.matmul %4, %5, %cst {dimension_numbers = #tpu.dot_dimension_numbers<[1], [0], [0], [1], [0, 0, 1, 1], [], []>} : vector<32x128xbf16>, vector<128x64xbf16>, vector<32x64xf32> -> vector<32x64xf32>
    %7 = arith.addf %3, %6 : vector<32x64xf32>
    %c0_6 = arith.constant 0 : index
    %c0_7 = arith.constant 0 : index
    %8 = vector.load %arg8[%c0_6, %c0_7] : memref<32x64xf32, #tpu.memory_space<vmem>>, vector<32x64xf32>
    tpu.vector_store %arg8[%c0_6, %c0_7], %7 {strides = array<i32>} : memref<32x64xf32, #tpu.memory_space<vmem>>, vector<32x64xf32>,
    %c4_i32 = arith.constant 4 : i32
    %9 = arith.cmpi eq, %arg2, %c4_i32 : i32
    %10 = arith.extui %9 : i1 to i32
    %c0_i32_8 = arith.constant 0 : i32
    %11 = arith.cmpi ne, %10, %c0_i32_8 : i32
    scf.if %11 {
      %c0_9 = arith.constant 0 : index
      %c0_10 = arith.constant 0 : index
      %12 = vector.load %arg8[%c0_9, %c0_10] : memref<32x64xf32, #tpu.memory_space<vmem>>, vector<32x64xf32>
      %c0_11 = arith.constant 0 : index
      %c0_12 = arith.constant 0 : index
      %13 = vector.load %arg5[%c0_11, %c0_12] : memref<1x64xf32, #tpu.memory_space<vmem>>, vector<1x64xf32>
      %14 = vector.broadcast %13 : vector<1x64xf32> to vector<32x64xf32>
      %15 = arith.mulf %12, %14 : vector<32x64xf32>
      %c0_13 = arith.constant 0 : index
      %c0_14 = arith.constant 0 : index
      %16 = vector.load %arg6[%c0_13, %c0_14] : memref<1x64xf32, #tpu.memory_space<vmem>>, vector<1x64xf32>
      %17 = vector.broadcast %16 : vector<1x64xf32> to vector<32x64xf32>
      %18 = arith.addf %15, %17 : vector<32x64xf32>
      %cst_15 = arith.constant 0.000000e+00 : f32
      %19 = vector.broadcast %cst_15 : f32 to vector<32x64xf32>
      %20 = arith.maximumf %18, %19 : vector<32x64xf32>
      %c0_16 = arith.constant 0 : index
      %c0_17 = arith.constant 0 : index
      %21 = vector.load %arg7[%c0_16, %c0_17] : memref<32x64xf32, #tpu.memory_space<vmem>>, vector<32x64xf32>
      tpu.vector_store %arg7[%c0_16, %c0_17], %20 {strides = array<i32>} : memref<32x64xf32, #tpu.memory_space<vmem>>, vector<32x64xf32>,
    } else {
    }
    return
  }
  func.func @transform_0(%arg0: i32, %arg1: i32, %arg2: i32) -> (i32, i32) {
    %c0_i32 = arith.constant 0 : i32
    return %arg0, %arg2 : i32, i32
  }
  func.func @transform_1(%arg0: i32, %arg1: i32, %arg2: i32) -> (i32, i32) {
    %c0_i32 = arith.constant 0 : i32
    return %arg2, %arg1 : i32, i32
  }
  func.func @transform_2(%arg0: i32, %arg1: i32, %arg2: i32) -> (i32, i32) {
    %c0_i32 = arith.constant 0 : i32
    %c0_i32_0 = arith.constant 0 : i32
    return %c0_i32, %arg1 : i32, i32
  }
  func.func @transform_3(%arg0: i32, %arg1: i32, %arg2: i32) -> (i32, i32) {
    %c0_i32 = arith.constant 0 : i32
    %c0_i32_0 = arith.constant 0 : i32
    return %c0_i32, %arg1 : i32, i32
  }
  func.func @transform_4(%arg0: i32, %arg1: i32, %arg2: i32) -> (i32, i32) {
    %c0_i32 = arith.constant 0 : i32
    return %arg0, %arg1 : i32, i32
  }
}

module attributes {stable_mosaic.version = 11 : i64} {
  func.func @_add_relu_kernel(%arg0: i32, %arg1: memref<16x128xf32, #tpu.memory_space<vmem>>, %arg2: memref<16x128xf32, #tpu.memory_space<vmem>>, %arg3: memref<16x128xf32, #tpu.memory_space<vmem>>) attributes {dimension_semantics = [#tpu.dimension_semantics<parallel>], iteration_bounds = array<i64: 1>, scalar_prefetch = 0 : i64, scratch_operands = 0 : i64, tpu.core_type = #tpu.core_type<tc>, window_params = [{transform_indices = @transform_0, window_bounds = array<i64: 16, 128>}, {transform_indices = @transform_1, window_bounds = array<i64: 16, 128>}, {transform_indices = @transform_2, window_bounds = array<i64: 16, 128>}]} {
    %c0 = arith.constant 0 : index
    %c0_0 = arith.constant 0 : index
    %0 = vector.load %arg1[%c0, %c0_0] : memref<16x128xf32, #tpu.memory_space<vmem>>, vector<16x128xf32>
    %c0_1 = arith.constant 0 : index
    %c0_2 = arith.constant 0 : index
    %1 = vector.load %arg2[%c0_1, %c0_2] : memref<16x128xf32, #tpu.memory_space<vmem>>, vector<16x128xf32>
    %2 = arith.addf %0, %1 : vector<16x128xf32>
    %cst = arith.constant 0.000000e+00 : f32
    %3 = vector.broadcast %cst : f32 to vector<16x128xf32>
    %4 = arith.maximumf %2, %3 : vector<16x128xf32>
    %c0_3 = arith.constant 0 : index
    %c0_4 = arith.constant 0 : index
    %5 = vector.load %arg3[%c0_3, %c0_4] : memref<16x128xf32, #tpu.memory_space<vmem>>, vector<16x128xf32>
    tpu.vector_store %arg3[%c0_3, %c0_4], %4 {strides = array<i32>} : memref<16x128xf32, #tpu.memory_space<vmem>>, vector<16x128xf32>,
    return
  }
  func.func @transform_0(%arg0: i32) -> (i32, i32) {
    %c0_i32 = arith.constant 0 : i32
    %c0_i32_0 = arith.constant 0 : i32
    return %arg0, %c0_i32 : i32, i32
  }
  func.func @transform_1(%arg0: i32) -> (i32, i32) {
    %c0_i32 = arith.constant 0 : i32
    %c0_i32_0 = arith.constant 0 : i32
    return %arg0, %c0_i32 : i32, i32
  }
  func.func @transform_2(%arg0: i32) -> (i32, i32) {
    %c0_i32 = arith.constant 0 : i32
    %c0_i32_0 = arith.constant 0 : i32
    return %arg0, %c0_i32 : i32, i32
  }
}

module attributes {stable_mosaic.version = 11 : i64} {
  func.func @_matmul_bn_act_kernel(%arg0: i32, %arg1: i32, %arg2: i32, %arg3: memref<16x128xbf16, #tpu.memory_space<vmem>>, %arg4: memref<128x128xbf16, #tpu.memory_space<vmem>>, %arg5: memref<1x128xf32, #tpu.memory_space<vmem>>, %arg6: memref<1x128xf32, #tpu.memory_space<vmem>>, %arg7: memref<16x128xf32, #tpu.memory_space<vmem>>, %arg8: memref<16x128xf32, #tpu.memory_space<vmem>>) attributes {dimension_semantics = [#tpu.dimension_semantics<parallel>, #tpu.dimension_semantics<parallel>, #tpu.dimension_semantics<arbitrary>], iteration_bounds = array<i64: 1, 1, 5>, scalar_prefetch = 0 : i64, scratch_operands = 1 : i64, tpu.core_type = #tpu.core_type<tc>, window_params = [{transform_indices = @transform_0, window_bounds = array<i64: 16, 128>}, {transform_indices = @transform_1, window_bounds = array<i64: 128, 128>}, {transform_indices = @transform_2, window_bounds = array<i64: 1, 128>}, {transform_indices = @transform_3, window_bounds = array<i64: 1, 128>}, {transform_indices = @transform_4, window_bounds = array<i64: 16, 128>}]} {
    %c0_i32 = arith.constant 0 : i32
    %0 = arith.cmpi eq, %arg2, %c0_i32 : i32
    %1 = arith.extui %0 : i1 to i32
    %c0_i32_0 = arith.constant 0 : i32
    %2 = arith.cmpi ne, %1, %c0_i32_0 : i32
    scf.if %2 {
      %cst_9 = arith.constant 0.000000e+00 : f32
      %12 = vector.broadcast %cst_9 : f32 to vector<16x128xf32>
      %c0_10 = arith.constant 0 : index
      %c0_11 = arith.constant 0 : index
      %13 = vector.load %arg8[%c0_10, %c0_11] : memref<16x128xf32, #tpu.memory_space<vmem>>, vector<16x128xf32>
      tpu.vector_store %arg8[%c0_10, %c0_11], %12 {strides = array<i32>} : memref<16x128xf32, #tpu.memory_space<vmem>>, vector<16x128xf32>,
    } else {
    }
    %c0 = arith.constant 0 : index
    %c0_1 = arith.constant 0 : index
    %3 = vector.load %arg8[%c0, %c0_1] : memref<16x128xf32, #tpu.memory_space<vmem>>, vector<16x128xf32>
    %c0_2 = arith.constant 0 : index
    %c0_3 = arith.constant 0 : index
    %4 = vector.load %arg3[%c0_2, %c0_3] : memref<16x128xbf16, #tpu.memory_space<vmem>>, vector<16x128xbf16>
    %c0_4 = arith.constant 0 : index
    %c0_5 = arith.constant 0 : index
    %5 = vector.load %arg4[%c0_4, %c0_5] : memref<128x128xbf16, #tpu.memory_space<vmem>>, vector<128x128xbf16>
    %cst = arith.constant dense<0.000000e+00> : vector<16x128xf32>
    %6 = tpu.matmul %4, %5, %cst {dimension_numbers = #tpu.dot_dimension_numbers<[1], [0], [0], [1], [0, 0, 1, 1], [], []>} : vector<16x128xbf16>, vector<128x128xbf16>, vector<16x128xf32> -> vector<16x128xf32>
    %7 = arith.addf %3, %6 : vector<16x128xf32>
    %c0_6 = arith.constant 0 : index
    %c0_7 = arith.constant 0 : index
    %8 = vector.load %arg8[%c0_6, %c0_7] : memref<16x128xf32, #tpu.memory_space<vmem>>, vector<16x128xf32>
    tpu.vector_store %arg8[%c0_6, %c0_7], %7 {strides = array<i32>} : memref<16x128xf32, #tpu.memory_space<vmem>>, vector<16x128xf32>,
    %c4_i32 = arith.constant 4 : i32
    %9 = arith.cmpi eq, %arg2, %c4_i32 : i32
    %10 = arith.extui %9 : i1 to i32
    %c0_i32_8 = arith.constant 0 : i32
    %11 = arith.cmpi ne, %10, %c0_i32_8 : i32
    scf.if %11 {
      %c0_9 = arith.constant 0 : index
      %c0_10 = arith.constant 0 : index
      %12 = vector.load %arg8[%c0_9, %c0_10] : memref<16x128xf32, #tpu.memory_space<vmem>>, vector<16x128xf32>
      %c0_11 = arith.constant 0 : index
      %c0_12 = arith.constant 0 : index
      %13 = vector.load %arg5[%c0_11, %c0_12] : memref<1x128xf32, #tpu.memory_space<vmem>>, vector<1x128xf32>
      %14 = vector.broadcast %13 : vector<1x128xf32> to vector<16x128xf32>
      %15 = arith.mulf %12, %14 : vector<16x128xf32>
      %c0_13 = arith.constant 0 : index
      %c0_14 = arith.constant 0 : index
      %16 = vector.load %arg6[%c0_13, %c0_14] : memref<1x128xf32, #tpu.memory_space<vmem>>, vector<1x128xf32>
      %17 = vector.broadcast %16 : vector<1x128xf32> to vector<16x128xf32>
      %18 = arith.addf %15, %17 : vector<16x128xf32>
      %cst_15 = arith.constant 0.000000e+00 : f32
      %19 = vector.broadcast %cst_15 : f32 to vector<16x128xf32>
      %20 = arith.maximumf %18, %19 : vector<16x128xf32>
      %c0_16 = arith.constant 0 : index
      %c0_17 = arith.constant 0 : index
      %21 = vector.load %arg7[%c0_16, %c0_17] : memref<16x128xf32, #tpu.memory_space<vmem>>, vector<16x128xf32>
      tpu.vector_store %arg7[%c0_16, %c0_17], %20 {strides = array<i32>} : memref<16x128xf32, #tpu.memory_space<vmem>>, vector<16x128xf32>,
    } else {
    }
    return
  }
  func.func @transform_0(%arg0: i32, %arg1: i32, %arg2: i32) -> (i32, i32) {
    %c0_i32 = arith.constant 0 : i32
    return %arg0, %arg2 : i32, i32
  }
  func.func @transform_1(%arg0: i32, %arg1: i32, %arg2: i32) -> (i32, i32) {
    %c0_i32 = arith.constant 0 : i32
    return %arg2, %arg1 : i32, i32
  }
  func.func @transform_2(%arg0: i32, %arg1: i32, %arg2: i32) -> (i32, i32) {
    %c0_i32 = arith.constant 0 : i32
    %c0_i32_0 = arith.constant 0 : i32
    return %c0_i32, %arg1 : i32, i32
  }
  func.func @transform_3(%arg0: i32, %arg1: i32, %arg2: i32) -> (i32, i32) {
    %c0_i32 = arith.constant 0 : i32
    %c0_i32_0 = arith.constant 0 : i32
    return %c0_i32, %arg1 : i32, i32
  }
  func.func @transform_4(%arg0: i32, %arg1: i32, %arg2: i32) -> (i32, i32) {
    %c0_i32 = arith.constant 0 : i32
    return %arg0, %arg1 : i32, i32
  }
}

module attributes {stable_mosaic.version = 11 : i64} {
  func.func @_add_relu_kernel(%arg0: i32, %arg1: memref<8x128xf32, #tpu.memory_space<vmem>>, %arg2: memref<8x128xf32, #tpu.memory_space<vmem>>, %arg3: memref<8x128xf32, #tpu.memory_space<vmem>>) attributes {dimension_semantics = [#tpu.dimension_semantics<parallel>], iteration_bounds = array<i64: 1>, scalar_prefetch = 0 : i64, scratch_operands = 0 : i64, tpu.core_type = #tpu.core_type<tc>, window_params = [{transform_indices = @transform_0, window_bounds = array<i64: 8, 128>}, {transform_indices = @transform_1, window_bounds = array<i64: 8, 128>}, {transform_indices = @transform_2, window_bounds = array<i64: 8, 128>}]} {
    %c0 = arith.constant 0 : index
    %c0_0 = arith.constant 0 : index
    %0 = vector.load %arg1[%c0, %c0_0] : memref<8x128xf32, #tpu.memory_space<vmem>>, vector<8x128xf32>
    %c0_1 = arith.constant 0 : index
    %c0_2 = arith.constant 0 : index
    %1 = vector.load %arg2[%c0_1, %c0_2] : memref<8x128xf32, #tpu.memory_space<vmem>>, vector<8x128xf32>
    %2 = arith.addf %0, %1 : vector<8x128xf32>
    %cst = arith.constant 0.000000e+00 : f32
    %3 = vector.broadcast %cst : f32 to vector<8x128xf32>
    %4 = arith.maximumf %2, %3 : vector<8x128xf32>
    %c0_3 = arith.constant 0 : index
    %c0_4 = arith.constant 0 : index
    %5 = vector.load %arg3[%c0_3, %c0_4] : memref<8x128xf32, #tpu.memory_space<vmem>>, vector<8x128xf32>
    tpu.vector_store %arg3[%c0_3, %c0_4], %4 {strides = array<i32>} : memref<8x128xf32, #tpu.memory_space<vmem>>, vector<8x128xf32>,
    return
  }
  func.func @transform_0(%arg0: i32) -> (i32, i32) {
    %c0_i32 = arith.constant 0 : i32
    %c0_i32_0 = arith.constant 0 : i32
    return %arg0, %c0_i32 : i32, i32
  }
  func.func @transform_1(%arg0: i32) -> (i32, i32) {
    %c0_i32 = arith.constant 0 : i32
    %c0_i32_0 = arith.constant 0 : i32
    return %arg0, %c0_i32 : i32, i32
  }
  func.func @transform_2(%arg0: i32) -> (i32, i32) {
    %c0_i32 = arith.constant 0 : i32
    %c0_i32_0 = arith.constant 0 : i32
    return %arg0, %c0_i32 : i32, i32
  }
}

module attributes {stable_mosaic.version = 11 : i64} {
  func.func @_matmul_bn_act_kernel(%arg0: i32, %arg1: i32, %arg2: i32, %arg3: memref<16x128xbf16, #tpu.memory_space<vmem>>, %arg4: memref<128x128xbf16, #tpu.memory_space<vmem>>, %arg5: memref<1x128xf32, #tpu.memory_space<vmem>>, %arg6: memref<1x128xf32, #tpu.memory_space<vmem>>, %arg7: memref<16x128xf32, #tpu.memory_space<vmem>>, %arg8: memref<16x128xf32, #tpu.memory_space<vmem>>) attributes {dimension_semantics = [#tpu.dimension_semantics<parallel>, #tpu.dimension_semantics<parallel>, #tpu.dimension_semantics<arbitrary>], iteration_bounds = array<i64: 1, 1, 9>, scalar_prefetch = 0 : i64, scratch_operands = 1 : i64, tpu.core_type = #tpu.core_type<tc>, window_params = [{transform_indices = @transform_0, window_bounds = array<i64: 16, 128>}, {transform_indices = @transform_1, window_bounds = array<i64: 128, 128>}, {transform_indices = @transform_2, window_bounds = array<i64: 1, 128>}, {transform_indices = @transform_3, window_bounds = array<i64: 1, 128>}, {transform_indices = @transform_4, window_bounds = array<i64: 16, 128>}]} {
    %c0_i32 = arith.constant 0 : i32
    %0 = arith.cmpi eq, %arg2, %c0_i32 : i32
    %1 = arith.extui %0 : i1 to i32
    %c0_i32_0 = arith.constant 0 : i32
    %2 = arith.cmpi ne, %1, %c0_i32_0 : i32
    scf.if %2 {
      %cst_9 = arith.constant 0.000000e+00 : f32
      %12 = vector.broadcast %cst_9 : f32 to vector<16x128xf32>
      %c0_10 = arith.constant 0 : index
      %c0_11 = arith.constant 0 : index
      %13 = vector.load %arg8[%c0_10, %c0_11] : memref<16x128xf32, #tpu.memory_space<vmem>>, vector<16x128xf32>
      tpu.vector_store %arg8[%c0_10, %c0_11], %12 {strides = array<i32>} : memref<16x128xf32, #tpu.memory_space<vmem>>, vector<16x128xf32>,
    } else {
    }
    %c0 = arith.constant 0 : index
    %c0_1 = arith.constant 0 : index
    %3 = vector.load %arg8[%c0, %c0_1] : memref<16x128xf32, #tpu.memory_space<vmem>>, vector<16x128xf32>
    %c0_2 = arith.constant 0 : index
    %c0_3 = arith.constant 0 : index
    %4 = vector.load %arg3[%c0_2, %c0_3] : memref<16x128xbf16, #tpu.memory_space<vmem>>, vector<16x128xbf16>
    %c0_4 = arith.constant 0 : index
    %c0_5 = arith.constant 0 : index
    %5 = vector.load %arg4[%c0_4, %c0_5] : memref<128x128xbf16, #tpu.memory_space<vmem>>, vector<128x128xbf16>
    %cst = arith.constant dense<0.000000e+00> : vector<16x128xf32>
    %6 = tpu.matmul %4, %5, %cst {dimension_numbers = #tpu.dot_dimension_numbers<[1], [0], [0], [1], [0, 0, 1, 1], [], []>} : vector<16x128xbf16>, vector<128x128xbf16>, vector<16x128xf32> -> vector<16x128xf32>
    %7 = arith.addf %3, %6 : vector<16x128xf32>
    %c0_6 = arith.constant 0 : index
    %c0_7 = arith.constant 0 : index
    %8 = vector.load %arg8[%c0_6, %c0_7] : memref<16x128xf32, #tpu.memory_space<vmem>>, vector<16x128xf32>
    tpu.vector_store %arg8[%c0_6, %c0_7], %7 {strides = array<i32>} : memref<16x128xf32, #tpu.memory_space<vmem>>, vector<16x128xf32>,
    %c8_i32 = arith.constant 8 : i32
    %9 = arith.cmpi eq, %arg2, %c8_i32 : i32
    %10 = arith.extui %9 : i1 to i32
    %c0_i32_8 = arith.constant 0 : i32
    %11 = arith.cmpi ne, %10, %c0_i32_8 : i32
    scf.if %11 {
      %c0_9 = arith.constant 0 : index
      %c0_10 = arith.constant 0 : index
      %12 = vector.load %arg8[%c0_9, %c0_10] : memref<16x128xf32, #tpu.memory_space<vmem>>, vector<16x128xf32>
      %c0_11 = arith.constant 0 : index
      %c0_12 = arith.constant 0 : index
      %13 = vector.load %arg5[%c0_11, %c0_12] : memref<1x128xf32, #tpu.memory_space<vmem>>, vector<1x128xf32>
      %14 = vector.broadcast %13 : vector<1x128xf32> to vector<16x128xf32>
      %15 = arith.mulf %12, %14 : vector<16x128xf32>
      %c0_13 = arith.constant 0 : index
      %c0_14 = arith.constant 0 : index
      %16 = vector.load %arg6[%c0_13, %c0_14] : memref<1x128xf32, #tpu.memory_space<vmem>>, vector<1x128xf32>
      %17 = vector.broadcast %16 : vector<1x128xf32> to vector<16x128xf32>
      %18 = arith.addf %15, %17 : vector<16x128xf32>
      %c0_15 = arith.constant 0 : index
      %c0_16 = arith.constant 0 : index
      %19 = vector.load %arg7[%c0_15, %c0_16] : memref<16x128xf32, #tpu.memory_space<vmem>>, vector<16x128xf32>
      tpu.vector_store %arg7[%c0_15, %c0_16], %18 {strides = array<i32>} : memref<16x128xf32, #tpu.memory_space<vmem>>, vector<16x128xf32>,
    } else {
    }
    return
  }
  func.func @transform_0(%arg0: i32, %arg1: i32, %arg2: i32) -> (i32, i32) {
    %c0_i32 = arith.constant 0 : i32
    return %arg0, %arg2 : i32, i32
  }
  func.func @transform_1(%arg0: i32, %arg1: i32, %arg2: i32) -> (i32, i32) {
    %c0_i32 = arith.constant 0 : i32
    return %arg2, %arg1 : i32, i32
  }
  func.func @transform_2(%arg0: i32, %arg1: i32, %arg2: i32) -> (i32, i32) {
    %c0_i32 = arith.constant 0 : i32
    %c0_i32_0 = arith.constant 0 : i32
    return %c0_i32, %arg1 : i32, i32
  }
  func.func @transform_3(%arg0: i32, %arg1: i32, %arg2: i32) -> (i32, i32) {
    %c0_i32 = arith.constant 0 : i32
    %c0_i32_0 = arith.constant 0 : i32
    return %c0_i32, %arg1 : i32, i32
  }
  func.func @transform_4(%arg0: i32, %arg1: i32, %arg2: i32) -> (i32, i32) {
    %c0_i32 = arith.constant 0 : i32
    return %arg0, %arg1 : i32, i32
  }
}

module attributes {stable_mosaic.version = 11 : i64} {
  func.func @_matmul_bn_act_kernel(%arg0: i32, %arg1: i32, %arg2: i32, %arg3: memref<16x128xbf16, #tpu.memory_space<vmem>>, %arg4: memref<128x128xbf16, #tpu.memory_space<vmem>>, %arg5: memref<1x128xf32, #tpu.memory_space<vmem>>, %arg6: memref<1x128xf32, #tpu.memory_space<vmem>>, %arg7: memref<16x128xf32, #tpu.memory_space<vmem>>, %arg8: memref<16x128xf32, #tpu.memory_space<vmem>>) attributes {dimension_semantics = [#tpu.dimension_semantics<parallel>, #tpu.dimension_semantics<parallel>, #tpu.dimension_semantics<arbitrary>], iteration_bounds = array<i64: 1, 1, 9>, scalar_prefetch = 0 : i64, scratch_operands = 1 : i64, tpu.core_type = #tpu.core_type<tc>, window_params = [{transform_indices = @transform_0, window_bounds = array<i64: 16, 128>}, {transform_indices = @transform_1, window_bounds = array<i64: 128, 128>}, {transform_indices = @transform_2, window_bounds = array<i64: 1, 128>}, {transform_indices = @transform_3, window_bounds = array<i64: 1, 128>}, {transform_indices = @transform_4, window_bounds = array<i64: 16, 128>}]} {
    %c0_i32 = arith.constant 0 : i32
    %0 = arith.cmpi eq, %arg2, %c0_i32 : i32
    %1 = arith.extui %0 : i1 to i32
    %c0_i32_0 = arith.constant 0 : i32
    %2 = arith.cmpi ne, %1, %c0_i32_0 : i32
    scf.if %2 {
      %cst_9 = arith.constant 0.000000e+00 : f32
      %12 = vector.broadcast %cst_9 : f32 to vector<16x128xf32>
      %c0_10 = arith.constant 0 : index
      %c0_11 = arith.constant 0 : index
      %13 = vector.load %arg8[%c0_10, %c0_11] : memref<16x128xf32, #tpu.memory_space<vmem>>, vector<16x128xf32>
      tpu.vector_store %arg8[%c0_10, %c0_11], %12 {strides = array<i32>} : memref<16x128xf32, #tpu.memory_space<vmem>>, vector<16x128xf32>,
    } else {
    }
    %c0 = arith.constant 0 : index
    %c0_1 = arith.constant 0 : index
    %3 = vector.load %arg8[%c0, %c0_1] : memref<16x128xf32, #tpu.memory_space<vmem>>, vector<16x128xf32>
    %c0_2 = arith.constant 0 : index
    %c0_3 = arith.constant 0 : index
    %4 = vector.load %arg3[%c0_2, %c0_3] : memref<16x128xbf16, #tpu.memory_space<vmem>>, vector<16x128xbf16>
    %c0_4 = arith.constant 0 : index
    %c0_5 = arith.constant 0 : index
    %5 = vector.load %arg4[%c0_4, %c0_5] : memref<128x128xbf16, #tpu.memory_space<vmem>>, vector<128x128xbf16>
    %cst = arith.constant dense<0.000000e+00> : vector<16x128xf32>
    %6 = tpu.matmul %4, %5, %cst {dimension_numbers = #tpu.dot_dimension_numbers<[1], [0], [0], [1], [0, 0, 1, 1], [], []>} : vector<16x128xbf16>, vector<128x128xbf16>, vector<16x128xf32> -> vector<16x128xf32>
    %7 = arith.addf %3, %6 : vector<16x128xf32>
    %c0_6 = arith.constant 0 : index
    %c0_7 = arith.constant 0 : index
    %8 = vector.load %arg8[%c0_6, %c0_7] : memref<16x128xf32, #tpu.memory_space<vmem>>, vector<16x128xf32>
    tpu.vector_store %arg8[%c0_6, %c0_7], %7 {strides = array<i32>} : memref<16x128xf32, #tpu.memory_space<vmem>>, vector<16x128xf32>,
    %c8_i32 = arith.constant 8 : i32
    %9 = arith.cmpi eq, %arg2, %c8_i32 : i32
    %10 = arith.extui %9 : i1 to i32
    %c0_i32_8 = arith.constant 0 : i32
    %11 = arith.cmpi ne, %10, %c0_i32_8 : i32
    scf.if %11 {
      %c0_9 = arith.constant 0 : index
      %c0_10 = arith.constant 0 : index
      %12 = vector.load %arg8[%c0_9, %c0_10] : memref<16x128xf32, #tpu.memory_space<vmem>>, vector<16x128xf32>
      %c0_11 = arith.constant 0 : index
      %c0_12 = arith.constant 0 : index
      %13 = vector.load %arg5[%c0_11, %c0_12] : memref<1x128xf32, #tpu.memory_space<vmem>>, vector<1x128xf32>
      %14 = vector.broadcast %13 : vector<1x128xf32> to vector<16x128xf32>
      %15 = arith.mulf %12, %14 : vector<16x128xf32>
      %c0_13 = arith.constant 0 : index
      %c0_14 = arith.constant 0 : index
      %16 = vector.load %arg6[%c0_13, %c0_14] : memref<1x128xf32, #tpu.memory_space<vmem>>, vector<1x128xf32>
      %17 = vector.broadcast %16 : vector<1x128xf32> to vector<16x128xf32>
      %18 = arith.addf %15, %17 : vector<16x128xf32>
      %cst_15 = arith.constant 0.000000e+00 : f32
      %19 = vector.broadcast %cst_15 : f32 to vector<16x128xf32>
      %20 = arith.maximumf %18, %19 : vector<16x128xf32>
      %c0_16 = arith.constant 0 : index
      %c0_17 = arith.constant 0 : index
      %21 = vector.load %arg7[%c0_16, %c0_17] : memref<16x128xf32, #tpu.memory_space<vmem>>, vector<16x128xf32>
      tpu.vector_store %arg7[%c0_16, %c0_17], %20 {strides = array<i32>} : memref<16x128xf32, #tpu.memory_space<vmem>>, vector<16x128xf32>,
    } else {
    }
    return
  }
  func.func @transform_0(%arg0: i32, %arg1: i32, %arg2: i32) -> (i32, i32) {
    %c0_i32 = arith.constant 0 : i32
    return %arg0, %arg2 : i32, i32
  }
  func.func @transform_1(%arg0: i32, %arg1: i32, %arg2: i32) -> (i32, i32) {
    %c0_i32 = arith.constant 0 : i32
    return %arg2, %arg1 : i32, i32
  }
  func.func @transform_2(%arg0: i32, %arg1: i32, %arg2: i32) -> (i32, i32) {
    %c0_i32 = arith.constant 0 : i32
    %c0_i32_0 = arith.constant 0 : i32
    return %c0_i32, %arg1 : i32, i32
  }
  func.func @transform_3(%arg0: i32, %arg1: i32, %arg2: i32) -> (i32, i32) {
    %c0_i32 = arith.constant 0 : i32
    %c0_i32_0 = arith.constant 0 : i32
    return %c0_i32, %arg1 : i32, i32
  }
  func.func @transform_4(%arg0: i32, %arg1: i32, %arg2: i32) -> (i32, i32) {
    %c0_i32 = arith.constant 0 : i32
    return %arg0, %arg1 : i32, i32
  }
}

module attributes {stable_mosaic.version = 11 : i64} {
  func.func @_matmul_bn_act_kernel(%arg0: i32, %arg1: i32, %arg2: i32, %arg3: memref<16x128xbf16, #tpu.memory_space<vmem>>, %arg4: memref<128x128xbf16, #tpu.memory_space<vmem>>, %arg5: memref<1x128xf32, #tpu.memory_space<vmem>>, %arg6: memref<1x128xf32, #tpu.memory_space<vmem>>, %arg7: memref<16x128xf32, #tpu.memory_space<vmem>>, %arg8: memref<16x128xf32, #tpu.memory_space<vmem>>) attributes {dimension_semantics = [#tpu.dimension_semantics<parallel>, #tpu.dimension_semantics<parallel>, #tpu.dimension_semantics<arbitrary>], iteration_bounds = array<i64: 1, 1, 1>, scalar_prefetch = 0 : i64, scratch_operands = 1 : i64, tpu.core_type = #tpu.core_type<tc>, window_params = [{transform_indices = @transform_0, window_bounds = array<i64: 16, 128>}, {transform_indices = @transform_1, window_bounds = array<i64: 128, 128>}, {transform_indices = @transform_2, window_bounds = array<i64: 1, 128>}, {transform_indices = @transform_3, window_bounds = array<i64: 1, 128>}, {transform_indices = @transform_4, window_bounds = array<i64: 16, 128>}]} {
    %c0_i32 = arith.constant 0 : i32
    %0 = arith.cmpi eq, %arg2, %c0_i32 : i32
    %1 = arith.extui %0 : i1 to i32
    %c0_i32_0 = arith.constant 0 : i32
    %2 = arith.cmpi ne, %1, %c0_i32_0 : i32
    scf.if %2 {
      %cst_10 = arith.constant 0.000000e+00 : f32
      %12 = vector.broadcast %cst_10 : f32 to vector<16x128xf32>
      %c0_11 = arith.constant 0 : index
      %c0_12 = arith.constant 0 : index
      %13 = vector.load %arg8[%c0_11, %c0_12] : memref<16x128xf32, #tpu.memory_space<vmem>>, vector<16x128xf32>
      tpu.vector_store %arg8[%c0_11, %c0_12], %12 {strides = array<i32>} : memref<16x128xf32, #tpu.memory_space<vmem>>, vector<16x128xf32>,
    } else {
    }
    %c0 = arith.constant 0 : index
    %c0_1 = arith.constant 0 : index
    %3 = vector.load %arg8[%c0, %c0_1] : memref<16x128xf32, #tpu.memory_space<vmem>>, vector<16x128xf32>
    %c0_2 = arith.constant 0 : index
    %c0_3 = arith.constant 0 : index
    %4 = vector.load %arg3[%c0_2, %c0_3] : memref<16x128xbf16, #tpu.memory_space<vmem>>, vector<16x128xbf16>
    %c0_4 = arith.constant 0 : index
    %c0_5 = arith.constant 0 : index
    %5 = vector.load %arg4[%c0_4, %c0_5] : memref<128x128xbf16, #tpu.memory_space<vmem>>, vector<128x128xbf16>
    %cst = arith.constant dense<0.000000e+00> : vector<16x128xf32>
    %6 = tpu.matmul %4, %5, %cst {dimension_numbers = #tpu.dot_dimension_numbers<[1], [0], [0], [1], [0, 0, 1, 1], [], []>} : vector<16x128xbf16>, vector<128x128xbf16>, vector<16x128xf32> -> vector<16x128xf32>
    %7 = arith.addf %3, %6 : vector<16x128xf32>
    %c0_6 = arith.constant 0 : index
    %c0_7 = arith.constant 0 : index
    %8 = vector.load %arg8[%c0_6, %c0_7] : memref<16x128xf32, #tpu.memory_space<vmem>>, vector<16x128xf32>
    tpu.vector_store %arg8[%c0_6, %c0_7], %7 {strides = array<i32>} : memref<16x128xf32, #tpu.memory_space<vmem>>, vector<16x128xf32>,
    %c0_i32_8 = arith.constant 0 : i32
    %9 = arith.cmpi eq, %arg2, %c0_i32_8 : i32
    %10 = arith.extui %9 : i1 to i32
    %c0_i32_9 = arith.constant 0 : i32
    %11 = arith.cmpi ne, %10, %c0_i32_9 : i32
    scf.if %11 {
      %c0_10 = arith.constant 0 : index
      %c0_11 = arith.constant 0 : index
      %12 = vector.load %arg8[%c0_10, %c0_11] : memref<16x128xf32, #tpu.memory_space<vmem>>, vector<16x128xf32>
      %c0_12 = arith.constant 0 : index
      %c0_13 = arith.constant 0 : index
      %13 = vector.load %arg5[%c0_12, %c0_13] : memref<1x128xf32, #tpu.memory_space<vmem>>, vector<1x128xf32>
      %14 = vector.broadcast %13 : vector<1x128xf32> to vector<16x128xf32>
      %15 = arith.mulf %12, %14 : vector<16x128xf32>
      %c0_14 = arith.constant 0 : index
      %c0_15 = arith.constant 0 : index
      %16 = vector.load %arg6[%c0_14, %c0_15] : memref<1x128xf32, #tpu.memory_space<vmem>>, vector<1x128xf32>
      %17 = vector.broadcast %16 : vector<1x128xf32> to vector<16x128xf32>
      %18 = arith.addf %15, %17 : vector<16x128xf32>
      %c0_16 = arith.constant 0 : index
      %c0_17 = arith.constant 0 : index
      %19 = vector.load %arg7[%c0_16, %c0_17] : memref<16x128xf32, #tpu.memory_space<vmem>>, vector<16x128xf32>
      tpu.vector_store %arg7[%c0_16, %c0_17], %18 {strides = array<i32>} : memref<16x128xf32, #tpu.memory_space<vmem>>, vector<16x128xf32>,
    } else {
    }
    return
  }
  func.func @transform_0(%arg0: i32, %arg1: i32, %arg2: i32) -> (i32, i32) {
    %c0_i32 = arith.constant 0 : i32
    return %arg0, %arg2 : i32, i32
  }
  func.func @transform_1(%arg0: i32, %arg1: i32, %arg2: i32) -> (i32, i32) {
    %c0_i32 = arith.constant 0 : i32
    return %arg2, %arg1 : i32, i32
  }
  func.func @transform_2(%arg0: i32, %arg1: i32, %arg2: i32) -> (i32, i32) {
    %c0_i32 = arith.constant 0 : i32
    %c0_i32_0 = arith.constant 0 : i32
    return %c0_i32, %arg1 : i32, i32
  }
  func.func @transform_3(%arg0: i32, %arg1: i32, %arg2: i32) -> (i32, i32) {
    %c0_i32 = arith.constant 0 : i32
    %c0_i32_0 = arith.constant 0 : i32
    return %c0_i32, %arg1 : i32, i32
  }
  func.func @transform_4(%arg0: i32, %arg1: i32, %arg2: i32) -> (i32, i32) {
    %c0_i32 = arith.constant 0 : i32
    return %arg0, %arg1 : i32, i32
  }
}

module attributes {stable_mosaic.version = 11 : i64} {
  func.func @_matmul_bn_act_kernel(%arg0: i32, %arg1: i32, %arg2: i32, %arg3: memref<16x128xbf16, #tpu.memory_space<vmem>>, %arg4: memref<128x256xbf16, #tpu.memory_space<vmem>>, %arg5: memref<1x256xf32, #tpu.memory_space<vmem>>, %arg6: memref<1x256xf32, #tpu.memory_space<vmem>>, %arg7: memref<16x256xf32, #tpu.memory_space<vmem>>, %arg8: memref<16x256xf32, #tpu.memory_space<vmem>>) attributes {dimension_semantics = [#tpu.dimension_semantics<parallel>, #tpu.dimension_semantics<parallel>, #tpu.dimension_semantics<arbitrary>], iteration_bounds = array<i64: 1, 1, 9>, scalar_prefetch = 0 : i64, scratch_operands = 1 : i64, tpu.core_type = #tpu.core_type<tc>, window_params = [{transform_indices = @transform_0, window_bounds = array<i64: 16, 128>}, {transform_indices = @transform_1, window_bounds = array<i64: 128, 256>}, {transform_indices = @transform_2, window_bounds = array<i64: 1, 256>}, {transform_indices = @transform_3, window_bounds = array<i64: 1, 256>}, {transform_indices = @transform_4, window_bounds = array<i64: 16, 256>}]} {
    %c0_i32 = arith.constant 0 : i32
    %0 = arith.cmpi eq, %arg2, %c0_i32 : i32
    %1 = arith.extui %0 : i1 to i32
    %c0_i32_0 = arith.constant 0 : i32
    %2 = arith.cmpi ne, %1, %c0_i32_0 : i32
    scf.if %2 {
      %cst_9 = arith.constant 0.000000e+00 : f32
      %12 = vector.broadcast %cst_9 : f32 to vector<16x256xf32>
      %c0_10 = arith.constant 0 : index
      %c0_11 = arith.constant 0 : index
      %13 = vector.load %arg8[%c0_10, %c0_11] : memref<16x256xf32, #tpu.memory_space<vmem>>, vector<16x256xf32>
      tpu.vector_store %arg8[%c0_10, %c0_11], %12 {strides = array<i32>} : memref<16x256xf32, #tpu.memory_space<vmem>>, vector<16x256xf32>,
    } else {
    }
    %c0 = arith.constant 0 : index
    %c0_1 = arith.constant 0 : index
    %3 = vector.load %arg8[%c0, %c0_1] : memref<16x256xf32, #tpu.memory_space<vmem>>, vector<16x256xf32>
    %c0_2 = arith.constant 0 : index
    %c0_3 = arith.constant 0 : index
    %4 = vector.load %arg3[%c0_2, %c0_3] : memref<16x128xbf16, #tpu.memory_space<vmem>>, vector<16x128xbf16>
    %c0_4 = arith.constant 0 : index
    %c0_5 = arith.constant 0 : index
    %5 = vector.load %arg4[%c0_4, %c0_5] : memref<128x256xbf16, #tpu.memory_space<vmem>>, vector<128x256xbf16>
    %cst = arith.constant dense<0.000000e+00> : vector<16x256xf32>
    %6 = tpu.matmul %4, %5, %cst {dimension_numbers = #tpu.dot_dimension_numbers<[1], [0], [0], [1], [0, 0, 1, 1], [], []>} : vector<16x128xbf16>, vector<128x256xbf16>, vector<16x256xf32> -> vector<16x256xf32>
    %7 = arith.addf %3, %6 : vector<16x256xf32>
    %c0_6 = arith.constant 0 : index
    %c0_7 = arith.constant 0 : index
    %8 = vector.load %arg8[%c0_6, %c0_7] : memref<16x256xf32, #tpu.memory_space<vmem>>, vector<16x256xf32>
    tpu.vector_store %arg8[%c0_6, %c0_7], %7 {strides = array<i32>} : memref<16x256xf32, #tpu.memory_space<vmem>>, vector<16x256xf32>,
    %c8_i32 = arith.constant 8 : i32
    %9 = arith.cmpi eq, %arg2, %c8_i32 : i32
    %10 = arith.extui %9 : i1 to i32
    %c0_i32_8 = arith.constant 0 : i32
    %11 = arith.cmpi ne, %10, %c0_i32_8 : i32
    scf.if %11 {
      %c0_9 = arith.constant 0 : index
      %c0_10 = arith.constant 0 : index
      %12 = vector.load %arg8[%c0_9, %c0_10] : memref<16x256xf32, #tpu.memory_space<vmem>>, vector<16x256xf32>
      %c0_11 = arith.constant 0 : index
      %c0_12 = arith.constant 0 : index
      %13 = vector.load %arg5[%c0_11, %c0_12] : memref<1x256xf32, #tpu.memory_space<vmem>>, vector<1x256xf32>
      %14 = vector.broadcast %13 : vector<1x256xf32> to vector<16x256xf32>
      %15 = arith.mulf %12, %14 : vector<16x256xf32>
      %c0_13 = arith.constant 0 : index
      %c0_14 = arith.constant 0 : index
      %16 = vector.load %arg6[%c0_13, %c0_14] : memref<1x256xf32, #tpu.memory_space<vmem>>, vector<1x256xf32>
      %17 = vector.broadcast %16 : vector<1x256xf32> to vector<16x256xf32>
      %18 = arith.addf %15, %17 : vector<16x256xf32>
      %cst_15 = arith.constant 0.000000e+00 : f32
      %19 = vector.broadcast %cst_15 : f32 to vector<16x256xf32>
      %20 = arith.maximumf %18, %19 : vector<16x256xf32>
      %c0_16 = arith.constant 0 : index
      %c0_17 = arith.constant 0 : index
      %21 = vector.load %arg7[%c0_16, %c0_17] : memref<16x256xf32, #tpu.memory_space<vmem>>, vector<16x256xf32>
      tpu.vector_store %arg7[%c0_16, %c0_17], %20 {strides = array<i32>} : memref<16x256xf32, #tpu.memory_space<vmem>>, vector<16x256xf32>,
    } else {
    }
    return
  }
  func.func @transform_0(%arg0: i32, %arg1: i32, %arg2: i32) -> (i32, i32) {
    %c0_i32 = arith.constant 0 : i32
    return %arg0, %arg2 : i32, i32
  }
  func.func @transform_1(%arg0: i32, %arg1: i32, %arg2: i32) -> (i32, i32) {
    %c0_i32 = arith.constant 0 : i32
    return %arg2, %arg1 : i32, i32
  }
  func.func @transform_2(%arg0: i32, %arg1: i32, %arg2: i32) -> (i32, i32) {
    %c0_i32 = arith.constant 0 : i32
    %c0_i32_0 = arith.constant 0 : i32
    return %c0_i32, %arg1 : i32, i32
  }
  func.func @transform_3(%arg0: i32, %arg1: i32, %arg2: i32) -> (i32, i32) {
    %c0_i32 = arith.constant 0 : i32
    %c0_i32_0 = arith.constant 0 : i32
    return %c0_i32, %arg1 : i32, i32
  }
  func.func @transform_4(%arg0: i32, %arg1: i32, %arg2: i32) -> (i32, i32) {
    %c0_i32 = arith.constant 0 : i32
    return %arg0, %arg1 : i32, i32
  }
}

module attributes {stable_mosaic.version = 11 : i64} {
  func.func @_matmul_bn_act_kernel(%arg0: i32, %arg1: i32, %arg2: i32, %arg3: memref<16x128xbf16, #tpu.memory_space<vmem>>, %arg4: memref<128x256xbf16, #tpu.memory_space<vmem>>, %arg5: memref<1x256xf32, #tpu.memory_space<vmem>>, %arg6: memref<1x256xf32, #tpu.memory_space<vmem>>, %arg7: memref<16x256xf32, #tpu.memory_space<vmem>>, %arg8: memref<16x256xf32, #tpu.memory_space<vmem>>) attributes {dimension_semantics = [#tpu.dimension_semantics<parallel>, #tpu.dimension_semantics<parallel>, #tpu.dimension_semantics<arbitrary>], iteration_bounds = array<i64: 1, 1, 18>, scalar_prefetch = 0 : i64, scratch_operands = 1 : i64, tpu.core_type = #tpu.core_type<tc>, window_params = [{transform_indices = @transform_0, window_bounds = array<i64: 16, 128>}, {transform_indices = @transform_1, window_bounds = array<i64: 128, 256>}, {transform_indices = @transform_2, window_bounds = array<i64: 1, 256>}, {transform_indices = @transform_3, window_bounds = array<i64: 1, 256>}, {transform_indices = @transform_4, window_bounds = array<i64: 16, 256>}]} {
    %c0_i32 = arith.constant 0 : i32
    %0 = arith.cmpi eq, %arg2, %c0_i32 : i32
    %1 = arith.extui %0 : i1 to i32
    %c0_i32_0 = arith.constant 0 : i32
    %2 = arith.cmpi ne, %1, %c0_i32_0 : i32
    scf.if %2 {
      %cst_9 = arith.constant 0.000000e+00 : f32
      %12 = vector.broadcast %cst_9 : f32 to vector<16x256xf32>
      %c0_10 = arith.constant 0 : index
      %c0_11 = arith.constant 0 : index
      %13 = vector.load %arg8[%c0_10, %c0_11] : memref<16x256xf32, #tpu.memory_space<vmem>>, vector<16x256xf32>
      tpu.vector_store %arg8[%c0_10, %c0_11], %12 {strides = array<i32>} : memref<16x256xf32, #tpu.memory_space<vmem>>, vector<16x256xf32>,
    } else {
    }
    %c0 = arith.constant 0 : index
    %c0_1 = arith.constant 0 : index
    %3 = vector.load %arg8[%c0, %c0_1] : memref<16x256xf32, #tpu.memory_space<vmem>>, vector<16x256xf32>
    %c0_2 = arith.constant 0 : index
    %c0_3 = arith.constant 0 : index
    %4 = vector.load %arg3[%c0_2, %c0_3] : memref<16x128xbf16, #tpu.memory_space<vmem>>, vector<16x128xbf16>
    %c0_4 = arith.constant 0 : index
    %c0_5 = arith.constant 0 : index
    %5 = vector.load %arg4[%c0_4, %c0_5] : memref<128x256xbf16, #tpu.memory_space<vmem>>, vector<128x256xbf16>
    %cst = arith.constant dense<0.000000e+00> : vector<16x256xf32>
    %6 = tpu.matmul %4, %5, %cst {dimension_numbers = #tpu.dot_dimension_numbers<[1], [0], [0], [1], [0, 0, 1, 1], [], []>} : vector<16x128xbf16>, vector<128x256xbf16>, vector<16x256xf32> -> vector<16x256xf32>
    %7 = arith.addf %3, %6 : vector<16x256xf32>
    %c0_6 = arith.constant 0 : index
    %c0_7 = arith.constant 0 : index
    %8 = vector.load %arg8[%c0_6, %c0_7] : memref<16x256xf32, #tpu.memory_space<vmem>>, vector<16x256xf32>
    tpu.vector_store %arg8[%c0_6, %c0_7], %7 {strides = array<i32>} : memref<16x256xf32, #tpu.memory_space<vmem>>, vector<16x256xf32>,
    %c17_i32 = arith.constant 17 : i32
    %9 = arith.cmpi eq, %arg2, %c17_i32 : i32
    %10 = arith.extui %9 : i1 to i32
    %c0_i32_8 = arith.constant 0 : i32
    %11 = arith.cmpi ne, %10, %c0_i32_8 : i32
    scf.if %11 {
      %c0_9 = arith.constant 0 : index
      %c0_10 = arith.constant 0 : index
      %12 = vector.load %arg8[%c0_9, %c0_10] : memref<16x256xf32, #tpu.memory_space<vmem>>, vector<16x256xf32>
      %c0_11 = arith.constant 0 : index
      %c0_12 = arith.constant 0 : index
      %13 = vector.load %arg5[%c0_11, %c0_12] : memref<1x256xf32, #tpu.memory_space<vmem>>, vector<1x256xf32>
      %14 = vector.broadcast %13 : vector<1x256xf32> to vector<16x256xf32>
      %15 = arith.mulf %12, %14 : vector<16x256xf32>
      %c0_13 = arith.constant 0 : index
      %c0_14 = arith.constant 0 : index
      %16 = vector.load %arg6[%c0_13, %c0_14] : memref<1x256xf32, #tpu.memory_space<vmem>>, vector<1x256xf32>
      %17 = vector.broadcast %16 : vector<1x256xf32> to vector<16x256xf32>
      %18 = arith.addf %15, %17 : vector<16x256xf32>
      %c0_15 = arith.constant 0 : index
      %c0_16 = arith.constant 0 : index
      %19 = vector.load %arg7[%c0_15, %c0_16] : memref<16x256xf32, #tpu.memory_space<vmem>>, vector<16x256xf32>
      tpu.vector_store %arg7[%c0_15, %c0_16], %18 {strides = array<i32>} : memref<16x256xf32, #tpu.memory_space<vmem>>, vector<16x256xf32>,
    } else {
    }
    return
  }
  func.func @transform_0(%arg0: i32, %arg1: i32, %arg2: i32) -> (i32, i32) {
    %c0_i32 = arith.constant 0 : i32
    return %arg0, %arg2 : i32, i32
  }
  func.func @transform_1(%arg0: i32, %arg1: i32, %arg2: i32) -> (i32, i32) {
    %c0_i32 = arith.constant 0 : i32
    return %arg2, %arg1 : i32, i32
  }
  func.func @transform_2(%arg0: i32, %arg1: i32, %arg2: i32) -> (i32, i32) {
    %c0_i32 = arith.constant 0 : i32
    %c0_i32_0 = arith.constant 0 : i32
    return %c0_i32, %arg1 : i32, i32
  }
  func.func @transform_3(%arg0: i32, %arg1: i32, %arg2: i32) -> (i32, i32) {
    %c0_i32 = arith.constant 0 : i32
    %c0_i32_0 = arith.constant 0 : i32
    return %c0_i32, %arg1 : i32, i32
  }
  func.func @transform_4(%arg0: i32, %arg1: i32, %arg2: i32) -> (i32, i32) {
    %c0_i32 = arith.constant 0 : i32
    return %arg0, %arg1 : i32, i32
  }
}

module attributes {stable_mosaic.version = 11 : i64} {
  func.func @_matmul_bn_act_kernel(%arg0: i32, %arg1: i32, %arg2: i32, %arg3: memref<16x128xbf16, #tpu.memory_space<vmem>>, %arg4: memref<128x256xbf16, #tpu.memory_space<vmem>>, %arg5: memref<1x256xf32, #tpu.memory_space<vmem>>, %arg6: memref<1x256xf32, #tpu.memory_space<vmem>>, %arg7: memref<16x256xf32, #tpu.memory_space<vmem>>, %arg8: memref<16x256xf32, #tpu.memory_space<vmem>>) attributes {dimension_semantics = [#tpu.dimension_semantics<parallel>, #tpu.dimension_semantics<parallel>, #tpu.dimension_semantics<arbitrary>], iteration_bounds = array<i64: 1, 1, 18>, scalar_prefetch = 0 : i64, scratch_operands = 1 : i64, tpu.core_type = #tpu.core_type<tc>, window_params = [{transform_indices = @transform_0, window_bounds = array<i64: 16, 128>}, {transform_indices = @transform_1, window_bounds = array<i64: 128, 256>}, {transform_indices = @transform_2, window_bounds = array<i64: 1, 256>}, {transform_indices = @transform_3, window_bounds = array<i64: 1, 256>}, {transform_indices = @transform_4, window_bounds = array<i64: 16, 256>}]} {
    %c0_i32 = arith.constant 0 : i32
    %0 = arith.cmpi eq, %arg2, %c0_i32 : i32
    %1 = arith.extui %0 : i1 to i32
    %c0_i32_0 = arith.constant 0 : i32
    %2 = arith.cmpi ne, %1, %c0_i32_0 : i32
    scf.if %2 {
      %cst_9 = arith.constant 0.000000e+00 : f32
      %12 = vector.broadcast %cst_9 : f32 to vector<16x256xf32>
      %c0_10 = arith.constant 0 : index
      %c0_11 = arith.constant 0 : index
      %13 = vector.load %arg8[%c0_10, %c0_11] : memref<16x256xf32, #tpu.memory_space<vmem>>, vector<16x256xf32>
      tpu.vector_store %arg8[%c0_10, %c0_11], %12 {strides = array<i32>} : memref<16x256xf32, #tpu.memory_space<vmem>>, vector<16x256xf32>,
    } else {
    }
    %c0 = arith.constant 0 : index
    %c0_1 = arith.constant 0 : index
    %3 = vector.load %arg8[%c0, %c0_1] : memref<16x256xf32, #tpu.memory_space<vmem>>, vector<16x256xf32>
    %c0_2 = arith.constant 0 : index
    %c0_3 = arith.constant 0 : index
    %4 = vector.load %arg3[%c0_2, %c0_3] : memref<16x128xbf16, #tpu.memory_space<vmem>>, vector<16x128xbf16>
    %c0_4 = arith.constant 0 : index
    %c0_5 = arith.constant 0 : index
    %5 = vector.load %arg4[%c0_4, %c0_5] : memref<128x256xbf16, #tpu.memory_space<vmem>>, vector<128x256xbf16>
    %cst = arith.constant dense<0.000000e+00> : vector<16x256xf32>
    %6 = tpu.matmul %4, %5, %cst {dimension_numbers = #tpu.dot_dimension_numbers<[1], [0], [0], [1], [0, 0, 1, 1], [], []>} : vector<16x128xbf16>, vector<128x256xbf16>, vector<16x256xf32> -> vector<16x256xf32>
    %7 = arith.addf %3, %6 : vector<16x256xf32>
    %c0_6 = arith.constant 0 : index
    %c0_7 = arith.constant 0 : index
    %8 = vector.load %arg8[%c0_6, %c0_7] : memref<16x256xf32, #tpu.memory_space<vmem>>, vector<16x256xf32>
    tpu.vector_store %arg8[%c0_6, %c0_7], %7 {strides = array<i32>} : memref<16x256xf32, #tpu.memory_space<vmem>>, vector<16x256xf32>,
    %c17_i32 = arith.constant 17 : i32
    %9 = arith.cmpi eq, %arg2, %c17_i32 : i32
    %10 = arith.extui %9 : i1 to i32
    %c0_i32_8 = arith.constant 0 : i32
    %11 = arith.cmpi ne, %10, %c0_i32_8 : i32
    scf.if %11 {
      %c0_9 = arith.constant 0 : index
      %c0_10 = arith.constant 0 : index
      %12 = vector.load %arg8[%c0_9, %c0_10] : memref<16x256xf32, #tpu.memory_space<vmem>>, vector<16x256xf32>
      %c0_11 = arith.constant 0 : index
      %c0_12 = arith.constant 0 : index
      %13 = vector.load %arg5[%c0_11, %c0_12] : memref<1x256xf32, #tpu.memory_space<vmem>>, vector<1x256xf32>
      %14 = vector.broadcast %13 : vector<1x256xf32> to vector<16x256xf32>
      %15 = arith.mulf %12, %14 : vector<16x256xf32>
      %c0_13 = arith.constant 0 : index
      %c0_14 = arith.constant 0 : index
      %16 = vector.load %arg6[%c0_13, %c0_14] : memref<1x256xf32, #tpu.memory_space<vmem>>, vector<1x256xf32>
      %17 = vector.broadcast %16 : vector<1x256xf32> to vector<16x256xf32>
      %18 = arith.addf %15, %17 : vector<16x256xf32>
      %cst_15 = arith.constant 0.000000e+00 : f32
      %19 = vector.broadcast %cst_15 : f32 to vector<16x256xf32>
      %20 = arith.maximumf %18, %19 : vector<16x256xf32>
      %c0_16 = arith.constant 0 : index
      %c0_17 = arith.constant 0 : index
      %21 = vector.load %arg7[%c0_16, %c0_17] : memref<16x256xf32, #tpu.memory_space<vmem>>, vector<16x256xf32>
      tpu.vector_store %arg7[%c0_16, %c0_17], %20 {strides = array<i32>} : memref<16x256xf32, #tpu.memory_space<vmem>>, vector<16x256xf32>,
    } else {
    }
    return
  }
  func.func @transform_0(%arg0: i32, %arg1: i32, %arg2: i32) -> (i32, i32) {
    %c0_i32 = arith.constant 0 : i32
    return %arg0, %arg2 : i32, i32
  }
  func.func @transform_1(%arg0: i32, %arg1: i32, %arg2: i32) -> (i32, i32) {
    %c0_i32 = arith.constant 0 : i32
    return %arg2, %arg1 : i32, i32
  }
  func.func @transform_2(%arg0: i32, %arg1: i32, %arg2: i32) -> (i32, i32) {
    %c0_i32 = arith.constant 0 : i32
    %c0_i32_0 = arith.constant 0 : i32
    return %c0_i32, %arg1 : i32, i32
  }
  func.func @transform_3(%arg0: i32, %arg1: i32, %arg2: i32) -> (i32, i32) {
    %c0_i32 = arith.constant 0 : i32
    %c0_i32_0 = arith.constant 0 : i32
    return %c0_i32, %arg1 : i32, i32
  }
  func.func @transform_4(%arg0: i32, %arg1: i32, %arg2: i32) -> (i32, i32) {
    %c0_i32 = arith.constant 0 : i32
    return %arg0, %arg1 : i32, i32
  }
}

module attributes {stable_mosaic.version = 11 : i64} {
  func.func @_matmul_bn_act_kernel(%arg0: i32, %arg1: i32, %arg2: i32, %arg3: memref<16x128xbf16, #tpu.memory_space<vmem>>, %arg4: memref<128x256xbf16, #tpu.memory_space<vmem>>, %arg5: memref<1x256xf32, #tpu.memory_space<vmem>>, %arg6: memref<1x256xf32, #tpu.memory_space<vmem>>, %arg7: memref<16x256xf32, #tpu.memory_space<vmem>>, %arg8: memref<16x256xf32, #tpu.memory_space<vmem>>) attributes {dimension_semantics = [#tpu.dimension_semantics<parallel>, #tpu.dimension_semantics<parallel>, #tpu.dimension_semantics<arbitrary>], iteration_bounds = array<i64: 1, 1, 1>, scalar_prefetch = 0 : i64, scratch_operands = 1 : i64, tpu.core_type = #tpu.core_type<tc>, window_params = [{transform_indices = @transform_0, window_bounds = array<i64: 16, 128>}, {transform_indices = @transform_1, window_bounds = array<i64: 128, 256>}, {transform_indices = @transform_2, window_bounds = array<i64: 1, 256>}, {transform_indices = @transform_3, window_bounds = array<i64: 1, 256>}, {transform_indices = @transform_4, window_bounds = array<i64: 16, 256>}]} {
    %c0_i32 = arith.constant 0 : i32
    %0 = arith.cmpi eq, %arg2, %c0_i32 : i32
    %1 = arith.extui %0 : i1 to i32
    %c0_i32_0 = arith.constant 0 : i32
    %2 = arith.cmpi ne, %1, %c0_i32_0 : i32
    scf.if %2 {
      %cst_10 = arith.constant 0.000000e+00 : f32
      %12 = vector.broadcast %cst_10 : f32 to vector<16x256xf32>
      %c0_11 = arith.constant 0 : index
      %c0_12 = arith.constant 0 : index
      %13 = vector.load %arg8[%c0_11, %c0_12] : memref<16x256xf32, #tpu.memory_space<vmem>>, vector<16x256xf32>
      tpu.vector_store %arg8[%c0_11, %c0_12], %12 {strides = array<i32>} : memref<16x256xf32, #tpu.memory_space<vmem>>, vector<16x256xf32>,
    } else {
    }
    %c0 = arith.constant 0 : index
    %c0_1 = arith.constant 0 : index
    %3 = vector.load %arg8[%c0, %c0_1] : memref<16x256xf32, #tpu.memory_space<vmem>>, vector<16x256xf32>
    %c0_2 = arith.constant 0 : index
    %c0_3 = arith.constant 0 : index
    %4 = vector.load %arg3[%c0_2, %c0_3] : memref<16x128xbf16, #tpu.memory_space<vmem>>, vector<16x128xbf16>
    %c0_4 = arith.constant 0 : index
    %c0_5 = arith.constant 0 : index
    %5 = vector.load %arg4[%c0_4, %c0_5] : memref<128x256xbf16, #tpu.memory_space<vmem>>, vector<128x256xbf16>
    %cst = arith.constant dense<0.000000e+00> : vector<16x256xf32>
    %6 = tpu.matmul %4, %5, %cst {dimension_numbers = #tpu.dot_dimension_numbers<[1], [0], [0], [1], [0, 0, 1, 1], [], []>} : vector<16x128xbf16>, vector<128x256xbf16>, vector<16x256xf32> -> vector<16x256xf32>
    %7 = arith.addf %3, %6 : vector<16x256xf32>
    %c0_6 = arith.constant 0 : index
    %c0_7 = arith.constant 0 : index
    %8 = vector.load %arg8[%c0_6, %c0_7] : memref<16x256xf32, #tpu.memory_space<vmem>>, vector<16x256xf32>
    tpu.vector_store %arg8[%c0_6, %c0_7], %7 {strides = array<i32>} : memref<16x256xf32, #tpu.memory_space<vmem>>, vector<16x256xf32>,
    %c0_i32_8 = arith.constant 0 : i32
    %9 = arith.cmpi eq, %arg2, %c0_i32_8 : i32
    %10 = arith.extui %9 : i1 to i32
    %c0_i32_9 = arith.constant 0 : i32
    %11 = arith.cmpi ne, %10, %c0_i32_9 : i32
    scf.if %11 {
      %c0_10 = arith.constant 0 : index
      %c0_11 = arith.constant 0 : index
      %12 = vector.load %arg8[%c0_10, %c0_11] : memref<16x256xf32, #tpu.memory_space<vmem>>, vector<16x256xf32>
      %c0_12 = arith.constant 0 : index
      %c0_13 = arith.constant 0 : index
      %13 = vector.load %arg5[%c0_12, %c0_13] : memref<1x256xf32, #tpu.memory_space<vmem>>, vector<1x256xf32>
      %14 = vector.broadcast %13 : vector<1x256xf32> to vector<16x256xf32>
      %15 = arith.mulf %12, %14 : vector<16x256xf32>
      %c0_14 = arith.constant 0 : index
      %c0_15 = arith.constant 0 : index
      %16 = vector.load %arg6[%c0_14, %c0_15] : memref<1x256xf32, #tpu.memory_space<vmem>>, vector<1x256xf32>
      %17 = vector.broadcast %16 : vector<1x256xf32> to vector<16x256xf32>
      %18 = arith.addf %15, %17 : vector<16x256xf32>
      %c0_16 = arith.constant 0 : index
      %c0_17 = arith.constant 0 : index
      %19 = vector.load %arg7[%c0_16, %c0_17] : memref<16x256xf32, #tpu.memory_space<vmem>>, vector<16x256xf32>
      tpu.vector_store %arg7[%c0_16, %c0_17], %18 {strides = array<i32>} : memref<16x256xf32, #tpu.memory_space<vmem>>, vector<16x256xf32>,
    } else {
    }
    return
  }
  func.func @transform_0(%arg0: i32, %arg1: i32, %arg2: i32) -> (i32, i32) {
    %c0_i32 = arith.constant 0 : i32
    return %arg0, %arg2 : i32, i32
  }
  func.func @transform_1(%arg0: i32, %arg1: i32, %arg2: i32) -> (i32, i32) {
    %c0_i32 = arith.constant 0 : i32
    return %arg2, %arg1 : i32, i32
  }
  func.func @transform_2(%arg0: i32, %arg1: i32, %arg2: i32) -> (i32, i32) {
    %c0_i32 = arith.constant 0 : i32
    %c0_i32_0 = arith.constant 0 : i32
    return %c0_i32, %arg1 : i32, i32
  }
  func.func @transform_3(%arg0: i32, %arg1: i32, %arg2: i32) -> (i32, i32) {
    %c0_i32 = arith.constant 0 : i32
    %c0_i32_0 = arith.constant 0 : i32
    return %c0_i32, %arg1 : i32, i32
  }
  func.func @transform_4(%arg0: i32, %arg1: i32, %arg2: i32) -> (i32, i32) {
    %c0_i32 = arith.constant 0 : i32
    return %arg0, %arg1 : i32, i32
  }
}

module attributes {stable_mosaic.version = 11 : i64} {
  func.func @_matmul_bn_act_kernel(%arg0: i32, %arg1: i32, %arg2: i32, %arg3: memref<16x128xbf16, #tpu.memory_space<vmem>>, %arg4: memref<128x512xbf16, #tpu.memory_space<vmem>>, %arg5: memref<1x512xf32, #tpu.memory_space<vmem>>, %arg6: memref<1x512xf32, #tpu.memory_space<vmem>>, %arg7: memref<16x512xf32, #tpu.memory_space<vmem>>, %arg8: memref<16x512xf32, #tpu.memory_space<vmem>>) attributes {dimension_semantics = [#tpu.dimension_semantics<parallel>, #tpu.dimension_semantics<parallel>, #tpu.dimension_semantics<arbitrary>], iteration_bounds = array<i64: 1, 1, 18>, scalar_prefetch = 0 : i64, scratch_operands = 1 : i64, tpu.core_type = #tpu.core_type<tc>, window_params = [{transform_indices = @transform_0, window_bounds = array<i64: 16, 128>}, {transform_indices = @transform_1, window_bounds = array<i64: 128, 512>}, {transform_indices = @transform_2, window_bounds = array<i64: 1, 512>}, {transform_indices = @transform_3, window_bounds = array<i64: 1, 512>}, {transform_indices = @transform_4, window_bounds = array<i64: 16, 512>}]} {
    %c0_i32 = arith.constant 0 : i32
    %0 = arith.cmpi eq, %arg2, %c0_i32 : i32
    %1 = arith.extui %0 : i1 to i32
    %c0_i32_0 = arith.constant 0 : i32
    %2 = arith.cmpi ne, %1, %c0_i32_0 : i32
    scf.if %2 {
      %cst_9 = arith.constant 0.000000e+00 : f32
      %12 = vector.broadcast %cst_9 : f32 to vector<16x512xf32>
      %c0_10 = arith.constant 0 : index
      %c0_11 = arith.constant 0 : index
      %13 = vector.load %arg8[%c0_10, %c0_11] : memref<16x512xf32, #tpu.memory_space<vmem>>, vector<16x512xf32>
      tpu.vector_store %arg8[%c0_10, %c0_11], %12 {strides = array<i32>} : memref<16x512xf32, #tpu.memory_space<vmem>>, vector<16x512xf32>,
    } else {
    }
    %c0 = arith.constant 0 : index
    %c0_1 = arith.constant 0 : index
    %3 = vector.load %arg8[%c0, %c0_1] : memref<16x512xf32, #tpu.memory_space<vmem>>, vector<16x512xf32>
    %c0_2 = arith.constant 0 : index
    %c0_3 = arith.constant 0 : index
    %4 = vector.load %arg3[%c0_2, %c0_3] : memref<16x128xbf16, #tpu.memory_space<vmem>>, vector<16x128xbf16>
    %c0_4 = arith.constant 0 : index
    %c0_5 = arith.constant 0 : index
    %5 = vector.load %arg4[%c0_4, %c0_5] : memref<128x512xbf16, #tpu.memory_space<vmem>>, vector<128x512xbf16>
    %cst = arith.constant dense<0.000000e+00> : vector<16x512xf32>
    %6 = tpu.matmul %4, %5, %cst {dimension_numbers = #tpu.dot_dimension_numbers<[1], [0], [0], [1], [0, 0, 1, 1], [], []>} : vector<16x128xbf16>, vector<128x512xbf16>, vector<16x512xf32> -> vector<16x512xf32>
    %7 = arith.addf %3, %6 : vector<16x512xf32>
    %c0_6 = arith.constant 0 : index
    %c0_7 = arith.constant 0 : index
    %8 = vector.load %arg8[%c0_6, %c0_7] : memref<16x512xf32, #tpu.memory_space<vmem>>, vector<16x512xf32>
    tpu.vector_store %arg8[%c0_6, %c0_7], %7 {strides = array<i32>} : memref<16x512xf32, #tpu.memory_space<vmem>>, vector<16x512xf32>,
    %c17_i32 = arith.constant 17 : i32
    %9 = arith.cmpi eq, %arg2, %c17_i32 : i32
    %10 = arith.extui %9 : i1 to i32
    %c0_i32_8 = arith.constant 0 : i32
    %11 = arith.cmpi ne, %10, %c0_i32_8 : i32
    scf.if %11 {
      %c0_9 = arith.constant 0 : index
      %c0_10 = arith.constant 0 : index
      %12 = vector.load %arg8[%c0_9, %c0_10] : memref<16x512xf32, #tpu.memory_space<vmem>>, vector<16x512xf32>
      %c0_11 = arith.constant 0 : index
      %c0_12 = arith.constant 0 : index
      %13 = vector.load %arg5[%c0_11, %c0_12] : memref<1x512xf32, #tpu.memory_space<vmem>>, vector<1x512xf32>
      %14 = vector.broadcast %13 : vector<1x512xf32> to vector<16x512xf32>
      %15 = arith.mulf %12, %14 : vector<16x512xf32>
      %c0_13 = arith.constant 0 : index
      %c0_14 = arith.constant 0 : index
      %16 = vector.load %arg6[%c0_13, %c0_14] : memref<1x512xf32, #tpu.memory_space<vmem>>, vector<1x512xf32>
      %17 = vector.broadcast %16 : vector<1x512xf32> to vector<16x512xf32>
      %18 = arith.addf %15, %17 : vector<16x512xf32>
      %cst_15 = arith.constant 0.000000e+00 : f32
      %19 = vector.broadcast %cst_15 : f32 to vector<16x512xf32>
      %20 = arith.maximumf %18, %19 : vector<16x512xf32>
      %c0_16 = arith.constant 0 : index
      %c0_17 = arith.constant 0 : index
      %21 = vector.load %arg7[%c0_16, %c0_17] : memref<16x512xf32, #tpu.memory_space<vmem>>, vector<16x512xf32>
      tpu.vector_store %arg7[%c0_16, %c0_17], %20 {strides = array<i32>} : memref<16x512xf32, #tpu.memory_space<vmem>>, vector<16x512xf32>,
    } else {
    }
    return
  }
  func.func @transform_0(%arg0: i32, %arg1: i32, %arg2: i32) -> (i32, i32) {
    %c0_i32 = arith.constant 0 : i32
    return %arg0, %arg2 : i32, i32
  }
  func.func @transform_1(%arg0: i32, %arg1: i32, %arg2: i32) -> (i32, i32) {
    %c0_i32 = arith.constant 0 : i32
    return %arg2, %arg1 : i32, i32
  }
  func.func @transform_2(%arg0: i32, %arg1: i32, %arg2: i32) -> (i32, i32) {
    %c0_i32 = arith.constant 0 : i32
    %c0_i32_0 = arith.constant 0 : i32
    return %c0_i32, %arg1 : i32, i32
  }
  func.func @transform_3(%arg0: i32, %arg1: i32, %arg2: i32) -> (i32, i32) {
    %c0_i32 = arith.constant 0 : i32
    %c0_i32_0 = arith.constant 0 : i32
    return %c0_i32, %arg1 : i32, i32
  }
  func.func @transform_4(%arg0: i32, %arg1: i32, %arg2: i32) -> (i32, i32) {
    %c0_i32 = arith.constant 0 : i32
    return %arg0, %arg1 : i32, i32
  }
}

module attributes {stable_mosaic.version = 11 : i64} {
  func.func @_matmul_bn_act_kernel(%arg0: i32, %arg1: i32, %arg2: i32, %arg3: memref<16x128xbf16, #tpu.memory_space<vmem>>, %arg4: memref<128x512xbf16, #tpu.memory_space<vmem>>, %arg5: memref<1x512xf32, #tpu.memory_space<vmem>>, %arg6: memref<1x512xf32, #tpu.memory_space<vmem>>, %arg7: memref<16x512xf32, #tpu.memory_space<vmem>>, %arg8: memref<16x512xf32, #tpu.memory_space<vmem>>) attributes {dimension_semantics = [#tpu.dimension_semantics<parallel>, #tpu.dimension_semantics<parallel>, #tpu.dimension_semantics<arbitrary>], iteration_bounds = array<i64: 1, 1, 36>, scalar_prefetch = 0 : i64, scratch_operands = 1 : i64, tpu.core_type = #tpu.core_type<tc>, window_params = [{transform_indices = @transform_0, window_bounds = array<i64: 16, 128>}, {transform_indices = @transform_1, window_bounds = array<i64: 128, 512>}, {transform_indices = @transform_2, window_bounds = array<i64: 1, 512>}, {transform_indices = @transform_3, window_bounds = array<i64: 1, 512>}, {transform_indices = @transform_4, window_bounds = array<i64: 16, 512>}]} {
    %c0_i32 = arith.constant 0 : i32
    %0 = arith.cmpi eq, %arg2, %c0_i32 : i32
    %1 = arith.extui %0 : i1 to i32
    %c0_i32_0 = arith.constant 0 : i32
    %2 = arith.cmpi ne, %1, %c0_i32_0 : i32
    scf.if %2 {
      %cst_9 = arith.constant 0.000000e+00 : f32
      %12 = vector.broadcast %cst_9 : f32 to vector<16x512xf32>
      %c0_10 = arith.constant 0 : index
      %c0_11 = arith.constant 0 : index
      %13 = vector.load %arg8[%c0_10, %c0_11] : memref<16x512xf32, #tpu.memory_space<vmem>>, vector<16x512xf32>
      tpu.vector_store %arg8[%c0_10, %c0_11], %12 {strides = array<i32>} : memref<16x512xf32, #tpu.memory_space<vmem>>, vector<16x512xf32>,
    } else {
    }
    %c0 = arith.constant 0 : index
    %c0_1 = arith.constant 0 : index
    %3 = vector.load %arg8[%c0, %c0_1] : memref<16x512xf32, #tpu.memory_space<vmem>>, vector<16x512xf32>
    %c0_2 = arith.constant 0 : index
    %c0_3 = arith.constant 0 : index
    %4 = vector.load %arg3[%c0_2, %c0_3] : memref<16x128xbf16, #tpu.memory_space<vmem>>, vector<16x128xbf16>
    %c0_4 = arith.constant 0 : index
    %c0_5 = arith.constant 0 : index
    %5 = vector.load %arg4[%c0_4, %c0_5] : memref<128x512xbf16, #tpu.memory_space<vmem>>, vector<128x512xbf16>
    %cst = arith.constant dense<0.000000e+00> : vector<16x512xf32>
    %6 = tpu.matmul %4, %5, %cst {dimension_numbers = #tpu.dot_dimension_numbers<[1], [0], [0], [1], [0, 0, 1, 1], [], []>} : vector<16x128xbf16>, vector<128x512xbf16>, vector<16x512xf32> -> vector<16x512xf32>
    %7 = arith.addf %3, %6 : vector<16x512xf32>
    %c0_6 = arith.constant 0 : index
    %c0_7 = arith.constant 0 : index
    %8 = vector.load %arg8[%c0_6, %c0_7] : memref<16x512xf32, #tpu.memory_space<vmem>>, vector<16x512xf32>
    tpu.vector_store %arg8[%c0_6, %c0_7], %7 {strides = array<i32>} : memref<16x512xf32, #tpu.memory_space<vmem>>, vector<16x512xf32>,
    %c35_i32 = arith.constant 35 : i32
    %9 = arith.cmpi eq, %arg2, %c35_i32 : i32
    %10 = arith.extui %9 : i1 to i32
    %c0_i32_8 = arith.constant 0 : i32
    %11 = arith.cmpi ne, %10, %c0_i32_8 : i32
    scf.if %11 {
      %c0_9 = arith.constant 0 : index
      %c0_10 = arith.constant 0 : index
      %12 = vector.load %arg8[%c0_9, %c0_10] : memref<16x512xf32, #tpu.memory_space<vmem>>, vector<16x512xf32>
      %c0_11 = arith.constant 0 : index
      %c0_12 = arith.constant 0 : index
      %13 = vector.load %arg5[%c0_11, %c0_12] : memref<1x512xf32, #tpu.memory_space<vmem>>, vector<1x512xf32>
      %14 = vector.broadcast %13 : vector<1x512xf32> to vector<16x512xf32>
      %15 = arith.mulf %12, %14 : vector<16x512xf32>
      %c0_13 = arith.constant 0 : index
      %c0_14 = arith.constant 0 : index
      %16 = vector.load %arg6[%c0_13, %c0_14] : memref<1x512xf32, #tpu.memory_space<vmem>>, vector<1x512xf32>
      %17 = vector.broadcast %16 : vector<1x512xf32> to vector<16x512xf32>
      %18 = arith.addf %15, %17 : vector<16x512xf32>
      %c0_15 = arith.constant 0 : index
      %c0_16 = arith.constant 0 : index
      %19 = vector.load %arg7[%c0_15, %c0_16] : memref<16x512xf32, #tpu.memory_space<vmem>>, vector<16x512xf32>
      tpu.vector_store %arg7[%c0_15, %c0_16], %18 {strides = array<i32>} : memref<16x512xf32, #tpu.memory_space<vmem>>, vector<16x512xf32>,
    } else {
    }
    return
  }
  func.func @transform_0(%arg0: i32, %arg1: i32, %arg2: i32) -> (i32, i32) {
    %c0_i32 = arith.constant 0 : i32
    return %arg0, %arg2 : i32, i32
  }
  func.func @transform_1(%arg0: i32, %arg1: i32, %arg2: i32) -> (i32, i32) {
    %c0_i32 = arith.constant 0 : i32
    return %arg2, %arg1 : i32, i32
  }
  func.func @transform_2(%arg0: i32, %arg1: i32, %arg2: i32) -> (i32, i32) {
    %c0_i32 = arith.constant 0 : i32
    %c0_i32_0 = arith.constant 0 : i32
    return %c0_i32, %arg1 : i32, i32
  }
  func.func @transform_3(%arg0: i32, %arg1: i32, %arg2: i32) -> (i32, i32) {
    %c0_i32 = arith.constant 0 : i32
    %c0_i32_0 = arith.constant 0 : i32
    return %c0_i32, %arg1 : i32, i32
  }
  func.func @transform_4(%arg0: i32, %arg1: i32, %arg2: i32) -> (i32, i32) {
    %c0_i32 = arith.constant 0 : i32
    return %arg0, %arg1 : i32, i32
  }
}

module attributes {stable_mosaic.version = 11 : i64} {
  func.func @_matmul_bn_act_kernel(%arg0: i32, %arg1: i32, %arg2: i32, %arg3: memref<16x128xbf16, #tpu.memory_space<vmem>>, %arg4: memref<128x512xbf16, #tpu.memory_space<vmem>>, %arg5: memref<1x512xf32, #tpu.memory_space<vmem>>, %arg6: memref<1x512xf32, #tpu.memory_space<vmem>>, %arg7: memref<16x512xf32, #tpu.memory_space<vmem>>, %arg8: memref<16x512xf32, #tpu.memory_space<vmem>>) attributes {dimension_semantics = [#tpu.dimension_semantics<parallel>, #tpu.dimension_semantics<parallel>, #tpu.dimension_semantics<arbitrary>], iteration_bounds = array<i64: 1, 1, 2>, scalar_prefetch = 0 : i64, scratch_operands = 1 : i64, tpu.core_type = #tpu.core_type<tc>, window_params = [{transform_indices = @transform_0, window_bounds = array<i64: 16, 128>}, {transform_indices = @transform_1, window_bounds = array<i64: 128, 512>}, {transform_indices = @transform_2, window_bounds = array<i64: 1, 512>}, {transform_indices = @transform_3, window_bounds = array<i64: 1, 512>}, {transform_indices = @transform_4, window_bounds = array<i64: 16, 512>}]} {
    %c0_i32 = arith.constant 0 : i32
    %0 = arith.cmpi eq, %arg2, %c0_i32 : i32
    %1 = arith.extui %0 : i1 to i32
    %c0_i32_0 = arith.constant 0 : i32
    %2 = arith.cmpi ne, %1, %c0_i32_0 : i32
    scf.if %2 {
      %cst_9 = arith.constant 0.000000e+00 : f32
      %12 = vector.broadcast %cst_9 : f32 to vector<16x512xf32>
      %c0_10 = arith.constant 0 : index
      %c0_11 = arith.constant 0 : index
      %13 = vector.load %arg8[%c0_10, %c0_11] : memref<16x512xf32, #tpu.memory_space<vmem>>, vector<16x512xf32>
      tpu.vector_store %arg8[%c0_10, %c0_11], %12 {strides = array<i32>} : memref<16x512xf32, #tpu.memory_space<vmem>>, vector<16x512xf32>,
    } else {
    }
    %c0 = arith.constant 0 : index
    %c0_1 = arith.constant 0 : index
    %3 = vector.load %arg8[%c0, %c0_1] : memref<16x512xf32, #tpu.memory_space<vmem>>, vector<16x512xf32>
    %c0_2 = arith.constant 0 : index
    %c0_3 = arith.constant 0 : index
    %4 = vector.load %arg3[%c0_2, %c0_3] : memref<16x128xbf16, #tpu.memory_space<vmem>>, vector<16x128xbf16>
    %c0_4 = arith.constant 0 : index
    %c0_5 = arith.constant 0 : index
    %5 = vector.load %arg4[%c0_4, %c0_5] : memref<128x512xbf16, #tpu.memory_space<vmem>>, vector<128x512xbf16>
    %cst = arith.constant dense<0.000000e+00> : vector<16x512xf32>
    %6 = tpu.matmul %4, %5, %cst {dimension_numbers = #tpu.dot_dimension_numbers<[1], [0], [0], [1], [0, 0, 1, 1], [], []>} : vector<16x128xbf16>, vector<128x512xbf16>, vector<16x512xf32> -> vector<16x512xf32>
    %7 = arith.addf %3, %6 : vector<16x512xf32>
    %c0_6 = arith.constant 0 : index
    %c0_7 = arith.constant 0 : index
    %8 = vector.load %arg8[%c0_6, %c0_7] : memref<16x512xf32, #tpu.memory_space<vmem>>, vector<16x512xf32>
    tpu.vector_store %arg8[%c0_6, %c0_7], %7 {strides = array<i32>} : memref<16x512xf32, #tpu.memory_space<vmem>>, vector<16x512xf32>,
    %c1_i32 = arith.constant 1 : i32
    %9 = arith.cmpi eq, %arg2, %c1_i32 : i32
    %10 = arith.extui %9 : i1 to i32
    %c0_i32_8 = arith.constant 0 : i32
    %11 = arith.cmpi ne, %10, %c0_i32_8 : i32
    scf.if %11 {
      %c0_9 = arith.constant 0 : index
      %c0_10 = arith.constant 0 : index
      %12 = vector.load %arg8[%c0_9, %c0_10] : memref<16x512xf32, #tpu.memory_space<vmem>>, vector<16x512xf32>
      %c0_11 = arith.constant 0 : index
      %c0_12 = arith.constant 0 : index
      %13 = vector.load %arg5[%c0_11, %c0_12] : memref<1x512xf32, #tpu.memory_space<vmem>>, vector<1x512xf32>
      %14 = vector.broadcast %13 : vector<1x512xf32> to vector<16x512xf32>
      %15 = arith.mulf %12, %14 : vector<16x512xf32>
      %c0_13 = arith.constant 0 : index
      %c0_14 = arith.constant 0 : index
      %16 = vector.load %arg6[%c0_13, %c0_14] : memref<1x512xf32, #tpu.memory_space<vmem>>, vector<1x512xf32>
      %17 = vector.broadcast %16 : vector<1x512xf32> to vector<16x512xf32>
      %18 = arith.addf %15, %17 : vector<16x512xf32>
      %c0_15 = arith.constant 0 : index
      %c0_16 = arith.constant 0 : index
      %19 = vector.load %arg7[%c0_15, %c0_16] : memref<16x512xf32, #tpu.memory_space<vmem>>, vector<16x512xf32>
      tpu.vector_store %arg7[%c0_15, %c0_16], %18 {strides = array<i32>} : memref<16x512xf32, #tpu.memory_space<vmem>>, vector<16x512xf32>,
    } else {
    }
    return
  }
  func.func @transform_0(%arg0: i32, %arg1: i32, %arg2: i32) -> (i32, i32) {
    %c0_i32 = arith.constant 0 : i32
    return %arg0, %arg2 : i32, i32
  }
  func.func @transform_1(%arg0: i32, %arg1: i32, %arg2: i32) -> (i32, i32) {
    %c0_i32 = arith.constant 0 : i32
    return %arg2, %arg1 : i32, i32
  }
  func.func @transform_2(%arg0: i32, %arg1: i32, %arg2: i32) -> (i32, i32) {
    %c0_i32 = arith.constant 0 : i32
    %c0_i32_0 = arith.constant 0 : i32
    return %c0_i32, %arg1 : i32, i32
  }
  func.func @transform_3(%arg0: i32, %arg1: i32, %arg2: i32) -> (i32, i32) {
    %c0_i32 = arith.constant 0 : i32
    %c0_i32_0 = arith.constant 0 : i32
    return %c0_i32, %arg1 : i32, i32
  }
  func.func @transform_4(%arg0: i32, %arg1: i32, %arg2: i32) -> (i32, i32) {
    %c0_i32 = arith.constant 0 : i32
    return %arg0, %arg1 : i32, i32
  }
}

module attributes {stable_mosaic.version = 11 : i64} {
  func.func @_matmul_bn_act_kernel(%arg0: i32, %arg1: i32, %arg2: i32, %arg3: memref<16x128xbf16, #tpu.memory_space<vmem>>, %arg4: memref<128x512xbf16, #tpu.memory_space<vmem>>, %arg5: memref<1x512xf32, #tpu.memory_space<vmem>>, %arg6: memref<1x512xf32, #tpu.memory_space<vmem>>, %arg7: memref<16x512xf32, #tpu.memory_space<vmem>>, %arg8: memref<16x512xf32, #tpu.memory_space<vmem>>) attributes {dimension_semantics = [#tpu.dimension_semantics<parallel>, #tpu.dimension_semantics<parallel>, #tpu.dimension_semantics<arbitrary>], iteration_bounds = array<i64: 1, 1, 36>, scalar_prefetch = 0 : i64, scratch_operands = 1 : i64, tpu.core_type = #tpu.core_type<tc>, window_params = [{transform_indices = @transform_0, window_bounds = array<i64: 16, 128>}, {transform_indices = @transform_1, window_bounds = array<i64: 128, 512>}, {transform_indices = @transform_2, window_bounds = array<i64: 1, 512>}, {transform_indices = @transform_3, window_bounds = array<i64: 1, 512>}, {transform_indices = @transform_4, window_bounds = array<i64: 16, 512>}]} {
    %c0_i32 = arith.constant 0 : i32
    %0 = arith.cmpi eq, %arg2, %c0_i32 : i32
    %1 = arith.extui %0 : i1 to i32
    %c0_i32_0 = arith.constant 0 : i32
    %2 = arith.cmpi ne, %1, %c0_i32_0 : i32
    scf.if %2 {
      %cst_9 = arith.constant 0.000000e+00 : f32
      %12 = vector.broadcast %cst_9 : f32 to vector<16x512xf32>
      %c0_10 = arith.constant 0 : index
      %c0_11 = arith.constant 0 : index
      %13 = vector.load %arg8[%c0_10, %c0_11] : memref<16x512xf32, #tpu.memory_space<vmem>>, vector<16x512xf32>
      tpu.vector_store %arg8[%c0_10, %c0_11], %12 {strides = array<i32>} : memref<16x512xf32, #tpu.memory_space<vmem>>, vector<16x512xf32>,
    } else {
    }
    %c0 = arith.constant 0 : index
    %c0_1 = arith.constant 0 : index
    %3 = vector.load %arg8[%c0, %c0_1] : memref<16x512xf32, #tpu.memory_space<vmem>>, vector<16x512xf32>
    %c0_2 = arith.constant 0 : index
    %c0_3 = arith.constant 0 : index
    %4 = vector.load %arg3[%c0_2, %c0_3] : memref<16x128xbf16, #tpu.memory_space<vmem>>, vector<16x128xbf16>
    %c0_4 = arith.constant 0 : index
    %c0_5 = arith.constant 0 : index
    %5 = vector.load %arg4[%c0_4, %c0_5] : memref<128x512xbf16, #tpu.memory_space<vmem>>, vector<128x512xbf16>
    %cst = arith.constant dense<0.000000e+00> : vector<16x512xf32>
    %6 = tpu.matmul %4, %5, %cst {dimension_numbers = #tpu.dot_dimension_numbers<[1], [0], [0], [1], [0, 0, 1, 1], [], []>} : vector<16x128xbf16>, vector<128x512xbf16>, vector<16x512xf32> -> vector<16x512xf32>
    %7 = arith.addf %3, %6 : vector<16x512xf32>
    %c0_6 = arith.constant 0 : index
    %c0_7 = arith.constant 0 : index
    %8 = vector.load %arg8[%c0_6, %c0_7] : memref<16x512xf32, #tpu.memory_space<vmem>>, vector<16x512xf32>
    tpu.vector_store %arg8[%c0_6, %c0_7], %7 {strides = array<i32>} : memref<16x512xf32, #tpu.memory_space<vmem>>, vector<16x512xf32>,
    %c35_i32 = arith.constant 35 : i32
    %9 = arith.cmpi eq, %arg2, %c35_i32 : i32
    %10 = arith.extui %9 : i1 to i32
    %c0_i32_8 = arith.constant 0 : i32
    %11 = arith.cmpi ne, %10, %c0_i32_8 : i32
    scf.if %11 {
      %c0_9 = arith.constant 0 : index
      %c0_10 = arith.constant 0 : index
      %12 = vector.load %arg8[%c0_9, %c0_10] : memref<16x512xf32, #tpu.memory_space<vmem>>, vector<16x512xf32>
      %c0_11 = arith.constant 0 : index
      %c0_12 = arith.constant 0 : index
      %13 = vector.load %arg5[%c0_11, %c0_12] : memref<1x512xf32, #tpu.memory_space<vmem>>, vector<1x512xf32>
      %14 = vector.broadcast %13 : vector<1x512xf32> to vector<16x512xf32>
      %15 = arith.mulf %12, %14 : vector<16x512xf32>
      %c0_13 = arith.constant 0 : index
      %c0_14 = arith.constant 0 : index
      %16 = vector.load %arg6[%c0_13, %c0_14] : memref<1x512xf32, #tpu.memory_space<vmem>>, vector<1x512xf32>
      %17 = vector.broadcast %16 : vector<1x512xf32> to vector<16x512xf32>
      %18 = arith.addf %15, %17 : vector<16x512xf32>
      %cst_15 = arith.constant 0.000000e+00 : f32
      %19 = vector.broadcast %cst_15 : f32 to vector<16x512xf32>
      %20 = arith.maximumf %18, %19 : vector<16x512xf32>
      %c0_16 = arith.constant 0 : index
      %c0_17 = arith.constant 0 : index
      %21 = vector.load %arg7[%c0_16, %c0_17] : memref<16x512xf32, #tpu.memory_space<vmem>>, vector<16x512xf32>
      tpu.vector_store %arg7[%c0_16, %c0_17], %20 {strides = array<i32>} : memref<16x512xf32, #tpu.memory_space<vmem>>, vector<16x512xf32>,
    } else {
    }
    return
  }
  func.func @transform_0(%arg0: i32, %arg1: i32, %arg2: i32) -> (i32, i32) {
    %c0_i32 = arith.constant 0 : i32
    return %arg0, %arg2 : i32, i32
  }
  func.func @transform_1(%arg0: i32, %arg1: i32, %arg2: i32) -> (i32, i32) {
    %c0_i32 = arith.constant 0 : i32
    return %arg2, %arg1 : i32, i32
  }
  func.func @transform_2(%arg0: i32, %arg1: i32, %arg2: i32) -> (i32, i32) {
    %c0_i32 = arith.constant 0 : i32
    %c0_i32_0 = arith.constant 0 : i32
    return %c0_i32, %arg1 : i32, i32
  }
  func.func @transform_3(%arg0: i32, %arg1: i32, %arg2: i32) -> (i32, i32) {
    %c0_i32 = arith.constant 0 : i32
    %c0_i32_0 = arith.constant 0 : i32
    return %c0_i32, %arg1 : i32, i32
  }
  func.func @transform_4(%arg0: i32, %arg1: i32, %arg2: i32) -> (i32, i32) {
    %c0_i32 = arith.constant 0 : i32
    return %arg0, %arg1 : i32, i32
  }
}

</mosaic_0001>

<bundles_post_ra>
// kernel: _lambda_.30
= control target key start
LH: loop header
LB: loop body
LE: loop exit
PB: predicated region body
PF: predicated region fallthrough
CT: control target
= control target key end

     0   :  { %s182_s0 = inlined_call_operand.vmem [shape: f32[16,128], index: 0, kind: input, shape index: {}]   ;;  %s183_s1 = inlined_call_operand.vmem [shape: f32[16,128], index: 1, kind: input, shape index: {}]   ;;  %s184_s2 = inlined_call_operand.vmem [shape: f32[16,128], index: 2, kind: input, shape index: {}]   ;;  %s185_s3 = inlined_call_operand.vmem [shape: f32[16,128], index: 3, kind: input, shape index: {}]   ;;  %s186_s4 = inlined_call_operand.vmem [shape: f32[16,128], index: 4, kind: input, shape index: {}]   ;;  %s187_s5 = inlined_call_operand.vmem [shape: f32[16,128], index: 5, kind: input, shape index: {}]   ;;  %s188_s6 = inlined_call_operand.vmem [shape: f32[16,128], index: 6, kind: input, shape index: {}]   ;;  %s189_s7 = inlined_call_operand.vmem [shape: f32[16,128], index: 7, kind: input, shape index: {}]   ;;  %s190_s8 = inlined_call_operand.vmem [shape: f32[16,128], index: 8, kind: input, shape index: {}]   ;;  %s191_s9 = inlined_call_operand.vmem [shape: f32[16,128], index: 9, kind: output, shape index: {}]  }
   0x1   :  { %v32_v0 = vld [vmem:[%s182_s0] sm:$0xff]  ;;  %v33_v6 = vld [vmem:[%s182_s0 + $0x8] sm:$0xff] }
   0x2   :  { %v34_v1 = vld [vmem:[%s183_s1] sm:$0xff]  ;;  %v35_v7 = vld [vmem:[%s183_s1 + $0x8] sm:$0xff] }
   0x3   :  { %v38_v2 = vld [vmem:[%s184_s2] sm:$0xff]  ;;  %v36_v3 = vmax.f32 %v32_v0, %v34_v1  ;;  %v39_v8 = vld [vmem:[%s184_s2 + $0x8] sm:$0xff]  ;;  %v37_v10 = vmax.f32 %v33_v6, %v35_v7 }
   0x4   :  { %v42_v4 = vld [vmem:[%s185_s3] sm:$0xff]  ;;  %v43_v12 = vld [vmem:[%s185_s3 + $0x8] sm:$0xff] }
   0x5   :  { %v40_v5 = vmax.f32 %v36_v3, %v38_v2  ;;  %v46_v9 = vld [vmem:[%s186_s4] sm:$0xff]  ;;  %v41_v14 = vmax.f32 %v37_v10, %v39_v8  ;;  %v47_v16 = vld [vmem:[%s186_s4 + $0x8] sm:$0xff] }
   0x6   :  { %v50_v13 = vld [vmem:[%s187_s5] sm:$0xff]  ;;  %v51_v20 = vld [vmem:[%s187_s5 + $0x8] sm:$0xff] }
   0x7   :  { %v44_v11 = vmax.f32 %v40_v5, %v42_v4  ;;  %v54_v17 = vld [vmem:[%s188_s6] sm:$0xff]  ;;  %v45_v18 = vmax.f32 %v41_v14, %v43_v12  ;;  %v55_v24 = vld [vmem:[%s188_s6 + $0x8] sm:$0xff] }
   0x8   :  { %v58_v21 = vld [vmem:[%s189_s7] sm:$0xff]  ;;  %v59_v28 = vld [vmem:[%s189_s7 + $0x8] sm:$0xff] }
   0x9   :  { %v48_v15 = vmax.f32 %v44_v11, %v46_v9  ;;  %v49_v22 = vmax.f32 %v45_v18, %v47_v16  ;;  %v62_v25 = vld [vmem:[%s190_s8] sm:$0xff]  ;;  %v63_v31 = vld [vmem:[%s190_s8 + $0x8] sm:$0xff] }
   0xb   :  { %v52_v19 = vmax.f32 %v48_v15, %v50_v13  ;;  %v53_v26 = vmax.f32 %v49_v22, %v51_v20 }
   0xd   :  { %v56_v23 = vmax.f32 %v52_v19, %v54_v17  ;;  %v57_v29 = vmax.f32 %v53_v26, %v55_v24 }
   0xf   :  { %v60_v27 = vmax.f32 %v56_v23, %v58_v21  ;;  %v61_v32 = vmax.f32 %v57_v29, %v59_v28 }
  0x11   :  { %v64_v30 = vmax.f32 %v60_v27, %v62_v25  ;;  %v65_v33 = vmax.f32 %v61_v32, %v63_v31 }
  0x13   :  { %66 = vst [vmem:[%s191_s9] sm:$0xff] %v64_v30  ;;  %67 = vst [vmem:[%s191_s9 + $0x8] sm:$0xff] %v65_v33 }

// kernel: _lambda_.29
= control target key start
LH: loop header
LB: loop body
LE: loop exit
PB: predicated region body
PF: predicated region fallthrough
CT: control target
= control target key end

     0   :  { %s1132_s15 = smov 0   ;;  %s1134_s16 = smov 0   ;;  %s1357_s0 = inlined_call_operand.vmem [shape: bf16[128,384], index: 0, kind: input, shape index: {}]   ;;  %s1358_s1 = inlined_call_operand.vmem [shape: bf16[384,64], index: 1, kind: input, shape index: {}]   ;;  %s1359_s2 = inlined_call_operand.vmem [shape: f32[1,64], index: 2, kind: input, shape index: {}]   ;;  %s1360_s3 = inlined_call_operand.vmem [shape: f32[1,64], index: 3, kind: input, shape index: {}]   ;;  %s1361_s4 = inlined_call_operand.vmem [shape: f32[128,64], index: 4, kind: output, shape index: {}]  }
   0x1   :  { %s1136_s17 = smov 0   ;;  %s1138_s18 = smov 0  }
   0x2   :  { %s1140_s19 = smov 0  }
   0x3 LB: > { %s26_s20 = sadd.s32 1, %s1100_s18  ;;  %p49_p1 = scmp.ne.s32.totalorder %s1092_s16, %s1088_s15  ;;  %s1104_s19 = sphi %s1140_s19, %s14_s19   ;;  %s1100_s18 = sphi %s1138_s18, %s1365_s18   ;;  %s1096_s17 = sphi %s1136_s17, %s1364_s17   ;;  %s1092_s16 = sphi %s1134_s16, %s1363_s16   ;;  %s1088_s15 = sphi %s1132_s15, %s1362_s15  }
   0x4   : > { %p27_p0 = scmp.ge.s32.totalorder %s26_s20, 3  ;;  %p50_p2 = scmp.eq.s32.totalorder %s1104_s19, 0 }
   0x5   : > { %s42_s22 = sadd.s32 1, %s1092_s16  ;;  %p914_p5 = scmp.ge.s32.totalorder %s1104_s19, 3 }
   0x6   : > { %s1367_s20 = smov (%p27_p0, %s26_s20), 0  ;;  %p51_p3 = por %p50_p2, %p49_p1 }
   0x7   : > { %s38_s21 = ssub.s32 %s1100_s18, %s1367_s20  ;;  %195 = sbr.rel (%p914_p5) target bundleno = 28 (0x1c), region = 24 }
   0x8   : > { %p40_p4 = scmp.eq.s32.totalorder %s38_s21, 0 }
   0xa   : > { %s1167_s23 = scalar_select %p40_p4, %s1092_s16, %s42_s22  }
   0xe   : > { %198 = sbr.rel (!%p51_p3) target bundleno = 28 (0x1c), region = 28  ;;  %s200_s24 = sand.u32 (%p51_p3), 1, %s1092_s16  }
   0xf   : > { %s916_s25 = sshll.u32 (%p51_p3), %s1100_s18, 2  ;;  %s915_s26 = sshll.u32 (%p51_p3), %s200_s24, 6 }
  0x10   : > { %s1175_s29 = scalar_lea.vmem (%p51_p3), %s1357_s0, %s916_s25  ;;  %s202_s30 = scalar_lea.vmem (%p51_p3), [#allocation3], %s915_s26 }
  0x11   : > { %v223_v0 = vld [vmem:[%s1175_s29] sm:$0xf] (%p51_p3)  ;;  %v225_v1 = vld [vmem:[%s1175_s29 + $0xc] sm:$0xf] (%p51_p3)  ;;  %v227_v2 = vld [vmem:[%s1175_s29 + $0x18] sm:$0xf] (%p51_p3) }
  0x12   : > { %224 = vst [vmem:[%s202_s30] sm:$0xf] (%p51_p3), %v223_v0  ;;  %226 = vst [vmem:[%s202_s30 + $0x4] sm:$0xf] (%p51_p3), %v225_v1  ;;  %v229_v3 = vld [vmem:[%s1175_s29 + $0x24] sm:$0xf] (%p51_p3) }
  0x13   : > { %v231_v4 = vld [vmem:[%s1175_s29 + $0x30] sm:$0xf] (%p51_p3)  ;;  %228 = vst [vmem:[%s202_s30 + $0x8] sm:$0xf] (%p51_p3), %v227_v2  ;;  %230 = vst [vmem:[%s202_s30 + $0xc] sm:$0xf] (%p51_p3), %v229_v3 }
  0x14   : > { %232 = vst [vmem:[%s202_s30 + $0x10] sm:$0xf] (%p51_p3), %v231_v4  ;;  %v233_v5 = vld [vmem:[%s1175_s29 + $0x3c] sm:$0xf] (%p51_p3)  ;;  %v235_v6 = vld [vmem:[%s1175_s29 + $0x48] sm:$0xf] (%p51_p3) }
  0x15   : > { %v237_v7 = vld [vmem:[%s1175_s29 + $0x54] sm:$0xf]  ;;  %234 = vst [vmem:[%s202_s30 + $0x14] sm:$0xf] %v233_v5  ;;  %236 = vst [vmem:[%s202_s30 + $0x18] sm:$0xf] %v235_v6 }
  0x16   : > { %238 = vst [vmem:[%s202_s30 + $0x1c] sm:$0xf] %v237_v7  ;;  %v239_v8 = vld [vmem:[%s1175_s29 + $0x60] sm:$0xf]  ;;  %v241_v9 = vld [vmem:[%s1175_s29 + $0x6c] sm:$0xf] }
  0x17   : > { %v243_v10 = vld [vmem:[%s1175_s29 + $0x78] sm:$0xf]  ;;  %240 = vst [vmem:[%s202_s30 + $0x20] sm:$0xf] %v239_v8  ;;  %242 = vst [vmem:[%s202_s30 + $0x24] sm:$0xf] %v241_v9 }
  0x18   : > { %244 = vst [vmem:[%s202_s30 + $0x28] sm:$0xf] %v243_v10  ;;  %v245_v11 = vld [vmem:[%s1175_s29 + $0x84] sm:$0xf]  ;;  %v247_v12 = vld [vmem:[%s1175_s29 + $0x90] sm:$0xf] }
  0x19   : > { %v249_v13 = vld [vmem:[%s1175_s29 + $0x9c] sm:$0xf]  ;;  %246 = vst [vmem:[%s202_s30 + $0x2c] sm:$0xf] %v245_v11  ;;  %248 = vst [vmem:[%s202_s30 + $0x30] sm:$0xf] %v247_v12 }
  0x1a   : > { %250 = vst [vmem:[%s202_s30 + $0x34] sm:$0xf] %v249_v13  ;;  %v251_v14 = vld [vmem:[%s1175_s29 + $0xa8] sm:$0xf]  ;;  %v253_v15 = vld [vmem:[%s1175_s29 + $0xb4] sm:$0xf] }
  0x1b   : > { %252 = vst [vmem:[%s202_s30 + $0x38] sm:$0xf] %v251_v14  ;;  %254 = vst [vmem:[%s202_s30 + $0x3c] sm:$0xf] %v253_v15 }
  0x1c PF: > { %p917_p6 = scmp.ge.s32.totalorder %s1104_s19, 1  ;;  %p320_p7 = scmp.lt.s32.totalorder %s1104_s19, 4 }
  0x1e   : > { %p321_p8 = pnand %p917_p6, %p320_p7 }
  0x1f   : > { %s327_s5 = sand.u32 (!%p321_p8), 1, %s1088_s15   ;;  %s919_s6 = sshll.u32 (!%p321_p8), %s1096_s17, 4 }
  0x20   : > { %324 = sbr.rel (%p321_p8) target bundleno = 323 (0x143), region = 73  ;;  %s918_s7 = sshll.u32 (!%p321_p8), %s327_s5, 6 }
  0x21   : > { %p371_p9 = scmp.lt.s32.totalorder (!%p321_p8), %s919_s6, 47  ;;  %s1202_s12 = scalar_lea.vmem (!%p321_p8), [#allocation3], %s918_s7 }
  0x22   : > { %p921_p10 = scmp.ne.s32.totalorder (!%p321_p8), %s1096_s17, 0 }
  0x27   : > { %s1369_s6 = smov (!%p371_p9, %s919_s6), 47  ;;  %398 = sbr.rel (%p921_p10) target bundleno = 49 (0x31), region = 81 }
  0x28   : > { %s920_s8 = sshll.u32 %s1369_s6, 2  ;;  %vm399_vm0 = vcmask (!%p921_p10), 523264   ;;  %v1106_v16 = vmov (!%p921_p10), 0.0  }
  0x29   : > { %s1200_s11 = scalar_lea.vmem %s1358_s1, %s920_s8  ;;  %400 = vst.msk [vmem:[#allocation2] sm:$0xff] (!%p921_p10), %vm399_vm0, %v1106_v16  ;;  %401 = vst.msk [vmem:[#allocation2 + $0x8] sm:$0xff] (!%p921_p10), %vm399_vm0, %v1106_v16 }
  0x2a   : > { %402 = vst.msk [vmem:[#allocation2 + $0x10] sm:$0xff] (!%p921_p10), %vm399_vm0, %v1106_v16  ;;  %403 = vst.msk [vmem:[#allocation2 + $0x18] sm:$0xff] (!%p921_p10), %vm399_vm0, %v1106_v16 }
  0x2b   : > { %404 = vst.msk [vmem:[#allocation2 + $0x20] sm:$0xff] (!%p921_p10), %vm399_vm0, %v1106_v16  ;;  %405 = vst.msk [vmem:[#allocation2 + $0x28] sm:$0xff] (!%p921_p10), %vm399_vm0, %v1106_v16 }
  0x2c   : > { %406 = vst.msk [vmem:[#allocation2 + $0x30] sm:$0xff] (!%p921_p10), %vm399_vm0, %v1106_v16  ;;  %407 = vst.msk [vmem:[#allocation2 + $0x38] sm:$0xff] (!%p921_p10), %vm399_vm0, %v1106_v16 }
  0x2d   : > { %408 = vst.msk [vmem:[#allocation2 + $0x40] sm:$0xff] (!%p921_p10), %vm399_vm0, %v1106_v16  ;;  %409 = vst.msk [vmem:[#allocation2 + $0x48] sm:$0xff] (!%p921_p10), %vm399_vm0, %v1106_v16 }
  0x2e   : > { %410 = vst.msk [vmem:[#allocation2 + $0x50] sm:$0xff] %vm399_vm0, %v1106_v16  ;;  %411 = vst.msk [vmem:[#allocation2 + $0x58] sm:$0xff] %vm399_vm0, %v1106_v16 }
  0x2f   : > { %412 = vst.msk [vmem:[#allocation2 + $0x60] sm:$0xff] %vm399_vm0, %v1106_v16  ;;  %413 = vst.msk [vmem:[#allocation2 + $0x68] sm:$0xff] %vm399_vm0, %v1106_v16 }
  0x30   : > { %414 = vst.msk [vmem:[#allocation2 + $0x70] sm:$0xff] %vm399_vm0, %v1106_v16  ;;  %415 = vst.msk [vmem:[#allocation2 + $0x78] sm:$0xff] %vm399_vm0, %v1106_v16 }
  0x31 PF: > { %v1050_v17 = vld [vmem:[%s1200_s11] sm:$0xff]   ;;  %v1051_v18 = vld [vmem:[%s1200_s11 + $0x8] sm:$0xff]   ;;  %v1052_v19 = vld [vmem:[%s1200_s11 + $0x10] sm:$0xff]   ;;  %vm673_vm1 = vcmask 523264   ;;  %p938_p11 = scmp.ne.s32.totalorder %s1096_s17, 2 }
  0x32   : > { %961 = vmatprep.subr.bf16.mxu0 %v1050_v17  ;;  %993 = vmatprep.subr.bf16.mxu1 %v1050_v17  ;;  %v1053_v20 = vld [vmem:[%s1200_s11 + $0x18] sm:$0xff]   ;;  %v1058_v21 = vld [vmem:[%s1202_s12] sm:$0xff]   ;;  %v1055_v24 = vld [vmem:[%s1200_s11 + $0x28] sm:$0xff]  }
  0x33   : > { %962 = vmatpush3.bf16.msra.mxu0 %v1050_v17  ;;  %1001 = vmatpush3.bf16.msra.mxu1 %v1050_v17  ;;  %v1059_v22 = vld [vmem:[%s1202_s12 + $0x20] sm:$0xff]   ;;  %v1056_v25 = vld [vmem:[%s1200_s11 + $0x30] sm:$0xff]   ;;  %v1057_v26 = vld [vmem:[%s1200_s11 + $0x38] sm:$0xff]  }
  0x34   : > { %963 = vmatprep.subr.bf16.mxu0 %v1051_v18  ;;  %994 = vmatprep.subr.bf16.mxu1 %v1051_v18  ;;  %v1054_v23 = vld [vmem:[%s1200_s11 + $0x20] sm:$0xff]   ;;  %v1060_v27 = vld [vmem:[%s1202_s12 + $0x8] sm:$0xff]   ;;  %v1062_v29 = vld [vmem:[%s1202_s12 + $0x10] sm:$0xff]  }
  0x35   : > { %977 = vmatprep.mubr.bf16.mxu0 %v1058_v21  ;;  %985 = vmatprep.mubr.bf16.mxu1 %v1059_v22  ;;  %v1061_v28 = vld [vmem:[%s1202_s12 + $0x28] sm:$0xff]   ;;  %v1063_v30 = vld [vmem:[%s1202_s12 + $0x30] sm:$0xff]   ;;  %v1064_v31 = vld [vmem:[%s1202_s12 + $0x18] sm:$0xff]  }
  0x36   : > { %v1065_v32 = vld [vmem:[%s1202_s12 + $0x38] sm:$0xff]   ;;  %v418_v33 = vld [vmem:[#allocation2 + $0x10] sm:$0xff]  ;;  %v416_v35 = vld [vmem:[#allocation2] sm:$0xff] }
  0x37   : > { %964 = vmatpush3.bf16.msra.mxu0 %v1051_v18  ;;  %1002 = vmatpush3.bf16.msra.mxu1 %v1051_v18  ;;  %v426_v34 = vld [vmem:[#allocation2 + $0x50] sm:$0xff]  ;;  %v424_v36 = vld [vmem:[#allocation2 + $0x40] sm:$0xff]  ;;  %v419_v39 = vld [vmem:[#allocation2 + $0x18] sm:$0xff] }
  0x38   : > { %965 = vmatprep.subr.bf16.mxu0 %v1052_v19  ;;  %995 = vmatprep.subr.bf16.mxu1 %v1052_v19  ;;  %v427_v40 = vld [vmem:[#allocation2 + $0x58] sm:$0xff]  ;;  %v417_v45 = vld [vmem:[#allocation2 + $0x8] sm:$0xff]  ;;  %v422_v57 = vld [vmem:[#allocation2 + $0x30] sm:$0xff] }
  0x39   : > { %v425_v46 = vld [vmem:[#allocation2 + $0x48] sm:$0xff]  ;;  %v430_v58 = vld [vmem:[#allocation2 + $0x70] sm:$0xff]  ;;  %v420_v59 = vld [vmem:[#allocation2 + $0x20] sm:$0xff] }
  0x3a   : > { %v428_v60 = vld [vmem:[#allocation2 + $0x60] sm:$0xff]  ;;  %v423_v63 = vld [vmem:[#allocation2 + $0x38] sm:$0xff]  ;;  %v421_v5 = vld [vmem:[#allocation2 + $0x28] sm:$0xff] }
  0x3b   : > { %966 = vmatpush3.bf16.msra.mxu0 %v1052_v19  ;;  %1003 = vmatpush3.bf16.msra.mxu1 %v1052_v19  ;;  %v431_v0 = vld [vmem:[#allocation2 + $0x78] sm:$0xff]  ;;  %v429_v6 = vld [vmem:[#allocation2 + $0x68] sm:$0xff]  ;;  %v939_v18 = vld [vmem:[%s1359_s2] ss:$0 sm:$0xff] (!%p938_p11) }
  0x3c   : > { %967 = vmatprep.subr.bf16.mxu0 %v1053_v20  ;;  %996 = vmatprep.subr.bf16.mxu1 %v1053_v20  ;;  %v1260_v19 = vld [vmem:[%s1360_s3] ss:$0 sm:$0xff] (!%p938_p11) }
  0x3f   : > { %968 = vmatpush3.bf16.msra.mxu0 %v1053_v20  ;;  %1004 = vmatpush3.bf16.msra.mxu1 %v1053_v20 }
  0x40   : > { %969 = vmatprep.subr.bf16.mxu0 %v1054_v23  ;;  %997 = vmatprep.subr.bf16.mxu1 %v1054_v23 }
  0x43   : > { %970 = vmatpush3.bf16.msra.mxu0 %v1054_v23  ;;  %1005 = vmatpush3.bf16.msra.mxu1 %v1054_v23 }
  0x44   : > { %971 = vmatprep.subr.bf16.mxu0 %v1055_v24  ;;  %998 = vmatprep.subr.bf16.mxu1 %v1055_v24 }
  0x47   : > { %972 = vmatpush3.bf16.msra.mxu0 %v1055_v24  ;;  %1006 = vmatpush3.bf16.msra.mxu1 %v1055_v24 }
  0x48   : > { %973 = vmatprep.subr.bf16.mxu0 %v1056_v25  ;;  %999 = vmatprep.subr.bf16.mxu1 %v1056_v25 }
  0x4b   : > { %974 = vmatpush3.bf16.msra.mxu0 %v1056_v25  ;;  %1007 = vmatpush3.bf16.msra.mxu1 %v1056_v25 }
  0x4c   : > { %975 = vmatprep.subr.bf16.mxu0 %v1057_v26  ;;  %1000 = vmatprep.subr.bf16.mxu1 %v1057_v26 }
  0x4f   : > { %976 = vmatpush3.bf16.msra.mxu0 %v1057_v26  ;;  %1008 = vmatpush3.bf16.msra.mxu1 %v1057_v26 }
  0x52   : > { %978 = vmatmul.mubr.bf16.vlgmr.msra.gmra.mrb[0].mxu0 %v1060_v27  ;;  %986 = vmatmul.mubr.bf16.vlgmr.msra.gmra.mrb[0].mxu1 %v1061_v28 }
  0x53   : > { %981 = vmatprep.mubr.bf16.mxu0 %v1062_v29  ;;  %989 = vmatprep.mubr.bf16.mxu1 %v1063_v30 }
  0x5a   : > { %982 = vmatmul.mubr.bf16.gmra.mrb[4].mxu0 %v1064_v31  ;;  %990 = vmatmul.mubr.bf16.gmra.mrb[4].mxu1 %v1065_v32 }
 0x125   : > { %v979_v37 = vpop.f32.mrb[0].mxu0  ;;  %v987_v38 = vpop.f32.mrb[0].mxu1 }
 0x126   : > { %v659_v41 = vadd.f32 %v979_v37, %v418_v33  ;;  %v667_v42 = vadd.f32 %v987_v38, %v426_v34  ;;  %v594_v43 = vpop.f32.mrb[1].mxu0  ;;  %v626_v44 = vpop.f32.mrb[1].mxu1 }
 0x127   : > { %v657_v47 = vadd.f32 %v594_v43, %v416_v35  ;;  %v665_v48 = vadd.f32 %v626_v44, %v424_v36  ;;  %v980_v49 = vpop.f32.mrb[2].mxu0  ;;  %v988_v50 = vpop.f32.mrb[2].mxu1 }
 0x128   : > { %676 = vst.msk [vmem:[#allocation2 + $0x10] sm:$0xff] %vm673_vm1, %v659_v41  ;;  %684 = vst.msk [vmem:[#allocation2 + $0x50] sm:$0xff] %vm673_vm1, %v667_v42  ;;  %v660_v51 = vadd.f32 %v980_v49, %v419_v39  ;;  %v668_v52 = vadd.f32 %v988_v50, %v427_v40  ;;  %v597_v53 = vpop.f32.mrb[3].mxu0  ;;  %v629_v54 = vpop.f32.mrb[3].mxu1 }
 0x129   : > { %674 = vst.msk [vmem:[#allocation2] sm:$0xff] %vm673_vm1, %v657_v47  ;;  %682 = vst.msk [vmem:[#allocation2 + $0x40] sm:$0xff] %vm673_vm1, %v665_v48  ;;  %v658_v55 = vadd.f32 %v597_v53, %v417_v45  ;;  %v666_v56 = vadd.f32 %v629_v54, %v425_v46 }
 0x12a   : > { %677 = vst.msk [vmem:[#allocation2 + $0x18] sm:$0xff] %vm673_vm1, %v660_v51  ;;  %685 = vst.msk [vmem:[#allocation2 + $0x58] sm:$0xff] %vm673_vm1, %v668_v52 }
 0x12b   : > { %675 = vst.msk [vmem:[#allocation2 + $0x8] sm:$0xff] %vm673_vm1, %v658_v55  ;;  %683 = vst.msk [vmem:[#allocation2 + $0x48] sm:$0xff] %vm673_vm1, %v666_v56 }
 0x12d   : > { %v983_v61 = vpop.f32.mrb[4].mxu0  ;;  %v991_v62 = vpop.f32.mrb[4].mxu1  ;;  %693 = sbr.rel (%p938_p11) target bundleno = 323 (0x143), region = 85 }
 0x12e   : > { %v663_v1 = vadd.f32 %v983_v61, %v422_v57  ;;  %v671_v2 = vadd.f32 %v991_v62, %v430_v58  ;;  %v610_v3 = vpop.f32.mrb[5].mxu0  ;;  %v642_v4 = vpop.f32.mrb[5].mxu1 }
 0x12f   : > { %v661_v7 = vadd.f32 %v610_v3, %v420_v59  ;;  %v669_v8 = vadd.f32 %v642_v4, %v428_v60  ;;  %v984_v9 = vpop.f32.mrb[6].mxu0  ;;  %v992_v10 = vpop.f32.mrb[6].mxu1  ;;  %v696_v22 = vld [vmem:[#allocation2 + $0x10] sm:$0xff] (!%p938_p11) }
 0x130   : > { %680 = vst.msk [vmem:[#allocation2 + $0x30] sm:$0xff] %vm673_vm1, %v663_v1  ;;  %688 = vst.msk [vmem:[#allocation2 + $0x70] sm:$0xff] %vm673_vm1, %v671_v2  ;;  %v664_v11 = vadd.f32 %v984_v9, %v423_v63  ;;  %v672_v12 = vadd.f32 %v992_v10, %v431_v0  ;;  %v613_v13 = vpop.f32.mrb[7].mxu0  ;;  %v645_v14 = vpop.f32.mrb[7].mxu1  ;;  %v694_v17 = vld [vmem:[#allocation2] sm:$0xff] (!%p938_p11)  ;;  %v719_v25 = vmul.f32 (!%p938_p11), %v939_v18, %v696_v22  ;;  %v704_v45 = vld [vmem:[#allocation2 + $0x50] sm:$0xff] (!%p938_p11) }
 0x131   : > { %678 = vst.msk [vmem:[#allocation2 + $0x20] sm:$0xff] %vm673_vm1, %v661_v7  ;;  %686 = vst.msk [vmem:[#allocation2 + $0x60] sm:$0xff] %vm673_vm1, %v669_v8  ;;  %v662_v15 = vadd.f32 %v613_v13, %v421_v5  ;;  %v670_v16 = vadd.f32 %v645_v14, %v429_v6  ;;  %v717_v20 = vmul.f32 (!%p938_p11), %v939_v18, %v694_v17  ;;  %v697_v23 = vld [vmem:[#allocation2 + $0x18] sm:$0xff] (!%p938_p11)  ;;  %v702_v39 = vld [vmem:[#allocation2 + $0x40] sm:$0xff] (!%p938_p11) }
 0x132   : > { %681 = vst.msk [vmem:[#allocation2 + $0x38] sm:$0xff] %vm673_vm1, %v664_v11  ;;  %689 = vst.msk [vmem:[#allocation2 + $0x78] sm:$0xff] %vm673_vm1, %v672_v12  ;;  %v695_v21 = vld [vmem:[#allocation2 + $0x8] sm:$0xff] (!%p938_p11)  ;;  %v720_v26 = vmul.f32 (!%p938_p11), %v939_v18, %v697_v23  ;;  %v742_v36 = vadd.f32 (!%p938_p11), %v1260_v19, %v719_v25  ;;  %v705_v46 = vld [vmem:[#allocation2 + $0x58] sm:$0xff] (!%p938_p11)  ;;  %v725_v57 = vmul.f32 (!%p938_p11), %v939_v18, %v702_v39 }
 0x133   : > { %679 = vst.msk [vmem:[#allocation2 + $0x28] sm:$0xff] %vm673_vm1, %v662_v15  ;;  %687 = vst.msk [vmem:[#allocation2 + $0x68] sm:$0xff] %vm673_vm1, %v670_v16  ;;  %v718_v24 = vmul.f32 (!%p938_p11), %v939_v18, %v695_v21  ;;  %v740_v30 = vadd.f32 (!%p938_p11), %v1260_v19, %v717_v20  ;;  %v703_v44 = vld [vmem:[#allocation2 + $0x48] sm:$0xff] (!%p938_p11)  ;;  %v727_v61 = vmul.f32 (!%p938_p11), %v939_v18, %v704_v45 }
 0x134   : > { %v743_v37 = vadd.f32 %v1260_v19, %v720_v26  ;;  %v758_v48 = vmax.f32 %v742_v36, 0.0  ;;  %v726_v60 = vmul.f32 %v939_v18, %v703_v44  ;;  %v728_v62 = vmul.f32 %v939_v18, %v705_v46 }
 0x135   : > { %v741_v35 = vadd.f32 %v1260_v19, %v718_v24  ;;  %v756_v40 = vmax.f32 %v740_v30, 0.0  ;;  %v748_v63 = vadd.f32 %v1260_v19, %v725_v57  ;;  %v750_v4 = vadd.f32 %v1260_v19, %v727_v61 }
 0x136   : > { %v759_v49 = vmax.f32 %v743_v37, 0.0  ;;  %774 = vst.msk [vmem:[%s1361_s4 + $0x10] sm:$0xff] %vm673_vm1, %v758_v48  ;;  %v749_v3 = vadd.f32 %v1260_v19, %v726_v60  ;;  %v751_v5 = vadd.f32 %v1260_v19, %v728_v62 }
 0x137   : > { %v700_v29 = vld [vmem:[#allocation2 + $0x30] sm:$0xff]  ;;  %v757_v47 = vmax.f32 %v741_v35, 0.0  ;;  %772 = vst.msk [vmem:[%s1361_s4] sm:$0xff] %vm673_vm1, %v756_v40  ;;  %v764_v7 = vmax.f32 %v748_v63, 0.0  ;;  %v766_v12 = vmax.f32 %v750_v4, 0.0 }
 0x138   : > { %v698_v27 = vld [vmem:[#allocation2 + $0x20] sm:$0xff]  ;;  %v723_v33 = vmul.f32 %v939_v18, %v700_v29  ;;  %v708_v53 = vld [vmem:[#allocation2 + $0x70] sm:$0xff]  ;;  %775 = vst.msk [vmem:[%s1361_s4 + $0x18] sm:$0xff] %vm673_vm1, %v759_v49  ;;  %v765_v11 = vmax.f32 %v749_v3, 0.0  ;;  %v767_v13 = vmax.f32 %v751_v5, 0.0 }
 0x139   : > { %v721_v31 = vmul.f32 %v939_v18, %v698_v27  ;;  %v701_v34 = vld [vmem:[#allocation2 + $0x38] sm:$0xff]  ;;  %v706_v51 = vld [vmem:[#allocation2 + $0x60] sm:$0xff]  ;;  %773 = vst.msk [vmem:[%s1361_s4 + $0x8] sm:$0xff] %vm673_vm1, %v757_v47  ;;  %v731_v2 = vmul.f32 %v939_v18, %v708_v53  ;;  %780 = vst.msk [vmem:[%s1361_s4 + $0x40] sm:$0xff] %vm673_vm1, %v764_v7 }
 0x13a   : > { %v699_v28 = vld [vmem:[#allocation2 + $0x28] sm:$0xff]  ;;  %v724_v38 = vmul.f32 %v939_v18, %v701_v34  ;;  %v746_v43 = vadd.f32 %v1260_v19, %v723_v33  ;;  %v709_v58 = vld [vmem:[#allocation2 + $0x78] sm:$0xff]  ;;  %v729_v0 = vmul.f32 %v939_v18, %v706_v51  ;;  %781 = vst.msk [vmem:[%s1361_s4 + $0x48] sm:$0xff] %vm673_vm1, %v765_v11  ;;  %782 = vst.msk [vmem:[%s1361_s4 + $0x50] sm:$0xff] %vm673_vm1, %v766_v12 }
 0x13b   : > { %v722_v32 = vmul.f32 %v939_v18, %v699_v28  ;;  %v744_v41 = vadd.f32 %v1260_v19, %v721_v31  ;;  %v707_v52 = vld [vmem:[#allocation2 + $0x68] sm:$0xff]  ;;  %v732_v6 = vmul.f32 %v939_v18, %v709_v58  ;;  %v754_v10 = vadd.f32 %v1260_v19, %v731_v2  ;;  %783 = vst.msk [vmem:[%s1361_s4 + $0x58] sm:$0xff] %vm673_vm1, %v767_v13 }
 0x13c   : > { %v747_v50 = vadd.f32 %v1260_v19, %v724_v38  ;;  %v762_v56 = vmax.f32 %v746_v43, 0.0  ;;  %v730_v1 = vmul.f32 %v939_v18, %v707_v52  ;;  %v752_v8 = vadd.f32 %v1260_v19, %v729_v0 }
 0x13d   : > { %v745_v42 = vadd.f32 %v1260_v19, %v722_v32  ;;  %v760_v54 = vmax.f32 %v744_v41, 0.0  ;;  %v755_v14 = vadd.f32 %v1260_v19, %v732_v6  ;;  %v770_v17 = vmax.f32 %v754_v10, 0.0 }
 0x13e   : > { %v763_v59 = vmax.f32 %v747_v50, 0.0  ;;  %778 = vst.msk [vmem:[%s1361_s4 + $0x30] sm:$0xff] %vm673_vm1, %v762_v56  ;;  %v753_v9 = vadd.f32 %v1260_v19, %v730_v1  ;;  %v768_v15 = vmax.f32 %v752_v8, 0.0 }
 0x13f   : > { %v761_v55 = vmax.f32 %v745_v42, 0.0  ;;  %776 = vst.msk [vmem:[%s1361_s4 + $0x20] sm:$0xff] %vm673_vm1, %v760_v54  ;;  %v771_v18 = vmax.f32 %v755_v14, 0.0  ;;  %786 = vst.msk [vmem:[%s1361_s4 + $0x70] sm:$0xff] %vm673_vm1, %v770_v17 }
 0x140   : > { %779 = vst.msk [vmem:[%s1361_s4 + $0x38] sm:$0xff] %vm673_vm1, %v763_v59  ;;  %v769_v16 = vmax.f32 %v753_v9, 0.0  ;;  %784 = vst.msk [vmem:[%s1361_s4 + $0x60] sm:$0xff] %vm673_vm1, %v768_v15 }
 0x141   : > { %777 = vst.msk [vmem:[%s1361_s4 + $0x28] sm:$0xff] %vm673_vm1, %v761_v55  ;;  %787 = vst.msk [vmem:[%s1361_s4 + $0x78] sm:$0xff] %vm673_vm1, %v771_v18 }
 0x142   : > { %785 = vst.msk [vmem:[%s1361_s4 + $0x68] sm:$0xff] %vm673_vm1, %v769_v16 }
 0x143 PF: > { %s14_s19 = sadd.s32 1, %s1104_s19   ;;  %s1362_s15 = smov %s1092_s16 }
 0x144   : > { %p11_p12 = scmp.ge.s32.totalorder %s14_s19, 5   ;;  %s1363_s16 = smov %s1167_s23 }
 0x145   : > { %s1364_s17 = smov %s1100_s18  ;;  %s1365_s18 = smov %s1367_s20 }
 0x146   :  { %13 = sbr.rel (!%p11_p12) target bundleno = 3 (0x3), region = 129 }

// kernel: _lambda_.32
= control target key start
LH: loop header
LB: loop body
LE: loop exit
PB: predicated region body
PF: predicated region fallthrough
CT: control target
= control target key end

     0   :  { %s830_s15 = smov 0   ;;  %s832_s16 = smov 0   ;;  %s940_s0 = inlined_call_operand.vmem [shape: bf16[32,640], index: 0, kind: input, shape index: {}]   ;;  %s941_s1 = inlined_call_operand.vmem [shape: bf16[640,64], index: 1, kind: input, shape index: {}]   ;;  %s942_s2 = inlined_call_operand.vmem [shape: f32[1,64], index: 2, kind: input, shape index: {}]   ;;  %s943_s3 = inlined_call_operand.vmem [shape: f32[1,64], index: 3, kind: input, shape index: {}]   ;;  %s944_s4 = inlined_call_operand.vmem [shape: f32[32,64], index: 4, kind: output, shape index: {}]  }
   0x1   :  { %s834_s17 = smov 0   ;;  %s836_s18 = smov 0  }
   0x2   :  { %s838_s19 = smov 0  }
   0x3 LB: > { %s26_s20 = sadd.s32 1, %s798_s18  ;;  %p49_p1 = scmp.ne.s32.totalorder %s790_s16, %s786_s15  ;;  %s802_s19 = sphi %s838_s19, %s14_s19   ;;  %s798_s18 = sphi %s836_s18, %s948_s18   ;;  %s794_s17 = sphi %s834_s17, %s947_s17   ;;  %s790_s16 = sphi %s832_s16, %s946_s16   ;;  %s786_s15 = sphi %s830_s15, %s945_s15  }
   0x4   : > { %p27_p0 = scmp.ge.s32.totalorder %s26_s20, 5  ;;  %p50_p2 = scmp.eq.s32.totalorder %s802_s19, 0 }
   0x5   : > { %s42_s22 = sadd.s32 1, %s790_s16  ;;  %p658_p5 = scmp.ge.s32.totalorder %s802_s19, 5 }
   0x6   : > { %s950_s20 = smov (%p27_p0, %s26_s20), 0  ;;  %p51_p3 = por %p50_p2, %p49_p1 }
   0x7   : > { %s38_s21 = ssub.s32 %s798_s18, %s950_s20  ;;  %195 = sbr.rel (%p658_p5) target bundleno = 21 (0x15), region = 24 }
   0x8   : > { %p40_p4 = scmp.eq.s32.totalorder %s38_s21, 0 }
   0xa   : > { %s865_s23 = scalar_select %p40_p4, %s790_s16, %s42_s22  }
   0xe   : > { %198 = sbr.rel (!%p51_p3) target bundleno = 21 (0x15), region = 28  ;;  %s200_s24 = sand.u32 (%p51_p3), 1, %s790_s16  }
   0xf   : > { %s660_s25 = sshll.u32 (%p51_p3), %s798_s18, 2  ;;  %s659_s26 = sshll.u32 (%p51_p3), %s200_s24, 4 }
  0x10   : > { %s207_s29 = scalar_lea.vmem (%p51_p3), %s940_s0, %s660_s25  ;;  %s202_s30 = scalar_lea.vmem (%p51_p3), [#allocation3], %s659_s26 }
  0x11   : > { %v223_v0 = vld [vmem:[%s207_s29] sm:$0xf] (%p51_p3)  ;;  %v225_v1 = vld [vmem:[%s207_s29 + $0x14] sm:$0xf] (%p51_p3)  ;;  %v227_v2 = vld [vmem:[%s207_s29 + $0x28] sm:$0xf] (%p51_p3) }
  0x12   : > { %224 = vst [vmem:[%s202_s30] sm:$0xf] (%p51_p3), %v223_v0  ;;  %226 = vst [vmem:[%s202_s30 + $0x4] sm:$0xf] (%p51_p3), %v225_v1  ;;  %v229_v3 = vld [vmem:[%s207_s29 + $0x3c] sm:$0xf] (%p51_p3) }
  0x13   : > { %228 = vst [vmem:[%s202_s30 + $0x8] sm:$0xf] (%p51_p3), %v227_v2  ;;  %230 = vst [vmem:[%s202_s30 + $0xc] sm:$0xf] (%p51_p3), %v229_v3 }
  0x15 PF: > { %p661_p6 = scmp.ge.s32.totalorder %s802_s19, 1  ;;  %p272_p7 = scmp.lt.s32.totalorder %s802_s19, 6 }
  0x17   : > { %p273_p8 = pnand %p661_p6, %p272_p7 }
  0x18   : > { %s279_s5 = sand.u32 (!%p273_p8), 1, %s786_s15   ;;  %s663_s6 = sshll.u32 (!%p273_p8), %s794_s17, 4 }
  0x19   : > { %276 = sbr.rel (%p273_p8) target bundleno = 302 (0x12e), region = 73  ;;  %s877_s7 = sshll.u32 (!%p273_p8), %s279_s5, 4 }
  0x1a   : > { %p323_p9 = scmp.lt.s32.totalorder (!%p273_p8), %s663_s6, 79  ;;  %s281_s12 = scalar_lea.vmem (!%p273_p8), [#allocation3], %s877_s7 }
  0x1b   : > { %p665_p10 = scmp.ne.s32.totalorder (!%p273_p8), %s794_s17, 0 }
  0x20   : > { %s952_s6 = smov (!%p323_p9, %s663_s6), 79  ;;  %350 = sbr.rel (%p665_p10) target bundleno = 39 (0x27), region = 81 }
  0x21   : > { %s664_s8 = sshll.u32 %s952_s6, 2  ;;  %vm351_vm0 = vcmask (!%p665_p10), 523264   ;;  %v804_v4 = vmov (!%p665_p10), 0.0  }
  0x22   : > { %s882_s11 = scalar_lea.vmem %s941_s1, %s664_s8  ;;  %352 = vst.msk [vmem:[#allocation2] sm:$0xff] (!%p665_p10), %vm351_vm0, %v804_v4  ;;  %353 = vst.msk [vmem:[#allocation2 + $0x8] sm:$0xff] (!%p665_p10), %vm351_vm0, %v804_v4 }
  0x23   : > { %354 = vst.msk [vmem:[#allocation2 + $0x10] sm:$0xff] (!%p665_p10), %vm351_vm0, %v804_v4  ;;  %355 = vst.msk [vmem:[#allocation2 + $0x18] sm:$0xff] (!%p665_p10), %vm351_vm0, %v804_v4 }
  0x27 PF: > { %v754_v5 = vld [vmem:[%s882_s11] sm:$0xff]   ;;  %v755_v6 = vld [vmem:[%s882_s11 + $0x8] sm:$0xff]   ;;  %v756_v7 = vld [vmem:[%s882_s11 + $0x10] sm:$0xff]   ;;  %vm493_vm1 = vcmask 523264   ;;  %p676_p11 = scmp.ne.s32.totalorder %s794_s17, 4 }
  0x28   : > { %693 = vmatprep.subr.bf16.mxu0 %v754_v5  ;;  %v757_v8 = vld [vmem:[%s882_s11 + $0x18] sm:$0xff]   ;;  %v762_v9 = vld [vmem:[%s281_s12] sm:$0xff]   ;;  %v759_v11 = vld [vmem:[%s882_s11 + $0x28] sm:$0xff]  }
  0x29   : > { %694 = vmatpush3.bf16.msra.mxu0 %v754_v5  ;;  %709 = vmatprep.mubr.bf16.mxu0 %v762_v9  ;;  %v758_v10 = vld [vmem:[%s882_s11 + $0x20] sm:$0xff]   ;;  %v760_v12 = vld [vmem:[%s882_s11 + $0x30] sm:$0xff]   ;;  %v761_v13 = vld [vmem:[%s882_s11 + $0x38] sm:$0xff]  }
  0x2a   : > { %695 = vmatprep.subr.bf16.mxu0 %v755_v6  ;;  %v763_v14 = vld [vmem:[%s281_s12 + $0x8] sm:$0xff]   ;;  %v358_v15 = vld [vmem:[#allocation2 + $0x10] sm:$0xff]  ;;  %v356_v16 = vld [vmem:[#allocation2] sm:$0xff] }
  0x2b   : > { %v359_v18 = vld [vmem:[#allocation2 + $0x18] sm:$0xff]  ;;  %v357_v21 = vld [vmem:[#allocation2 + $0x8] sm:$0xff]  ;;  %v677_v28 = vld [vmem:[%s942_s2] ss:$0 sm:$0xff] (!%p676_p11) }
  0x2c   : > { %v678_v29 = vld [vmem:[%s943_s3] ss:$0 sm:$0xff] (!%p676_p11) }
  0x2d   : > { %696 = vmatpush3.bf16.msra.mxu0 %v755_v6 }
  0x2e   : > { %697 = vmatprep.subr.bf16.mxu0 %v756_v7 }
  0x31   : > { %698 = vmatpush3.bf16.msra.mxu0 %v756_v7 }
  0x32   : > { %699 = vmatprep.subr.bf16.mxu0 %v757_v8 }
  0x35   : > { %700 = vmatpush3.bf16.msra.mxu0 %v757_v8 }
  0x36   : > { %701 = vmatprep.subr.bf16.mxu0 %v758_v10 }
  0x39   : > { %702 = vmatpush3.bf16.msra.mxu0 %v758_v10 }
  0x3a   : > { %703 = vmatprep.subr.bf16.mxu0 %v759_v11 }
  0x3d   : > { %704 = vmatpush3.bf16.msra.mxu0 %v759_v11 }
  0x3e   : > { %705 = vmatprep.subr.bf16.mxu0 %v760_v12 }
  0x41   : > { %706 = vmatpush3.bf16.msra.mxu0 %v760_v12 }
  0x42   : > { %707 = vmatprep.subr.bf16.mxu0 %v761_v13 }
  0x45   : > { %708 = vmatpush3.bf16.msra.mxu0 %v761_v13 }
  0x48   : > { %710 = vmatmul.mubr.bf16.vlgmr.msra.gmra.mrb[0].mxu0 %v763_v14 }
 0x11b   : > { %v711_v17 = vpop.f32.mrb[0].mxu0  ;;  %501 = sbr.rel (%p676_p11) target bundleno = 302 (0x12e), region = 85 }
 0x11c   : > { %v491_v19 = vadd.f32 %v711_v17, %v358_v15  ;;  %v474_v20 = vpop.f32.mrb[1].mxu0 }
 0x11d   : > { %v489_v22 = vadd.f32 %v474_v20, %v356_v16  ;;  %v712_v23 = vpop.f32.mrb[2].mxu0 }
 0x11e   : > { %496 = vst.msk [vmem:[#allocation2 + $0x10] sm:$0xff] %vm493_vm1, %v491_v19  ;;  %v492_v24 = vadd.f32 %v712_v23, %v359_v18  ;;  %v477_v25 = vpop.f32.mrb[3].mxu0 }
 0x11f   : > { %494 = vst.msk [vmem:[#allocation2] sm:$0xff] %vm493_vm1, %v489_v22  ;;  %v490_v26 = vadd.f32 %v477_v25, %v357_v21 }
 0x120   : > { %497 = vst.msk [vmem:[#allocation2 + $0x18] sm:$0xff] %vm493_vm1, %v492_v24 }
 0x121   : > { %495 = vst.msk [vmem:[#allocation2 + $0x8] sm:$0xff] %vm493_vm1, %v490_v26 }
 0x125   : > { %v504_v32 = vld [vmem:[#allocation2 + $0x10] sm:$0xff] }
 0x126   : > { %v502_v27 = vld [vmem:[#allocation2] sm:$0xff]  ;;  %v515_v35 = vmul.f32 %v677_v28, %v504_v32 }
 0x127   : > { %v513_v30 = vmul.f32 %v677_v28, %v502_v27  ;;  %v505_v33 = vld [vmem:[#allocation2 + $0x18] sm:$0xff] }
 0x128   : > { %v503_v31 = vld [vmem:[#allocation2 + $0x8] sm:$0xff]  ;;  %v516_v36 = vmul.f32 %v677_v28, %v505_v33  ;;  %v526_v39 = vadd.f32 %v678_v29, %v515_v35 }
 0x129   : > { %v514_v34 = vmul.f32 %v677_v28, %v503_v31  ;;  %v524_v37 = vadd.f32 %v678_v29, %v513_v30 }
 0x12a   : > { %v527_v40 = vadd.f32 %v678_v29, %v516_v36  ;;  %530 = vst.msk [vmem:[%s944_s4 + $0x10] sm:$0xff] %vm493_vm1, %v526_v39 }
 0x12b   : > { %v525_v38 = vadd.f32 %v678_v29, %v514_v34  ;;  %528 = vst.msk [vmem:[%s944_s4] sm:$0xff] %vm493_vm1, %v524_v37 }
 0x12c   : > { %531 = vst.msk [vmem:[%s944_s4 + $0x18] sm:$0xff] %vm493_vm1, %v527_v40 }
 0x12d   : > { %529 = vst.msk [vmem:[%s944_s4 + $0x8] sm:$0xff] %vm493_vm1, %v525_v38 }
 0x12e PF: > { %s14_s19 = sadd.s32 1, %s802_s19   ;;  %s945_s15 = smov %s790_s16 }
 0x12f   : > { %p11_p12 = scmp.ge.s32.totalorder %s14_s19, 7   ;;  %s946_s16 = smov %s865_s23 }
 0x130   : > { %s947_s17 = smov %s798_s18  ;;  %s948_s18 = smov %s950_s20 }
 0x131   :  { %13 = sbr.rel (!%p11_p12) target bundleno = 3 (0x3), region = 129 }

// kernel: _lambda_.31
= control target key start
LH: loop header
LB: loop body
LE: loop exit
PB: predicated region body
PF: predicated region fallthrough
CT: control target
= control target key end

     0   :  { %s834_s15 = smov 0   ;;  %s836_s16 = smov 0   ;;  %s944_s0 = inlined_call_operand.vmem [shape: bf16[32,640], index: 0, kind: input, shape index: {}]   ;;  %s945_s1 = inlined_call_operand.vmem [shape: bf16[640,64], index: 1, kind: input, shape index: {}]   ;;  %s946_s2 = inlined_call_operand.vmem [shape: f32[1,64], index: 2, kind: input, shape index: {}]   ;;  %s947_s3 = inlined_call_operand.vmem [shape: f32[1,64], index: 3, kind: input, shape index: {}]   ;;  %s948_s4 = inlined_call_operand.vmem [shape: f32[32,64], index: 4, kind: output, shape index: {}]  }
   0x1   :  { %s838_s17 = smov 0   ;;  %s840_s18 = smov 0  }
   0x2   :  { %s842_s19 = smov 0  }
   0x3 LB: > { %s26_s20 = sadd.s32 1, %s802_s18  ;;  %p49_p1 = scmp.ne.s32.totalorder %s794_s16, %s790_s15  ;;  %s806_s19 = sphi %s842_s19, %s14_s19   ;;  %s802_s18 = sphi %s840_s18, %s952_s18   ;;  %s798_s17 = sphi %s838_s17, %s951_s17   ;;  %s794_s16 = sphi %s836_s16, %s950_s16   ;;  %s790_s15 = sphi %s834_s15, %s949_s15  }
   0x4   : > { %p27_p0 = scmp.ge.s32.totalorder %s26_s20, 5  ;;  %p50_p2 = scmp.eq.s32.totalorder %s806_s19, 0 }
   0x5   : > { %s42_s22 = sadd.s32 1, %s794_s16  ;;  %p662_p5 = scmp.ge.s32.totalorder %s806_s19, 5 }
   0x6   : > { %s954_s20 = smov (%p27_p0, %s26_s20), 0  ;;  %p51_p3 = por %p50_p2, %p49_p1 }
   0x7   : > { %s38_s21 = ssub.s32 %s802_s18, %s954_s20  ;;  %195 = sbr.rel (%p662_p5) target bundleno = 21 (0x15), region = 24 }
   0x8   : > { %p40_p4 = scmp.eq.s32.totalorder %s38_s21, 0 }
   0xa   : > { %s869_s23 = scalar_select %p40_p4, %s794_s16, %s42_s22  }
   0xe   : > { %198 = sbr.rel (!%p51_p3) target bundleno = 21 (0x15), region = 28  ;;  %s200_s24 = sand.u32 (%p51_p3), 1, %s794_s16  }
   0xf   : > { %s664_s25 = sshll.u32 (%p51_p3), %s802_s18, 2  ;;  %s663_s26 = sshll.u32 (%p51_p3), %s200_s24, 4 }
  0x10   : > { %s207_s29 = scalar_lea.vmem (%p51_p3), %s944_s0, %s664_s25  ;;  %s202_s30 = scalar_lea.vmem (%p51_p3), [#allocation3], %s663_s26 }
  0x11   : > { %v223_v0 = vld [vmem:[%s207_s29] sm:$0xf] (%p51_p3)  ;;  %v225_v1 = vld [vmem:[%s207_s29 + $0x14] sm:$0xf] (%p51_p3)  ;;  %v227_v2 = vld [vmem:[%s207_s29 + $0x28] sm:$0xf] (%p51_p3) }
  0x12   : > { %224 = vst [vmem:[%s202_s30] sm:$0xf] (%p51_p3), %v223_v0  ;;  %226 = vst [vmem:[%s202_s30 + $0x4] sm:$0xf] (%p51_p3), %v225_v1  ;;  %v229_v3 = vld [vmem:[%s207_s29 + $0x3c] sm:$0xf] (%p51_p3) }
  0x13   : > { %228 = vst [vmem:[%s202_s30 + $0x8] sm:$0xf] (%p51_p3), %v227_v2  ;;  %230 = vst [vmem:[%s202_s30 + $0xc] sm:$0xf] (%p51_p3), %v229_v3 }
  0x15 PF: > { %p665_p6 = scmp.ge.s32.totalorder %s806_s19, 1  ;;  %p272_p7 = scmp.lt.s32.totalorder %s806_s19, 6 }
  0x17   : > { %p273_p8 = pnand %p665_p6, %p272_p7 }
  0x18   : > { %s279_s5 = sand.u32 (!%p273_p8), 1, %s790_s15   ;;  %s667_s6 = sshll.u32 (!%p273_p8), %s798_s17, 4 }
  0x19   : > { %276 = sbr.rel (%p273_p8) target bundleno = 304 (0x130), region = 73  ;;  %s881_s7 = sshll.u32 (!%p273_p8), %s279_s5, 4 }
  0x1a   : > { %p323_p9 = scmp.lt.s32.totalorder (!%p273_p8), %s667_s6, 79  ;;  %s281_s12 = scalar_lea.vmem (!%p273_p8), [#allocation3], %s881_s7 }
  0x1b   : > { %p669_p10 = scmp.ne.s32.totalorder (!%p273_p8), %s798_s17, 0 }
  0x20   : > { %s956_s6 = smov (!%p323_p9, %s667_s6), 79  ;;  %350 = sbr.rel (%p669_p10) target bundleno = 39 (0x27), region = 81 }
  0x21   : > { %s668_s8 = sshll.u32 %s956_s6, 2  ;;  %vm351_vm0 = vcmask (!%p669_p10), 523264   ;;  %v808_v4 = vmov (!%p669_p10), 0.0  }
  0x22   : > { %s886_s11 = scalar_lea.vmem %s945_s1, %s668_s8  ;;  %352 = vst.msk [vmem:[#allocation2] sm:$0xff] (!%p669_p10), %vm351_vm0, %v808_v4  ;;  %353 = vst.msk [vmem:[#allocation2 + $0x8] sm:$0xff] (!%p669_p10), %vm351_vm0, %v808_v4 }
  0x23   : > { %354 = vst.msk [vmem:[#allocation2 + $0x10] sm:$0xff] (!%p669_p10), %vm351_vm0, %v808_v4  ;;  %355 = vst.msk [vmem:[#allocation2 + $0x18] sm:$0xff] (!%p669_p10), %vm351_vm0, %v808_v4 }
  0x27 PF: > { %v758_v5 = vld [vmem:[%s886_s11] sm:$0xff]   ;;  %v759_v6 = vld [vmem:[%s886_s11 + $0x8] sm:$0xff]   ;;  %v760_v7 = vld [vmem:[%s886_s11 + $0x10] sm:$0xff]   ;;  %vm493_vm1 = vcmask 523264   ;;  %p680_p11 = scmp.ne.s32.totalorder %s798_s17, 4 }
  0x28   : > { %697 = vmatprep.subr.bf16.mxu0 %v758_v5  ;;  %v761_v8 = vld [vmem:[%s886_s11 + $0x18] sm:$0xff]   ;;  %v766_v9 = vld [vmem:[%s281_s12] sm:$0xff]   ;;  %v763_v11 = vld [vmem:[%s886_s11 + $0x28] sm:$0xff]  }
  0x29   : > { %698 = vmatpush3.bf16.msra.mxu0 %v758_v5  ;;  %713 = vmatprep.mubr.bf16.mxu0 %v766_v9  ;;  %v762_v10 = vld [vmem:[%s886_s11 + $0x20] sm:$0xff]   ;;  %v764_v12 = vld [vmem:[%s886_s11 + $0x30] sm:$0xff]   ;;  %v765_v13 = vld [vmem:[%s886_s11 + $0x38] sm:$0xff]  }
  0x2a   : > { %699 = vmatprep.subr.bf16.mxu0 %v759_v6  ;;  %v767_v14 = vld [vmem:[%s281_s12 + $0x8] sm:$0xff]   ;;  %v358_v15 = vld [vmem:[#allocation2 + $0x10] sm:$0xff]  ;;  %v356_v16 = vld [vmem:[#allocation2] sm:$0xff] }
  0x2b   : > { %v359_v18 = vld [vmem:[#allocation2 + $0x18] sm:$0xff]  ;;  %v357_v21 = vld [vmem:[#allocation2 + $0x8] sm:$0xff]  ;;  %v681_v28 = vld [vmem:[%s946_s2] ss:$0 sm:$0xff] (!%p680_p11) }
  0x2c   : > { %v682_v29 = vld [vmem:[%s947_s3] ss:$0 sm:$0xff] (!%p680_p11) }
  0x2d   : > { %700 = vmatpush3.bf16.msra.mxu0 %v759_v6 }
  0x2e   : > { %701 = vmatprep.subr.bf16.mxu0 %v760_v7 }
  0x31   : > { %702 = vmatpush3.bf16.msra.mxu0 %v760_v7 }
  0x32   : > { %703 = vmatprep.subr.bf16.mxu0 %v761_v8 }
  0x35   : > { %704 = vmatpush3.bf16.msra.mxu0 %v761_v8 }
  0x36   : > { %705 = vmatprep.subr.bf16.mxu0 %v762_v10 }
  0x39   : > { %706 = vmatpush3.bf16.msra.mxu0 %v762_v10 }
  0x3a   : > { %707 = vmatprep.subr.bf16.mxu0 %v763_v11 }
  0x3d   : > { %708 = vmatpush3.bf16.msra.mxu0 %v763_v11 }
  0x3e   : > { %709 = vmatprep.subr.bf16.mxu0 %v764_v12 }
  0x41   : > { %710 = vmatpush3.bf16.msra.mxu0 %v764_v12 }
  0x42   : > { %711 = vmatprep.subr.bf16.mxu0 %v765_v13 }
  0x45   : > { %712 = vmatpush3.bf16.msra.mxu0 %v765_v13 }
  0x48   : > { %714 = vmatmul.mubr.bf16.vlgmr.msra.gmra.mrb[0].mxu0 %v767_v14 }
 0x11b   : > { %v715_v17 = vpop.f32.mrb[0].mxu0  ;;  %501 = sbr.rel (%p680_p11) target bundleno = 304 (0x130), region = 85 }
 0x11c   : > { %v491_v19 = vadd.f32 %v715_v17, %v358_v15  ;;  %v474_v20 = vpop.f32.mrb[1].mxu0 }
 0x11d   : > { %v489_v22 = vadd.f32 %v474_v20, %v356_v16  ;;  %v716_v23 = vpop.f32.mrb[2].mxu0 }
 0x11e   : > { %496 = vst.msk [vmem:[#allocation2 + $0x10] sm:$0xff] %vm493_vm1, %v491_v19  ;;  %v492_v24 = vadd.f32 %v716_v23, %v359_v18  ;;  %v477_v25 = vpop.f32.mrb[3].mxu0 }
 0x11f   : > { %494 = vst.msk [vmem:[#allocation2] sm:$0xff] %vm493_vm1, %v489_v22  ;;  %v490_v26 = vadd.f32 %v477_v25, %v357_v21 }
 0x120   : > { %497 = vst.msk [vmem:[#allocation2 + $0x18] sm:$0xff] %vm493_vm1, %v492_v24 }
 0x121   : > { %495 = vst.msk [vmem:[#allocation2 + $0x8] sm:$0xff] %vm493_vm1, %v490_v26 }
 0x125   : > { %v504_v32 = vld [vmem:[#allocation2 + $0x10] sm:$0xff] }
 0x126   : > { %v502_v27 = vld [vmem:[#allocation2] sm:$0xff]  ;;  %v515_v35 = vmul.f32 %v681_v28, %v504_v32 }
 0x127   : > { %v513_v30 = vmul.f32 %v681_v28, %v502_v27  ;;  %v505_v33 = vld [vmem:[#allocation2 + $0x18] sm:$0xff] }
 0x128   : > { %v503_v31 = vld [vmem:[#allocation2 + $0x8] sm:$0xff]  ;;  %v516_v36 = vmul.f32 %v681_v28, %v505_v33  ;;  %v526_v39 = vadd.f32 %v682_v29, %v515_v35 }
 0x129   : > { %v514_v34 = vmul.f32 %v681_v28, %v503_v31  ;;  %v524_v37 = vadd.f32 %v682_v29, %v513_v30 }
 0x12a   : > { %v527_v40 = vadd.f32 %v682_v29, %v516_v36  ;;  %v530_v43 = vmax.f32 %v526_v39, 0.0 }
 0x12b   : > { %v525_v38 = vadd.f32 %v682_v29, %v514_v34  ;;  %v528_v41 = vmax.f32 %v524_v37, 0.0 }
 0x12c   : > { %v531_v44 = vmax.f32 %v527_v40, 0.0  ;;  %534 = vst.msk [vmem:[%s948_s4 + $0x10] sm:$0xff] %vm493_vm1, %v530_v43 }
 0x12d   : > { %v529_v42 = vmax.f32 %v525_v38, 0.0  ;;  %532 = vst.msk [vmem:[%s948_s4] sm:$0xff] %vm493_vm1, %v528_v41 }
 0x12e   : > { %535 = vst.msk [vmem:[%s948_s4 + $0x18] sm:$0xff] %vm493_vm1, %v531_v44 }
 0x12f   : > { %533 = vst.msk [vmem:[%s948_s4 + $0x8] sm:$0xff] %vm493_vm1, %v529_v42 }
 0x130 PF: > { %s14_s19 = sadd.s32 1, %s806_s19   ;;  %s949_s15 = smov %s794_s16 }
 0x131   : > { %p11_p12 = scmp.ge.s32.totalorder %s14_s19, 7   ;;  %s950_s16 = smov %s869_s23 }
 0x132   : > { %s951_s17 = smov %s802_s18  ;;  %s952_s18 = smov %s954_s20 }
 0x133   :  { %13 = sbr.rel (!%p11_p12) target bundleno = 3 (0x3), region = 129 }

// kernel: _lambda_.33
= control target key start
LH: loop header
LB: loop body
LE: loop exit
PB: predicated region body
PF: predicated region fallthrough
CT: control target
= control target key end

     0   :  { %s58_s0 = inlined_call_operand.vmem [shape: f32[16,128], index: 0, kind: input, shape index: {}]   ;;  %s59_s1 = inlined_call_operand.vmem [shape: f32[16,128], index: 1, kind: input, shape index: {}]   ;;  %s60_s2 = inlined_call_operand.vmem [shape: f32[16,128], index: 2, kind: output, shape index: {}]  }
   0x1   :  { %v11_v0 = vld [vmem:[%s58_s0] sm:$0xff]  ;;  %v12_v2 = vld [vmem:[%s58_s0 + $0x8] sm:$0xff] }
   0x2   :  { %v13_v1 = vld [vmem:[%s59_s1] sm:$0xff]  ;;  %v14_v4 = vld [vmem:[%s59_s1 + $0x8] sm:$0xff] }
   0x3   :  { %v15_v3 = vadd.f32 %v13_v1, %v11_v0  ;;  %v16_v5 = vadd.f32 %v14_v4, %v12_v2 }
   0x5   :  { %v17_v6 = vmax.f32 %v15_v3, 0.0  ;;  %v18_v7 = vmax.f32 %v16_v5, 0.0 }
   0x7   :  { %19 = vst [vmem:[%s60_s2] sm:$0xff] %v17_v6  ;;  %20 = vst [vmem:[%s60_s2 + $0x8] sm:$0xff] %v18_v7 }

// kernel: _lambda_.40
= control target key start
LH: loop header
LB: loop body
LE: loop exit
PB: predicated region body
PF: predicated region fallthrough
CT: control target
= control target key end

     0   :  { %s44_s0 = inlined_call_operand.vmem [shape: f32[8,128], index: 0, kind: input, shape index: {}]   ;;  %s45_s1 = inlined_call_operand.vmem [shape: f32[8,128], index: 1, kind: input, shape index: {}]   ;;  %s46_s2 = inlined_call_operand.vmem [shape: f32[8,128], index: 2, kind: output, shape index: {}]  }
   0x1   :  { %v11_v0 = vld [vmem:[%s44_s0] sm:$0xff] }
   0x2   :  { %v12_v1 = vld [vmem:[%s45_s1] sm:$0xff] }
   0x3   :  { %v13_v2 = vadd.f32 %v12_v1, %v11_v0 }
   0x5   :  { %v14_v3 = vmax.f32 %v13_v2, 0.0 }
   0x7   :  { %15 = vst [vmem:[%s46_s2] sm:$0xff] %v14_v3 }

// kernel: _lambda_.37
= control target key start
LH: loop header
LB: loop body
LE: loop exit
PB: predicated region body
PF: predicated region fallthrough
CT: control target
= control target key end

     0   :  { %s791_s15 = smov 0   ;;  %s793_s16 = smov 0   ;;  %s885_s0 = inlined_call_operand.vmem [shape: bf16[16,640], index: 0, kind: input, shape index: {}]   ;;  %s886_s1 = inlined_call_operand.vmem [shape: bf16[640,128], index: 1, kind: input, shape index: {}]   ;;  %s887_s2 = inlined_call_operand.vmem [shape: f32[1,128], index: 2, kind: input, shape index: {}]   ;;  %s888_s3 = inlined_call_operand.vmem [shape: f32[1,128], index: 3, kind: input, shape index: {}]   ;;  %s889_s4 = inlined_call_operand.vmem [shape: f32[16,128], index: 4, kind: output, shape index: {}]  }
   0x1   :  { %s795_s17 = smov 0   ;;  %s797_s18 = smov 0  }
   0x2   :  { %s799_s19 = smov 0  }
   0x3 LB: > { %s26_s20 = sadd.s32 1, %s757_s18  ;;  %p49_p1 = scmp.ne.s32.totalorder %s749_s16, %s745_s15  ;;  %s761_s19 = sphi %s799_s19, %s14_s19   ;;  %s757_s18 = sphi %s797_s18, %s893_s18   ;;  %s753_s17 = sphi %s795_s17, %s892_s17   ;;  %s749_s16 = sphi %s793_s16, %s891_s16   ;;  %s745_s15 = sphi %s791_s15, %s890_s15  }
   0x4   : > { %p27_p0 = scmp.ge.s32.totalorder %s26_s20, 5  ;;  %p50_p2 = scmp.eq.s32.totalorder %s761_s19, 0 }
   0x5   : > { %s42_s22 = sadd.s32 1, %s749_s16  ;;  %p618_p5 = scmp.ge.s32.totalorder %s761_s19, 5 }
   0x6   : > { %s895_s20 = smov (%p27_p0, %s26_s20), 0  ;;  %p51_p3 = por %p50_p2, %p49_p1 }
   0x7   : > { %s38_s21 = ssub.s32 %s757_s18, %s895_s20  ;;  %195 = sbr.rel (%p618_p5) target bundleno = 21 (0x15), region = 24 }
   0x8   : > { %p40_p4 = scmp.eq.s32.totalorder %s38_s21, 0 }
   0xa   : > { %s826_s23 = scalar_select %p40_p4, %s749_s16, %s42_s22  }
   0xe   : > { %198 = sbr.rel (!%p51_p3) target bundleno = 21 (0x15), region = 28  ;;  %s200_s24 = sand.u32 (%p51_p3), 1, %s749_s16  }
   0xf   : > { %s620_s25 = sshll.u32 (%p51_p3), %s757_s18, 2  ;;  %s619_s26 = sshll.u32 (%p51_p3), %s200_s24, 3 }
  0x10   : > { %s207_s29 = scalar_lea.vmem (%p51_p3), %s885_s0, %s620_s25  ;;  %s202_s30 = scalar_lea.vmem (%p51_p3), [#allocation3], %s619_s26 }
  0x11   : > { %v223_v0 = vld [vmem:[%s207_s29] sm:$0xf] (%p51_p3)  ;;  %v225_v1 = vld [vmem:[%s207_s29 + $0x14] sm:$0xf] (%p51_p3) }
  0x12   : > { %224 = vst [vmem:[%s202_s30] sm:$0xf] (%p51_p3), %v223_v0  ;;  %226 = vst [vmem:[%s202_s30 + $0x4] sm:$0xf] (%p51_p3), %v225_v1 }
  0x15 PF: > { %p621_p6 = scmp.ge.s32.totalorder %s761_s19, 1  ;;  %p264_p7 = scmp.lt.s32.totalorder %s761_s19, 6 }
  0x17   : > { %p265_p8 = pnand %p621_p6, %p264_p7 }
  0x18   : > { %s271_s5 = sand.u32 (!%p265_p8), 1, %s745_s15   ;;  %s623_s6 = sshll.u32 (!%p265_p8), %s753_s17, 4 }
  0x19   : > { %268 = sbr.rel (%p265_p8) target bundleno = 303 (0x12f), region = 73  ;;  %s838_s7 = sshll.u32 (!%p265_p8), %s271_s5, 3 }
  0x1a   : > { %p315_p9 = scmp.lt.s32.totalorder (!%p265_p8), %s623_s6, 79  ;;  %s273_s12 = scalar_lea.vmem (!%p265_p8), [#allocation3], %s838_s7 }
  0x1b   : > { %p625_p10 = scmp.ne.s32.totalorder (!%p265_p8), %s753_s17, 0 }
  0x20   : > { %s897_s6 = smov (!%p315_p9, %s623_s6), 79  ;;  %342 = sbr.rel (%p625_p10) target bundleno = 39 (0x27), region = 81 }
  0x21   : > { %s624_s8 = sshll.u32 %s897_s6, 2  ;;  %v763_v2 = vmov (!%p625_p10), 0.0  }
  0x22   : > { %s843_s11 = scalar_lea.vmem %s886_s1, %s624_s8  ;;  %343 = vst [vmem:[#allocation2] sm:$0xff] (!%p625_p10), %v763_v2  ;;  %344 = vst [vmem:[#allocation2 + $0x8] sm:$0xff] (!%p625_p10), %v763_v2 }
  0x27 PF: > { %v714_v3 = vld [vmem:[%s843_s11] sm:$0xff]   ;;  %v764_v4 = vmov 0.0   ;;  %v715_v5 = vld [vmem:[%s843_s11 + $0x8] sm:$0xff]   ;;  %vm765_vm0 = vmmov 0   ;;  %v716_v6 = vld [vmem:[%s843_s11 + $0x10] sm:$0xff]   ;;  %p635_p11 = scmp.ne.s32.totalorder %s753_s17, 4 }
  0x28   : > { %651 = vmatprep.subr.bf16.mxu0 %v764_v4  ;;  %667 = vmatprep.mubr.msk.bf16.mxu0 %vm765_vm0, %v764_v4  ;;  %v717_v7 = vld [vmem:[%s843_s11 + $0x18] sm:$0xff]   ;;  %v718_v8 = vld [vmem:[%s843_s11 + $0x20] sm:$0xff]   ;;  %v719_v9 = vld [vmem:[%s843_s11 + $0x28] sm:$0xff]  }
  0x29   : > { %652 = vmatpush3.bf16.msra.mxu0 %v714_v3  ;;  %v720_v10 = vld [vmem:[%s843_s11 + $0x30] sm:$0xff]   ;;  %v721_v11 = vld [vmem:[%s843_s11 + $0x38] sm:$0xff]   ;;  %v345_v13 = vld [vmem:[#allocation2] sm:$0xff] }
  0x2a   : > { %653 = vmatprep.subr.bf16.mxu0 %v764_v4  ;;  %v722_v12 = vld [vmem:[%s273_s12] sm:$0xff]   ;;  %v346_v15 = vld [vmem:[#allocation2 + $0x8] sm:$0xff]  ;;  %v636_v22 = vld [vmem:[%s887_s2] ss:$0 sm:$0xff] (!%p635_p11) }
  0x2b   : > { %v637_v23 = vld [vmem:[%s888_s3] ss:$0 sm:$0xff] (!%p635_p11) }
  0x2d   : > { %654 = vmatpush3.bf16.msra.mxu0 %v715_v5 }
  0x2e   : > { %655 = vmatprep.subr.bf16.mxu0 %v764_v4 }
  0x31   : > { %656 = vmatpush3.bf16.msra.mxu0 %v716_v6 }
  0x32   : > { %657 = vmatprep.subr.bf16.mxu0 %v764_v4 }
  0x35   : > { %658 = vmatpush3.bf16.msra.mxu0 %v717_v7 }
  0x36   : > { %659 = vmatprep.subr.bf16.mxu0 %v764_v4 }
  0x39   : > { %660 = vmatpush3.bf16.msra.mxu0 %v718_v8 }
  0x3a   : > { %661 = vmatprep.subr.bf16.mxu0 %v764_v4 }
  0x3d   : > { %662 = vmatpush3.bf16.msra.mxu0 %v719_v9 }
  0x3e   : > { %663 = vmatprep.subr.bf16.mxu0 %v764_v4 }
  0x41   : > { %664 = vmatpush3.bf16.msra.mxu0 %v720_v10 }
  0x42   : > { %665 = vmatprep.subr.bf16.mxu0 %v764_v4 }
  0x45   : > { %666 = vmatpush3.bf16.msra.mxu0 %v721_v11 }
  0x48   : > { %668 = vmatmul.mubr.bf16.vlgmr.msra.gmra.mrb[0].mxu0 %v722_v12 }
 0x11a   : > { %467 = sbr.rel (%p635_p11) target bundleno = 303 (0x12f), region = 85 }
 0x11b   : > { %v453_v14 = vpop.f32.mrb[0].mxu0 }
 0x11c   : > { %v460_v16 = vadd.f32 %v453_v14, %v345_v13  ;;  %v669_v17 = vpop.f32.mrb[1].mxu0 }
 0x11d   : > { %v456_v18 = vpop.f32.mrb[2].mxu0 }
 0x11e   : > { %462 = vst [vmem:[#allocation2] sm:$0xff] %v460_v16  ;;  %v461_v19 = vadd.f32 %v456_v18, %v346_v15  ;;  %v670_v20 = vpop.f32.mrb[3].mxu0 }
 0x120   : > { %463 = vst [vmem:[#allocation2 + $0x8] sm:$0xff] %v461_v19 }
 0x125   : > { %v468_v21 = vld [vmem:[#allocation2] sm:$0xff] }
 0x126   : > { %v477_v24 = vmul.f32 %v636_v22, %v468_v21 }
 0x127   : > { %v469_v25 = vld [vmem:[#allocation2 + $0x8] sm:$0xff] }
 0x128   : > { %v478_v26 = vmul.f32 %v636_v22, %v469_v25  ;;  %v486_v27 = vadd.f32 %v637_v23, %v477_v24 }
 0x12a   : > { %v487_v28 = vadd.f32 %v637_v23, %v478_v26  ;;  %v488_v29 = vmax.f32 %v486_v27, 0.0 }
 0x12c   : > { %v489_v30 = vmax.f32 %v487_v28, 0.0  ;;  %490 = vst [vmem:[%s889_s4] sm:$0xff] %v488_v29 }
 0x12e   : > { %491 = vst [vmem:[%s889_s4 + $0x8] sm:$0xff] %v489_v30 }
 0x12f PF: > { %s14_s19 = sadd.s32 1, %s761_s19   ;;  %s890_s15 = smov %s749_s16 }
 0x130   : > { %p11_p12 = scmp.ge.s32.totalorder %s14_s19, 7   ;;  %s891_s16 = smov %s826_s23 }
 0x131   : > { %s892_s17 = smov %s757_s18  ;;  %s893_s18 = smov %s895_s20 }
 0x132   :  { %13 = sbr.rel (!%p11_p12) target bundleno = 3 (0x3), region = 129 }

// kernel: _lambda_.38
= control target key start
LH: loop header
LB: loop body
LE: loop exit
PB: predicated region body
PF: predicated region fallthrough
CT: control target
= control target key end

     0   :  { %s789_s15 = smov 0   ;;  %s791_s16 = smov 0   ;;  %s883_s0 = inlined_call_operand.vmem [shape: bf16[16,1152], index: 0, kind: input, shape index: {}]   ;;  %s884_s1 = inlined_call_operand.vmem [shape: bf16[1152,128], index: 1, kind: input, shape index: {}]   ;;  %s885_s2 = inlined_call_operand.vmem [shape: f32[1,128], index: 2, kind: input, shape index: {}]   ;;  %s886_s3 = inlined_call_operand.vmem [shape: f32[1,128], index: 3, kind: input, shape index: {}]   ;;  %s887_s4 = inlined_call_operand.vmem [shape: f32[16,128], index: 4, kind: output, shape index: {}]  }
   0x1   :  { %s793_s17 = smov 0   ;;  %s795_s18 = smov 0  }
   0x2   :  { %s797_s19 = smov 0  }
   0x3 LB: > { %s26_s20 = sadd.s32 1, %s755_s18  ;;  %p49_p1 = scmp.ne.s32.totalorder %s747_s16, %s743_s15  ;;  %s759_s19 = sphi %s797_s19, %s14_s19   ;;  %s755_s18 = sphi %s795_s18, %s891_s18   ;;  %s751_s17 = sphi %s793_s17, %s890_s17   ;;  %s747_s16 = sphi %s791_s16, %s889_s16   ;;  %s743_s15 = sphi %s789_s15, %s888_s15  }
   0x4   : > { %p27_p0 = scmp.ge.s32.totalorder %s26_s20, 9  ;;  %p50_p2 = scmp.eq.s32.totalorder %s759_s19, 0 }
   0x5   : > { %s42_s22 = sadd.s32 1, %s747_s16  ;;  %p616_p5 = scmp.ge.s32.totalorder %s759_s19, 9 }
   0x6   : > { %s893_s20 = smov (%p27_p0, %s26_s20), 0  ;;  %p51_p3 = por %p50_p2, %p49_p1 }
   0x7   : > { %s38_s21 = ssub.s32 %s755_s18, %s893_s20  ;;  %195 = sbr.rel (%p616_p5) target bundleno = 21 (0x15), region = 24 }
   0x8   : > { %p40_p4 = scmp.eq.s32.totalorder %s38_s21, 0 }
   0xa   : > { %s824_s23 = scalar_select %p40_p4, %s747_s16, %s42_s22  }
   0xe   : > { %198 = sbr.rel (!%p51_p3) target bundleno = 21 (0x15), region = 28  ;;  %s200_s24 = sand.u32 (%p51_p3), 1, %s747_s16  }
   0xf   : > { %s618_s25 = sshll.u32 (%p51_p3), %s755_s18, 2  ;;  %s617_s26 = sshll.u32 (%p51_p3), %s200_s24, 3 }
  0x10   : > { %s207_s29 = scalar_lea.vmem (%p51_p3), %s883_s0, %s618_s25  ;;  %s202_s30 = scalar_lea.vmem (%p51_p3), [#allocation3], %s617_s26 }
  0x11   : > { %v223_v0 = vld [vmem:[%s207_s29] sm:$0xf] (%p51_p3)  ;;  %v225_v1 = vld [vmem:[%s207_s29 + $0x24] sm:$0xf] (%p51_p3) }
  0x12   : > { %224 = vst [vmem:[%s202_s30] sm:$0xf] (%p51_p3), %v223_v0  ;;  %226 = vst [vmem:[%s202_s30 + $0x4] sm:$0xf] (%p51_p3), %v225_v1 }
  0x15 PF: > { %p619_p6 = scmp.ge.s32.totalorder %s759_s19, 1  ;;  %p264_p7 = scmp.lt.s32.totalorder %s759_s19, 10 }
  0x17   : > { %p265_p8 = pnand %p619_p6, %p264_p7 }
  0x18   : > { %s271_s5 = sand.u32 (!%p265_p8), 1, %s743_s15   ;;  %s621_s6 = sshll.u32 (!%p265_p8), %s751_s17, 4 }
  0x19   : > { %268 = sbr.rel (%p265_p8) target bundleno = 301 (0x12d), region = 73  ;;  %s836_s7 = sshll.u32 (!%p265_p8), %s271_s5, 3 }
  0x1a   : > { %p315_p9 = scmp.lt.s32.totalorder (!%p265_p8), %s621_s6, 143  ;;  %s273_s12 = scalar_lea.vmem (!%p265_p8), [#allocation3], %s836_s7 }
  0x1b   : > { %p623_p10 = scmp.ne.s32.totalorder (!%p265_p8), %s751_s17, 0 }
  0x20   : > { %s895_s6 = smov (!%p315_p9, %s621_s6), 143  ;;  %342 = sbr.rel (%p623_p10) target bundleno = 39 (0x27), region = 81 }
  0x21   : > { %s622_s8 = sshll.u32 %s895_s6, 2  ;;  %v761_v2 = vmov (!%p623_p10), 0.0  }
  0x22   : > { %s841_s11 = scalar_lea.vmem %s884_s1, %s622_s8  ;;  %343 = vst [vmem:[#allocation2] sm:$0xff] (!%p623_p10), %v761_v2  ;;  %344 = vst [vmem:[#allocation2 + $0x8] sm:$0xff] (!%p623_p10), %v761_v2 }
  0x27 PF: > { %v712_v3 = vld [vmem:[%s841_s11] sm:$0xff]   ;;  %v762_v4 = vmov 0.0   ;;  %v713_v5 = vld [vmem:[%s841_s11 + $0x8] sm:$0xff]   ;;  %vm763_vm0 = vmmov 0   ;;  %v714_v6 = vld [vmem:[%s841_s11 + $0x10] sm:$0xff]   ;;  %p633_p11 = scmp.ne.s32.totalorder %s751_s17, 8 }
  0x28   : > { %649 = vmatprep.subr.bf16.mxu0 %v762_v4  ;;  %665 = vmatprep.mubr.msk.bf16.mxu0 %vm763_vm0, %v762_v4  ;;  %v715_v7 = vld [vmem:[%s841_s11 + $0x18] sm:$0xff]   ;;  %v716_v8 = vld [vmem:[%s841_s11 + $0x20] sm:$0xff]   ;;  %v717_v9 = vld [vmem:[%s841_s11 + $0x28] sm:$0xff]  }
  0x29   : > { %650 = vmatpush3.bf16.msra.mxu0 %v712_v3  ;;  %v718_v10 = vld [vmem:[%s841_s11 + $0x30] sm:$0xff]   ;;  %v719_v11 = vld [vmem:[%s841_s11 + $0x38] sm:$0xff]   ;;  %v345_v13 = vld [vmem:[#allocation2] sm:$0xff] }
  0x2a   : > { %651 = vmatprep.subr.bf16.mxu0 %v762_v4  ;;  %v720_v12 = vld [vmem:[%s273_s12] sm:$0xff]   ;;  %v346_v15 = vld [vmem:[#allocation2 + $0x8] sm:$0xff]  ;;  %v634_v22 = vld [vmem:[%s885_s2] ss:$0 sm:$0xff] (!%p633_p11) }
  0x2b   : > { %v635_v23 = vld [vmem:[%s886_s3] ss:$0 sm:$0xff] (!%p633_p11) }
  0x2d   : > { %652 = vmatpush3.bf16.msra.mxu0 %v713_v5 }
  0x2e   : > { %653 = vmatprep.subr.bf16.mxu0 %v762_v4 }
  0x31   : > { %654 = vmatpush3.bf16.msra.mxu0 %v714_v6 }
  0x32   : > { %655 = vmatprep.subr.bf16.mxu0 %v762_v4 }
  0x35   : > { %656 = vmatpush3.bf16.msra.mxu0 %v715_v7 }
  0x36   : > { %657 = vmatprep.subr.bf16.mxu0 %v762_v4 }
  0x39   : > { %658 = vmatpush3.bf16.msra.mxu0 %v716_v8 }
  0x3a   : > { %659 = vmatprep.subr.bf16.mxu0 %v762_v4 }
  0x3d   : > { %660 = vmatpush3.bf16.msra.mxu0 %v717_v9 }
  0x3e   : > { %661 = vmatprep.subr.bf16.mxu0 %v762_v4 }
  0x41   : > { %662 = vmatpush3.bf16.msra.mxu0 %v718_v10 }
  0x42   : > { %663 = vmatprep.subr.bf16.mxu0 %v762_v4 }
  0x45   : > { %664 = vmatpush3.bf16.msra.mxu0 %v719_v11 }
  0x48   : > { %666 = vmatmul.mubr.bf16.vlgmr.msra.gmra.mrb[0].mxu0 %v720_v12 }
 0x11a   : > { %467 = sbr.rel (%p633_p11) target bundleno = 301 (0x12d), region = 85 }
 0x11b   : > { %v453_v14 = vpop.f32.mrb[0].mxu0 }
 0x11c   : > { %v460_v16 = vadd.f32 %v453_v14, %v345_v13  ;;  %v667_v17 = vpop.f32.mrb[1].mxu0 }
 0x11d   : > { %v456_v18 = vpop.f32.mrb[2].mxu0 }
 0x11e   : > { %462 = vst [vmem:[#allocation2] sm:$0xff] %v460_v16  ;;  %v461_v19 = vadd.f32 %v456_v18, %v346_v15  ;;  %v668_v20 = vpop.f32.mrb[3].mxu0 }
 0x120   : > { %463 = vst [vmem:[#allocation2 + $0x8] sm:$0xff] %v461_v19 }
 0x125   : > { %v468_v21 = vld [vmem:[#allocation2] sm:$0xff] }
 0x126   : > { %v477_v24 = vmul.f32 %v634_v22, %v468_v21 }
 0x127   : > { %v469_v25 = vld [vmem:[#allocation2 + $0x8] sm:$0xff] }
 0x128   : > { %v478_v26 = vmul.f32 %v634_v22, %v469_v25  ;;  %v486_v27 = vadd.f32 %v635_v23, %v477_v24 }
 0x12a   : > { %v487_v28 = vadd.f32 %v635_v23, %v478_v26  ;;  %488 = vst [vmem:[%s887_s4] sm:$0xff] %v486_v27 }
 0x12c   : > { %489 = vst [vmem:[%s887_s4 + $0x8] sm:$0xff] %v487_v28 }
 0x12d PF: > { %s14_s19 = sadd.s32 1, %s759_s19   ;;  %s888_s15 = smov %s747_s16 }
 0x12e   : > { %p11_p12 = scmp.ge.s32.totalorder %s14_s19, 11   ;;  %s889_s16 = smov %s824_s23 }
 0x12f   : > { %s890_s17 = smov %s755_s18  ;;  %s891_s18 = smov %s893_s20 }
 0x130   :  { %13 = sbr.rel (!%p11_p12) target bundleno = 3 (0x3), region = 129 }

// kernel: _lambda_.41
= control target key start
LH: loop header
LB: loop body
LE: loop exit
PB: predicated region body
PF: predicated region fallthrough
CT: control target
= control target key end

     0   :  { %s791_s15 = smov 0   ;;  %s793_s16 = smov 0   ;;  %s885_s0 = inlined_call_operand.vmem [shape: bf16[16,1152], index: 0, kind: input, shape index: {}]   ;;  %s886_s1 = inlined_call_operand.vmem [shape: bf16[1152,128], index: 1, kind: input, shape index: {}]   ;;  %s887_s2 = inlined_call_operand.vmem [shape: f32[1,128], index: 2, kind: input, shape index: {}]   ;;  %s888_s3 = inlined_call_operand.vmem [shape: f32[1,128], index: 3, kind: input, shape index: {}]   ;;  %s889_s4 = inlined_call_operand.vmem [shape: f32[16,128], index: 4, kind: output, shape index: {}]  }
   0x1   :  { %s795_s17 = smov 0   ;;  %s797_s18 = smov 0  }
   0x2   :  { %s799_s19 = smov 0  }
   0x3 LB: > { %s26_s20 = sadd.s32 1, %s757_s18  ;;  %p49_p1 = scmp.ne.s32.totalorder %s749_s16, %s745_s15  ;;  %s761_s19 = sphi %s799_s19, %s14_s19   ;;  %s757_s18 = sphi %s797_s18, %s893_s18   ;;  %s753_s17 = sphi %s795_s17, %s892_s17   ;;  %s749_s16 = sphi %s793_s16, %s891_s16   ;;  %s745_s15 = sphi %s791_s15, %s890_s15  }
   0x4   : > { %p27_p0 = scmp.ge.s32.totalorder %s26_s20, 9  ;;  %p50_p2 = scmp.eq.s32.totalorder %s761_s19, 0 }
   0x5   : > { %s42_s22 = sadd.s32 1, %s749_s16  ;;  %p618_p5 = scmp.ge.s32.totalorder %s761_s19, 9 }
   0x6   : > { %s895_s20 = smov (%p27_p0, %s26_s20), 0  ;;  %p51_p3 = por %p50_p2, %p49_p1 }
   0x7   : > { %s38_s21 = ssub.s32 %s757_s18, %s895_s20  ;;  %195 = sbr.rel (%p618_p5) target bundleno = 21 (0x15), region = 24 }
   0x8   : > { %p40_p4 = scmp.eq.s32.totalorder %s38_s21, 0 }
   0xa   : > { %s826_s23 = scalar_select %p40_p4, %s749_s16, %s42_s22  }
   0xe   : > { %198 = sbr.rel (!%p51_p3) target bundleno = 21 (0x15), region = 28  ;;  %s200_s24 = sand.u32 (%p51_p3), 1, %s749_s16  }
   0xf   : > { %s620_s25 = sshll.u32 (%p51_p3), %s757_s18, 2  ;;  %s619_s26 = sshll.u32 (%p51_p3), %s200_s24, 3 }
  0x10   : > { %s207_s29 = scalar_lea.vmem (%p51_p3), %s885_s0, %s620_s25  ;;  %s202_s30 = scalar_lea.vmem (%p51_p3), [#allocation3], %s619_s26 }
  0x11   : > { %v223_v0 = vld [vmem:[%s207_s29] sm:$0xf] (%p51_p3)  ;;  %v225_v1 = vld [vmem:[%s207_s29 + $0x24] sm:$0xf] (%p51_p3) }
  0x12   : > { %224 = vst [vmem:[%s202_s30] sm:$0xf] (%p51_p3), %v223_v0  ;;  %226 = vst [vmem:[%s202_s30 + $0x4] sm:$0xf] (%p51_p3), %v225_v1 }
  0x15 PF: > { %p621_p6 = scmp.ge.s32.totalorder %s761_s19, 1  ;;  %p264_p7 = scmp.lt.s32.totalorder %s761_s19, 10 }
  0x17   : > { %p265_p8 = pnand %p621_p6, %p264_p7 }
  0x18   : > { %s271_s5 = sand.u32 (!%p265_p8), 1, %s745_s15   ;;  %s623_s6 = sshll.u32 (!%p265_p8), %s753_s17, 4 }
  0x19   : > { %268 = sbr.rel (%p265_p8) target bundleno = 303 (0x12f), region = 73  ;;  %s838_s7 = sshll.u32 (!%p265_p8), %s271_s5, 3 }
  0x1a   : > { %p315_p9 = scmp.lt.s32.totalorder (!%p265_p8), %s623_s6, 143  ;;  %s273_s12 = scalar_lea.vmem (!%p265_p8), [#allocation3], %s838_s7 }
  0x1b   : > { %p625_p10 = scmp.ne.s32.totalorder (!%p265_p8), %s753_s17, 0 }
  0x20   : > { %s897_s6 = smov (!%p315_p9, %s623_s6), 143  ;;  %342 = sbr.rel (%p625_p10) target bundleno = 39 (0x27), region = 81 }
  0x21   : > { %s624_s8 = sshll.u32 %s897_s6, 2  ;;  %v763_v2 = vmov (!%p625_p10), 0.0  }
  0x22   : > { %s843_s11 = scalar_lea.vmem %s886_s1, %s624_s8  ;;  %343 = vst [vmem:[#allocation2] sm:$0xff] (!%p625_p10), %v763_v2  ;;  %344 = vst [vmem:[#allocation2 + $0x8] sm:$0xff] (!%p625_p10), %v763_v2 }
  0x27 PF: > { %v714_v3 = vld [vmem:[%s843_s11] sm:$0xff]   ;;  %v764_v4 = vmov 0.0   ;;  %v715_v5 = vld [vmem:[%s843_s11 + $0x8] sm:$0xff]   ;;  %vm765_vm0 = vmmov 0   ;;  %v716_v6 = vld [vmem:[%s843_s11 + $0x10] sm:$0xff]   ;;  %p635_p11 = scmp.ne.s32.totalorder %s753_s17, 8 }
  0x28   : > { %651 = vmatprep.subr.bf16.mxu0 %v764_v4  ;;  %667 = vmatprep.mubr.msk.bf16.mxu0 %vm765_vm0, %v764_v4  ;;  %v717_v7 = vld [vmem:[%s843_s11 + $0x18] sm:$0xff]   ;;  %v718_v8 = vld [vmem:[%s843_s11 + $0x20] sm:$0xff]   ;;  %v719_v9 = vld [vmem:[%s843_s11 + $0x28] sm:$0xff]  }
  0x29   : > { %652 = vmatpush3.bf16.msra.mxu0 %v714_v3  ;;  %v720_v10 = vld [vmem:[%s843_s11 + $0x30] sm:$0xff]   ;;  %v721_v11 = vld [vmem:[%s843_s11 + $0x38] sm:$0xff]   ;;  %v345_v13 = vld [vmem:[#allocation2] sm:$0xff] }
  0x2a   : > { %653 = vmatprep.subr.bf16.mxu0 %v764_v4  ;;  %v722_v12 = vld [vmem:[%s273_s12] sm:$0xff]   ;;  %v346_v15 = vld [vmem:[#allocation2 + $0x8] sm:$0xff]  ;;  %v636_v22 = vld [vmem:[%s887_s2] ss:$0 sm:$0xff] (!%p635_p11) }
  0x2b   : > { %v637_v23 = vld [vmem:[%s888_s3] ss:$0 sm:$0xff] (!%p635_p11) }
  0x2d   : > { %654 = vmatpush3.bf16.msra.mxu0 %v715_v5 }
  0x2e   : > { %655 = vmatprep.subr.bf16.mxu0 %v764_v4 }
  0x31   : > { %656 = vmatpush3.bf16.msra.mxu0 %v716_v6 }
  0x32   : > { %657 = vmatprep.subr.bf16.mxu0 %v764_v4 }
  0x35   : > { %658 = vmatpush3.bf16.msra.mxu0 %v717_v7 }
  0x36   : > { %659 = vmatprep.subr.bf16.mxu0 %v764_v4 }
  0x39   : > { %660 = vmatpush3.bf16.msra.mxu0 %v718_v8 }
  0x3a   : > { %661 = vmatprep.subr.bf16.mxu0 %v764_v4 }
  0x3d   : > { %662 = vmatpush3.bf16.msra.mxu0 %v719_v9 }
  0x3e   : > { %663 = vmatprep.subr.bf16.mxu0 %v764_v4 }
  0x41   : > { %664 = vmatpush3.bf16.msra.mxu0 %v720_v10 }
  0x42   : > { %665 = vmatprep.subr.bf16.mxu0 %v764_v4 }
  0x45   : > { %666 = vmatpush3.bf16.msra.mxu0 %v721_v11 }
  0x48   : > { %668 = vmatmul.mubr.bf16.vlgmr.msra.gmra.mrb[0].mxu0 %v722_v12 }
 0x11a   : > { %467 = sbr.rel (%p635_p11) target bundleno = 303 (0x12f), region = 85 }
 0x11b   : > { %v453_v14 = vpop.f32.mrb[0].mxu0 }
 0x11c   : > { %v460_v16 = vadd.f32 %v453_v14, %v345_v13  ;;  %v669_v17 = vpop.f32.mrb[1].mxu0 }
 0x11d   : > { %v456_v18 = vpop.f32.mrb[2].mxu0 }
 0x11e   : > { %462 = vst [vmem:[#allocation2] sm:$0xff] %v460_v16  ;;  %v461_v19 = vadd.f32 %v456_v18, %v346_v15  ;;  %v670_v20 = vpop.f32.mrb[3].mxu0 }
 0x120   : > { %463 = vst [vmem:[#allocation2 + $0x8] sm:$0xff] %v461_v19 }
 0x125   : > { %v468_v21 = vld [vmem:[#allocation2] sm:$0xff] }
 0x126   : > { %v477_v24 = vmul.f32 %v636_v22, %v468_v21 }
 0x127   : > { %v469_v25 = vld [vmem:[#allocation2 + $0x8] sm:$0xff] }
 0x128   : > { %v478_v26 = vmul.f32 %v636_v22, %v469_v25  ;;  %v486_v27 = vadd.f32 %v637_v23, %v477_v24 }
 0x12a   : > { %v487_v28 = vadd.f32 %v637_v23, %v478_v26  ;;  %v488_v29 = vmax.f32 %v486_v27, 0.0 }
 0x12c   : > { %v489_v30 = vmax.f32 %v487_v28, 0.0  ;;  %490 = vst [vmem:[%s889_s4] sm:$0xff] %v488_v29 }
 0x12e   : > { %491 = vst [vmem:[%s889_s4 + $0x8] sm:$0xff] %v489_v30 }
 0x12f PF: > { %s14_s19 = sadd.s32 1, %s761_s19   ;;  %s890_s15 = smov %s749_s16 }
 0x130   : > { %p11_p12 = scmp.ge.s32.totalorder %s14_s19, 11   ;;  %s891_s16 = smov %s826_s23 }
 0x131   : > { %s892_s17 = smov %s757_s18  ;;  %s893_s18 = smov %s895_s20 }
 0x132   :  { %13 = sbr.rel (!%p11_p12) target bundleno = 3 (0x3), region = 129 }

// kernel: _lambda_.39
= control target key start
LH: loop header
LB: loop body
LE: loop exit
PB: predicated region body
PF: predicated region fallthrough
CT: control target
= control target key end

     0   :  { %v223_v0 = vmov 0.0   ;;  %vm224_vm0 = vmmov 0   ;;  %s289_s1 = inlined_call_operand.vmem [shape: bf16[128,128], index: 1, kind: input, shape index: {}]   ;;  %s290_s0 = inlined_call_operand.vmem [shape: bf16[16,128], index: 0, kind: input, shape index: {}]   ;;  %s291_s2 = inlined_call_operand.vmem [shape: f32[1,128], index: 2, kind: input, shape index: {}]   ;;  %s292_s3 = inlined_call_operand.vmem [shape: f32[1,128], index: 3, kind: input, shape index: {}]   ;;  %s293_s4 = inlined_call_operand.vmem [shape: f32[16,128], index: 4, kind: output, shape index: {}]  }
   0x1   :  { %192 = vmatprep.subr.bf16.mxu0 %v223_v0  ;;  %v214_v1 = vld [vmem:[%s289_s1] sm:$0xff]   ;;  %208 = vmatprep.mubr.msk.bf16.mxu0 %vm224_vm0, %v223_v0  ;;  %v215_v2 = vld [vmem:[%s289_s1 + $0x8] sm:$0xff]   ;;  %v216_v3 = vld [vmem:[%s289_s1 + $0x10] sm:$0xff]  }
   0x2   :  { %193 = vmatpush3.bf16.msra.mxu0 %v214_v1  ;;  %v217_v4 = vld [vmem:[%s289_s1 + $0x18] sm:$0xff]   ;;  %v218_v5 = vld [vmem:[%s289_s1 + $0x20] sm:$0xff]   ;;  %v219_v6 = vld [vmem:[%s289_s1 + $0x28] sm:$0xff]  }
   0x3   :  { %194 = vmatprep.subr.bf16.mxu0 %v223_v0  ;;  %v220_v7 = vld [vmem:[%s289_s1 + $0x30] sm:$0xff]   ;;  %v221_v8 = vld [vmem:[%s289_s1 + $0x38] sm:$0xff]   ;;  %v222_v9 = vld [vmem:[%s290_s0] sm:$0xff]  }
   0x4   :  { %v181_v10 = vld [vmem:[%s291_s2] ss:$0 sm:$0xff] }
   0x5   :  { %v182_v12 = vld [vmem:[%s292_s3] ss:$0 sm:$0xff] }
   0x6   :  { %195 = vmatpush3.bf16.msra.mxu0 %v215_v2 }
   0x7   :  { %196 = vmatprep.subr.bf16.mxu0 %v223_v0 }
   0xa   :  { %197 = vmatpush3.bf16.msra.mxu0 %v216_v3 }
   0xb   :  { %198 = vmatprep.subr.bf16.mxu0 %v223_v0 }
   0xe   :  { %199 = vmatpush3.bf16.msra.mxu0 %v217_v4 }
   0xf   :  { %200 = vmatprep.subr.bf16.mxu0 %v223_v0 }
  0x12   :  { %201 = vmatpush3.bf16.msra.mxu0 %v218_v5 }
  0x13   :  { %202 = vmatprep.subr.bf16.mxu0 %v223_v0 }
  0x16   :  { %203 = vmatpush3.bf16.msra.mxu0 %v219_v6 }
  0x17   :  { %204 = vmatprep.subr.bf16.mxu0 %v223_v0 }
  0x1a   :  { %205 = vmatpush3.bf16.msra.mxu0 %v220_v7 }
  0x1b   :  { %206 = vmatprep.subr.bf16.mxu0 %v223_v0 }
  0x1e   :  { %207 = vmatpush3.bf16.msra.mxu0 %v221_v8 }
  0x21   :  { %209 = vmatmul.mubr.bf16.vlgmr.msra.gmra.mrb[0].mxu0 %v222_v9 }
  0xf4   :  { %v132_v11 = vpop.f32.mrb[0].mxu0 }
  0xf5   :  { %v155_v13 = vmul.f32 %v181_v10, %v132_v11  ;;  %v210_v14 = vpop.f32.mrb[1].mxu0 }
  0xf6   :  { %v135_v15 = vpop.f32.mrb[2].mxu0 }
  0xf7   :  { %v164_v16 = vadd.f32 %v182_v12, %v155_v13  ;;  %v156_v17 = vmul.f32 %v181_v10, %v135_v15  ;;  %v211_v18 = vpop.f32.mrb[3].mxu0 }
  0xf9   :  { %166 = vst [vmem:[%s293_s4] sm:$0xff] %v164_v16  ;;  %v165_v19 = vadd.f32 %v182_v12, %v156_v17 }
  0xfb   :  { %167 = vst [vmem:[%s293_s4 + $0x8] sm:$0xff] %v165_v19 }

// kernel: _lambda_.44
= control target key start
LH: loop header
LB: loop body
LE: loop exit
PB: predicated region body
PF: predicated region fallthrough
CT: control target
= control target key end

     0   :  { %s881_s15 = smov 0   ;;  %s883_s16 = smov 0   ;;  %s989_s0 = inlined_call_operand.vmem [shape: bf16[16,1152], index: 0, kind: input, shape index: {}]   ;;  %s990_s1 = inlined_call_operand.vmem [shape: bf16[1152,256], index: 1, kind: input, shape index: {}]   ;;  %s991_s2 = inlined_call_operand.vmem [shape: f32[1,256], index: 2, kind: input, shape index: {}]   ;;  %s992_s3 = inlined_call_operand.vmem [shape: f32[1,256], index: 3, kind: input, shape index: {}]   ;;  %s993_s4 = inlined_call_operand.vmem [shape: f32[16,256], index: 4, kind: output, shape index: {}]  }
   0x1   :  { %s885_s17 = smov 0   ;;  %s887_s18 = smov 0  }
   0x2   :  { %s889_s19 = smov 0  }
   0x3 LB: > { %s26_s20 = sadd.s32 1, %s848_s18  ;;  %p49_p1 = scmp.ne.s32.totalorder %s840_s16, %s836_s15  ;;  %s852_s19 = sphi %s889_s19, %s14_s19   ;;  %s848_s18 = sphi %s887_s18, %s997_s18   ;;  %s844_s17 = sphi %s885_s17, %s996_s17   ;;  %s840_s16 = sphi %s883_s16, %s995_s16   ;;  %s836_s15 = sphi %s881_s15, %s994_s15  }
   0x4   : > { %p27_p0 = scmp.ge.s32.totalorder %s26_s20, 9  ;;  %p50_p2 = scmp.eq.s32.totalorder %s852_s19, 0 }
   0x5   : > { %s42_s22 = sadd.s32 1, %s840_s16  ;;  %p715_p5 = scmp.ge.s32.totalorder %s852_s19, 9 }
   0x6   : > { %s999_s20 = smov (%p27_p0, %s26_s20), 0  ;;  %p51_p3 = por %p50_p2, %p49_p1 }
   0x7   : > { %s38_s21 = ssub.s32 %s848_s18, %s999_s20  ;;  %199 = sbr.rel (%p715_p5) target bundleno = 21 (0x15), region = 24 }
   0x8   : > { %p40_p4 = scmp.eq.s32.totalorder %s38_s21, 0 }
   0xa   : > { %s916_s23 = scalar_select %p40_p4, %s840_s16, %s42_s22  }
   0xe   : > { %202 = sbr.rel (!%p51_p3) target bundleno = 21 (0x15), region = 28  ;;  %s204_s24 = sand.u32 (%p51_p3), 1, %s840_s16  }
   0xf   : > { %s717_s25 = sshll.u32 (%p51_p3), %s848_s18, 2  ;;  %s716_s26 = sshll.u32 (%p51_p3), %s204_s24, 3 }
  0x10   : > { %s211_s29 = scalar_lea.vmem (%p51_p3), %s989_s0, %s717_s25  ;;  %s206_s30 = scalar_lea.vmem (%p51_p3), [#allocation3], %s716_s26 }
  0x11   : > { %v227_v0 = vld [vmem:[%s211_s29] sm:$0xf] (%p51_p3)  ;;  %v229_v1 = vld [vmem:[%s211_s29 + $0x24] sm:$0xf] (%p51_p3) }
  0x12   : > { %228 = vst [vmem:[%s206_s30] sm:$0xf] (%p51_p3), %v227_v0  ;;  %230 = vst [vmem:[%s206_s30 + $0x4] sm:$0xf] (%p51_p3), %v229_v1 }
  0x15 PF: > { %p718_p6 = scmp.ge.s32.totalorder %s852_s19, 1  ;;  %p271_p7 = scmp.lt.s32.totalorder %s852_s19, 10 }
  0x17   : > { %p272_p8 = pnand %p718_p6, %p271_p7 }
  0x18   : > { %s278_s5 = sand.u32 (!%p272_p8), 1, %s836_s15   ;;  %s720_s6 = sshll.u32 (!%p272_p8), %s844_s17, 4 }
  0x19   : > { %275 = sbr.rel (%p272_p8) target bundleno = 304 (0x130), region = 73  ;;  %s928_s7 = sshll.u32 (!%p272_p8), %s278_s5, 3 }
  0x1a   : > { %p329_p9 = scmp.lt.s32.totalorder (!%p272_p8), %s720_s6, 143  ;;  %s280_s12 = scalar_lea.vmem (!%p272_p8), [#allocation3], %s928_s7 }
  0x1b   : > { %p723_p10 = scmp.ne.s32.totalorder (!%p272_p8), %s844_s17, 0 }
  0x20   : > { %s1001_s6 = smov (!%p329_p9, %s720_s6), 143  ;;  %365 = sbr.rel (%p723_p10) target bundleno = 39 (0x27), region = 81 }
  0x21   : > { %s746_s8 = sshll.u32 %s1001_s6, 3  ;;  %v854_v2 = vmov (!%p723_p10), 0.0  }
  0x22   : > { %s933_s11 = scalar_lea.vmem %s990_s1, %s746_s8  ;;  %366 = vst [vmem:[#allocation2] sm:$0xff] (!%p723_p10), %v854_v2  ;;  %367 = vst [vmem:[#allocation2 + $0x8] sm:$0xff] (!%p723_p10), %v854_v2 }
  0x23   : > { %368 = vst [vmem:[#allocation2 + $0x10] sm:$0xff] (!%p723_p10), %v854_v2  ;;  %369 = vst [vmem:[#allocation2 + $0x18] sm:$0xff] (!%p723_p10), %v854_v2 }
  0x27 PF: > { %v789_v3 = vld [vmem:[%s933_s11 + $0x4] ss:$8 sps:$4 sm:$0xff]   ;;  %v791_v4 = vld [vmem:[%s933_s11] ss:$8 sps:$4 sm:$0xff]   ;;  %v855_v5 = vmov 0   ;;  %p741_p11 = scmp.ne.s32.totalorder %s844_s17, 8 }
  0x28   : > { %510 = vmatprep.mubr.bf16.mxu0 %v855_v5  ;;  %478 = vmatprep.subr.bf16.mxu0 %v789_v3  ;;  %v792_v6 = vld [vmem:[%s933_s11 + $0x14] ss:$8 sps:$4 sm:$0xff]   ;;  %v794_v7 = vld [vmem:[%s933_s11 + $0x10] ss:$8 sps:$4 sm:$0xff]   ;;  %v795_v8 = vld [vmem:[%s933_s11 + $0x24] ss:$8 sps:$4 sm:$0xff]   ;;  %v539_v33 = vlaneseq (!%p741_p11) }
  0x29   : > { %479 = vmatpush1.bf16.msra.mxu0 %v791_v4  ;;  %v797_v9 = vld [vmem:[%s933_s11 + $0x20] ss:$8 sps:$4 sm:$0xff]   ;;  %v798_v10 = vld [vmem:[%s933_s11 + $0x34] ss:$8 sps:$4 sm:$0xff]   ;;  %v800_v11 = vld [vmem:[%s933_s11 + $0x30] ss:$8 sps:$4 sm:$0xff]  }
  0x2a   : > { %480 = vmatprep.subr.bf16.mxu0 %v792_v6  ;;  %v801_v12 = vld [vmem:[%s933_s11 + $0x44] ss:$8 sps:$4 sm:$0xff]   ;;  %v803_v13 = vld [vmem:[%s933_s11 + $0x40] ss:$8 sps:$4 sm:$0xff]   ;;  %v804_v14 = vld [vmem:[%s933_s11 + $0x54] ss:$8 sps:$4 sm:$0xff]  }
  0x2b   : > { %v806_v15 = vld [vmem:[%s933_s11 + $0x50] ss:$8 sps:$4 sm:$0xff]   ;;  %v807_v16 = vld [vmem:[%s933_s11 + $0x64] ss:$8 sps:$4 sm:$0xff]   ;;  %v809_v17 = vld [vmem:[%s933_s11 + $0x60] ss:$8 sps:$4 sm:$0xff]  }
  0x2c   : > { %v810_v18 = vld [vmem:[%s933_s11 + $0x74] ss:$8 sps:$4 sm:$0xff]   ;;  %v812_v19 = vld [vmem:[%s933_s11 + $0x70] ss:$8 sps:$4 sm:$0xff]   ;;  %v813_v20 = vld [vmem:[%s280_s12] sm:$0xff]   ;;  %v540_v34 = vshrl.u32 (!%p741_p11), %v539_v33, 7 }
  0x2d   : > { %481 = vmatpush1.bf16.msra.mxu0 %v794_v7  ;;  %v370_v21 = vld [vmem:[#allocation2] sm:$0xff]  ;;  %v371_v22 = vld [vmem:[#allocation2 + $0x8] sm:$0xff]  ;;  %v372_v24 = vld [vmem:[#allocation2 + $0x10] sm:$0xff] }
  0x2e   : > { %482 = vmatprep.subr.bf16.mxu0 %v795_v8  ;;  %v373_v27 = vld [vmem:[#allocation2 + $0x18] sm:$0xff]  ;;  %v537_v35 = vld [vmem:[%s991_s2] sm:$0x3] (!%p741_p11)  ;;  %v541_v38 = vsub.s32 (!%p741_p11), 0, %v540_v34  ;;  %v545_v39 = vsub.s32 (!%p741_p11), 1, %v540_v34 }
  0x2f   : > { %v553_v36 = vld [vmem:[%s992_s3] sm:$0x3] (!%p741_p11) }
  0x30   : > { %v542_v43 = vrot.slane (!%p741_p11), %v537_v35, %v541_v38  ;;  %v558_v44 = vrot.slane (!%p741_p11), %v553_v36, %v541_v38  ;;  %v546_v45 = vrot.slane (!%p741_p11), %v537_v35, %v545_v39  ;;  %v562_v46 = vrot.slane (!%p741_p11), %v553_v36, %v545_v39 }
  0x31   : > { %483 = vmatpush1.bf16.msra.mxu0 %v797_v9 }
  0x32   : > { %484 = vmatprep.subr.bf16.mxu0 %v798_v10 }
  0x35   : > { %485 = vmatpush1.bf16.msra.mxu0 %v800_v11 }
  0x36   : > { %486 = vmatprep.subr.bf16.mxu0 %v801_v12 }
  0x39   : > { %487 = vmatpush1.bf16.msra.mxu0 %v803_v13 }
  0x3a   : > { %488 = vmatprep.subr.bf16.mxu0 %v804_v14 }
  0x3d   : > { %489 = vmatpush1.bf16.msra.mxu0 %v806_v15 }
  0x3e   : > { %490 = vmatprep.subr.bf16.mxu0 %v807_v16 }
  0x41   : > { %491 = vmatpush1.bf16.msra.mxu0 %v809_v17 }
  0x42   : > { %492 = vmatprep.subr.bf16.mxu0 %v810_v18 }
  0x45   : > { %493 = vmatpush1.bf16.msra.mxu0 %v812_v19 }
  0x48   : > { %511 = vmatmul.mubr.bf16.vlgmr.msra.gmra.mrb[0].mxu0 %v813_v20 }
 0x11b   : > { %v512_v23 = vpop.f32.mrb[0].mxu0  ;;  %532 = sbr.rel (%p741_p11) target bundleno = 304 (0x130), region = 85 }
 0x11c   : > { %v521_v25 = vadd.f32 %v512_v23, %v370_v21  ;;  %v514_v26 = vpop.f32.mrb[1].mxu0 }
 0x11d   : > { %v522_v28 = vadd.f32 %v514_v26, %v371_v22  ;;  %v516_v29 = vpop.f32.mrb[2].mxu0 }
 0x11e   : > { %525 = vst [vmem:[#allocation2] sm:$0xff] %v521_v25  ;;  %v523_v30 = vadd.f32 %v516_v29, %v372_v24  ;;  %v518_v31 = vpop.f32.mrb[3].mxu0 }
 0x11f   : > { %526 = vst [vmem:[#allocation2 + $0x8] sm:$0xff] %v522_v28  ;;  %v524_v32 = vadd.f32 %v518_v31, %v373_v27 }
 0x120   : > { %527 = vst [vmem:[#allocation2 + $0x10] sm:$0xff] %v523_v30 }
 0x121   : > { %528 = vst [vmem:[#allocation2 + $0x18] sm:$0xff] %v524_v32 }
 0x125   : > { %v533_v37 = vld [vmem:[#allocation2] sm:$0xff] }
 0x126   : > { %v534_v40 = vld [vmem:[#allocation2 + $0x8] sm:$0xff]  ;;  %v549_v47 = vmul.f32 %v542_v43, %v533_v37 }
 0x127   : > { %v535_v41 = vld [vmem:[#allocation2 + $0x10] sm:$0xff]  ;;  %v550_v48 = vmul.f32 %v546_v45, %v534_v40 }
 0x128   : > { %v536_v42 = vld [vmem:[#allocation2 + $0x18] sm:$0xff]  ;;  %v551_v49 = vmul.f32 %v542_v43, %v535_v41  ;;  %v565_v51 = vadd.f32 %v558_v44, %v549_v47 }
 0x129   : > { %v552_v50 = vmul.f32 %v546_v45, %v536_v42  ;;  %v566_v52 = vadd.f32 %v562_v46, %v550_v48 }
 0x12a   : > { %v567_v53 = vadd.f32 %v558_v44, %v551_v49  ;;  %v569_v55 = vmax.f32 %v565_v51, 0.0 }
 0x12b   : > { %v568_v54 = vadd.f32 %v562_v46, %v552_v50  ;;  %v570_v56 = vmax.f32 %v566_v52, 0.0 }
 0x12c   : > { %v571_v57 = vmax.f32 %v567_v53, 0.0  ;;  %573 = vst [vmem:[%s993_s4] sm:$0xff] %v569_v55 }
 0x12d   : > { %v572_v58 = vmax.f32 %v568_v54, 0.0  ;;  %574 = vst [vmem:[%s993_s4 + $0x8] sm:$0xff] %v570_v56 }
 0x12e   : > { %575 = vst [vmem:[%s993_s4 + $0x10] sm:$0xff] %v571_v57 }
 0x12f   : > { %576 = vst [vmem:[%s993_s4 + $0x18] sm:$0xff] %v572_v58 }
 0x130 PF: > { %s14_s19 = sadd.s32 1, %s852_s19   ;;  %s994_s15 = smov %s840_s16 }
 0x131   : > { %p11_p12 = scmp.ge.s32.totalorder %s14_s19, 11   ;;  %s995_s16 = smov %s916_s23 }
 0x132   : > { %s996_s17 = smov %s848_s18  ;;  %s997_s18 = smov %s999_s20 }
 0x133   :  { %13 = sbr.rel (!%p11_p12) target bundleno = 3 (0x3), region = 129 }

// kernel: _lambda_.48
= control target key start
LH: loop header
LB: loop body
LE: loop exit
PB: predicated region body
PF: predicated region fallthrough
CT: control target
= control target key end

     0   :  { %s881_s15 = smov 0   ;;  %s883_s16 = smov 0   ;;  %s989_s0 = inlined_call_operand.vmem [shape: bf16[16,2304], index: 0, kind: input, shape index: {}]   ;;  %s990_s1 = inlined_call_operand.vmem [shape: bf16[2304,256], index: 1, kind: input, shape index: {}]   ;;  %s991_s2 = inlined_call_operand.vmem [shape: f32[1,256], index: 2, kind: input, shape index: {}]   ;;  %s992_s3 = inlined_call_operand.vmem [shape: f32[1,256], index: 3, kind: input, shape index: {}]   ;;  %s993_s4 = inlined_call_operand.vmem [shape: f32[16,256], index: 4, kind: output, shape index: {}]  }
   0x1   :  { %s885_s17 = smov 0   ;;  %s887_s18 = smov 0  }
   0x2   :  { %s889_s19 = smov 0  }
   0x3 LB: > { %s26_s20 = sadd.s32 1, %s848_s18  ;;  %p49_p1 = scmp.ne.s32.totalorder %s840_s16, %s836_s15  ;;  %s852_s19 = sphi %s889_s19, %s14_s19   ;;  %s848_s18 = sphi %s887_s18, %s997_s18   ;;  %s844_s17 = sphi %s885_s17, %s996_s17   ;;  %s840_s16 = sphi %s883_s16, %s995_s16   ;;  %s836_s15 = sphi %s881_s15, %s994_s15  }
   0x4   : > { %p27_p0 = scmp.ge.s32.totalorder %s26_s20, 18  ;;  %p50_p2 = scmp.eq.s32.totalorder %s852_s19, 0 }
   0x5   : > { %s42_s22 = sadd.s32 1, %s840_s16  ;;  %p715_p5 = scmp.ge.s32.totalorder %s852_s19, 18 }
   0x6   : > { %s999_s20 = smov (%p27_p0, %s26_s20), 0  ;;  %p51_p3 = por %p50_p2, %p49_p1 }
   0x7   : > { %s38_s21 = ssub.s32 %s848_s18, %s999_s20  ;;  %199 = sbr.rel (%p715_p5) target bundleno = 21 (0x15), region = 24 }
   0x8   : > { %p40_p4 = scmp.eq.s32.totalorder %s38_s21, 0 }
   0xa   : > { %s916_s23 = scalar_select %p40_p4, %s840_s16, %s42_s22  }
   0xe   : > { %202 = sbr.rel (!%p51_p3) target bundleno = 21 (0x15), region = 28  ;;  %s204_s24 = sand.u32 (%p51_p3), 1, %s840_s16  }
   0xf   : > { %s717_s25 = sshll.u32 (%p51_p3), %s848_s18, 2  ;;  %s716_s26 = sshll.u32 (%p51_p3), %s204_s24, 3 }
  0x10   : > { %s211_s29 = scalar_lea.vmem (%p51_p3), %s989_s0, %s717_s25  ;;  %s206_s30 = scalar_lea.vmem (%p51_p3), [#allocation3], %s716_s26 }
  0x11   : > { %v227_v0 = vld [vmem:[%s211_s29] sm:$0xf] (%p51_p3)  ;;  %v229_v1 = vld [vmem:[%s211_s29 + $0x48] sm:$0xf] (%p51_p3) }
  0x12   : > { %228 = vst [vmem:[%s206_s30] sm:$0xf] (%p51_p3), %v227_v0  ;;  %230 = vst [vmem:[%s206_s30 + $0x4] sm:$0xf] (%p51_p3), %v229_v1 }
  0x15 PF: > { %p718_p6 = scmp.ge.s32.totalorder %s852_s19, 1  ;;  %p271_p7 = scmp.lt.s32.totalorder %s852_s19, 19 }
  0x17   : > { %p272_p8 = pnand %p718_p6, %p271_p7 }
  0x18   : > { %s278_s5 = sand.u32 (!%p272_p8), 1, %s836_s15   ;;  %s720_s6 = sshll.u32 (!%p272_p8), %s844_s17, 4 }
  0x19   : > { %275 = sbr.rel (%p272_p8) target bundleno = 304 (0x130), region = 73  ;;  %s928_s7 = sshll.u32 (!%p272_p8), %s278_s5, 3 }
  0x1a   : > { %p329_p9 = scmp.lt.s32.totalorder (!%p272_p8), %s720_s6, 287  ;;  %s280_s12 = scalar_lea.vmem (!%p272_p8), [#allocation3], %s928_s7 }
  0x1b   : > { %p723_p10 = scmp.ne.s32.totalorder (!%p272_p8), %s844_s17, 0 }
  0x20   : > { %s1001_s6 = smov (!%p329_p9, %s720_s6), 287  ;;  %365 = sbr.rel (%p723_p10) target bundleno = 39 (0x27), region = 81 }
  0x21   : > { %s746_s8 = sshll.u32 %s1001_s6, 3  ;;  %v854_v2 = vmov (!%p723_p10), 0.0  }
  0x22   : > { %s933_s11 = scalar_lea.vmem %s990_s1, %s746_s8  ;;  %366 = vst [vmem:[#allocation2] sm:$0xff] (!%p723_p10), %v854_v2  ;;  %367 = vst [vmem:[#allocation2 + $0x8] sm:$0xff] (!%p723_p10), %v854_v2 }
  0x23   : > { %368 = vst [vmem:[#allocation2 + $0x10] sm:$0xff] (!%p723_p10), %v854_v2  ;;  %369 = vst [vmem:[#allocation2 + $0x18] sm:$0xff] (!%p723_p10), %v854_v2 }
  0x27 PF: > { %v789_v3 = vld [vmem:[%s933_s11 + $0x4] ss:$8 sps:$4 sm:$0xff]   ;;  %v791_v4 = vld [vmem:[%s933_s11] ss:$8 sps:$4 sm:$0xff]   ;;  %v855_v5 = vmov 0   ;;  %p741_p11 = scmp.ne.s32.totalorder %s844_s17, 17 }
  0x28   : > { %510 = vmatprep.mubr.bf16.mxu0 %v855_v5  ;;  %478 = vmatprep.subr.bf16.mxu0 %v789_v3  ;;  %v792_v6 = vld [vmem:[%s933_s11 + $0x14] ss:$8 sps:$4 sm:$0xff]   ;;  %v794_v7 = vld [vmem:[%s933_s11 + $0x10] ss:$8 sps:$4 sm:$0xff]   ;;  %v795_v8 = vld [vmem:[%s933_s11 + $0x24] ss:$8 sps:$4 sm:$0xff]   ;;  %v539_v33 = vlaneseq (!%p741_p11) }
  0x29   : > { %479 = vmatpush1.bf16.msra.mxu0 %v791_v4  ;;  %v797_v9 = vld [vmem:[%s933_s11 + $0x20] ss:$8 sps:$4 sm:$0xff]   ;;  %v798_v10 = vld [vmem:[%s933_s11 + $0x34] ss:$8 sps:$4 sm:$0xff]   ;;  %v800_v11 = vld [vmem:[%s933_s11 + $0x30] ss:$8 sps:$4 sm:$0xff]  }
  0x2a   : > { %480 = vmatprep.subr.bf16.mxu0 %v792_v6  ;;  %v801_v12 = vld [vmem:[%s933_s11 + $0x44] ss:$8 sps:$4 sm:$0xff]   ;;  %v803_v13 = vld [vmem:[%s933_s11 + $0x40] ss:$8 sps:$4 sm:$0xff]   ;;  %v804_v14 = vld [vmem:[%s933_s11 + $0x54] ss:$8 sps:$4 sm:$0xff]  }
  0x2b   : > { %v806_v15 = vld [vmem:[%s933_s11 + $0x50] ss:$8 sps:$4 sm:$0xff]   ;;  %v807_v16 = vld [vmem:[%s933_s11 + $0x64] ss:$8 sps:$4 sm:$0xff]   ;;  %v809_v17 = vld [vmem:[%s933_s11 + $0x60] ss:$8 sps:$4 sm:$0xff]  }
  0x2c   : > { %v810_v18 = vld [vmem:[%s933_s11 + $0x74] ss:$8 sps:$4 sm:$0xff]   ;;  %v812_v19 = vld [vmem:[%s933_s11 + $0x70] ss:$8 sps:$4 sm:$0xff]   ;;  %v813_v20 = vld [vmem:[%s280_s12] sm:$0xff]   ;;  %v540_v34 = vshrl.u32 (!%p741_p11), %v539_v33, 7 }
  0x2d   : > { %481 = vmatpush1.bf16.msra.mxu0 %v794_v7  ;;  %v370_v21 = vld [vmem:[#allocation2] sm:$0xff]  ;;  %v371_v22 = vld [vmem:[#allocation2 + $0x8] sm:$0xff]  ;;  %v372_v24 = vld [vmem:[#allocation2 + $0x10] sm:$0xff] }
  0x2e   : > { %482 = vmatprep.subr.bf16.mxu0 %v795_v8  ;;  %v373_v27 = vld [vmem:[#allocation2 + $0x18] sm:$0xff]  ;;  %v537_v35 = vld [vmem:[%s991_s2] sm:$0x3] (!%p741_p11)  ;;  %v541_v38 = vsub.s32 (!%p741_p11), 0, %v540_v34  ;;  %v545_v39 = vsub.s32 (!%p741_p11), 1, %v540_v34 }
  0x2f   : > { %v553_v36 = vld [vmem:[%s992_s3] sm:$0x3] (!%p741_p11) }
  0x30   : > { %v542_v43 = vrot.slane (!%p741_p11), %v537_v35, %v541_v38  ;;  %v558_v44 = vrot.slane (!%p741_p11), %v553_v36, %v541_v38  ;;  %v546_v45 = vrot.slane (!%p741_p11), %v537_v35, %v545_v39  ;;  %v562_v46 = vrot.slane (!%p741_p11), %v553_v36, %v545_v39 }
  0x31   : > { %483 = vmatpush1.bf16.msra.mxu0 %v797_v9 }
  0x32   : > { %484 = vmatprep.subr.bf16.mxu0 %v798_v10 }
  0x35   : > { %485 = vmatpush1.bf16.msra.mxu0 %v800_v11 }
  0x36   : > { %486 = vmatprep.subr.bf16.mxu0 %v801_v12 }
  0x39   : > { %487 = vmatpush1.bf16.msra.mxu0 %v803_v13 }
  0x3a   : > { %488 = vmatprep.subr.bf16.mxu0 %v804_v14 }
  0x3d   : > { %489 = vmatpush1.bf16.msra.mxu0 %v806_v15 }
  0x3e   : > { %490 = vmatprep.subr.bf16.mxu0 %v807_v16 }
  0x41   : > { %491 = vmatpush1.bf16.msra.mxu0 %v809_v17 }
  0x42   : > { %492 = vmatprep.subr.bf16.mxu0 %v810_v18 }
  0x45   : > { %493 = vmatpush1.bf16.msra.mxu0 %v812_v19 }
  0x48   : > { %511 = vmatmul.mubr.bf16.vlgmr.msra.gmra.mrb[0].mxu0 %v813_v20 }
 0x11b   : > { %v512_v23 = vpop.f32.mrb[0].mxu0  ;;  %532 = sbr.rel (%p741_p11) target bundleno = 304 (0x130), region = 85 }
 0x11c   : > { %v521_v25 = vadd.f32 %v512_v23, %v370_v21  ;;  %v514_v26 = vpop.f32.mrb[1].mxu0 }
 0x11d   : > { %v522_v28 = vadd.f32 %v514_v26, %v371_v22  ;;  %v516_v29 = vpop.f32.mrb[2].mxu0 }
 0x11e   : > { %525 = vst [vmem:[#allocation2] sm:$0xff] %v521_v25  ;;  %v523_v30 = vadd.f32 %v516_v29, %v372_v24  ;;  %v518_v31 = vpop.f32.mrb[3].mxu0 }
 0x11f   : > { %526 = vst [vmem:[#allocation2 + $0x8] sm:$0xff] %v522_v28  ;;  %v524_v32 = vadd.f32 %v518_v31, %v373_v27 }
 0x120   : > { %527 = vst [vmem:[#allocation2 + $0x10] sm:$0xff] %v523_v30 }
 0x121   : > { %528 = vst [vmem:[#allocation2 + $0x18] sm:$0xff] %v524_v32 }
 0x125   : > { %v533_v37 = vld [vmem:[#allocation2] sm:$0xff] }
 0x126   : > { %v534_v40 = vld [vmem:[#allocation2 + $0x8] sm:$0xff]  ;;  %v549_v47 = vmul.f32 %v542_v43, %v533_v37 }
 0x127   : > { %v535_v41 = vld [vmem:[#allocation2 + $0x10] sm:$0xff]  ;;  %v550_v48 = vmul.f32 %v546_v45, %v534_v40 }
 0x128   : > { %v536_v42 = vld [vmem:[#allocation2 + $0x18] sm:$0xff]  ;;  %v551_v49 = vmul.f32 %v542_v43, %v535_v41  ;;  %v565_v51 = vadd.f32 %v558_v44, %v549_v47 }
 0x129   : > { %v552_v50 = vmul.f32 %v546_v45, %v536_v42  ;;  %v566_v52 = vadd.f32 %v562_v46, %v550_v48 }
 0x12a   : > { %v567_v53 = vadd.f32 %v558_v44, %v551_v49  ;;  %v569_v55 = vmax.f32 %v565_v51, 0.0 }
 0x12b   : > { %v568_v54 = vadd.f32 %v562_v46, %v552_v50  ;;  %v570_v56 = vmax.f32 %v566_v52, 0.0 }
 0x12c   : > { %v571_v57 = vmax.f32 %v567_v53, 0.0  ;;  %573 = vst [vmem:[%s993_s4] sm:$0xff] %v569_v55 }
 0x12d   : > { %v572_v58 = vmax.f32 %v568_v54, 0.0  ;;  %574 = vst [vmem:[%s993_s4 + $0x8] sm:$0xff] %v570_v56 }
 0x12e   : > { %575 = vst [vmem:[%s993_s4 + $0x10] sm:$0xff] %v571_v57 }
 0x12f   : > { %576 = vst [vmem:[%s993_s4 + $0x18] sm:$0xff] %v572_v58 }
 0x130 PF: > { %s14_s19 = sadd.s32 1, %s852_s19   ;;  %s994_s15 = smov %s840_s16 }
 0x131   : > { %p11_p12 = scmp.ge.s32.totalorder %s14_s19, 20   ;;  %s995_s16 = smov %s916_s23 }
 0x132   : > { %s996_s17 = smov %s848_s18  ;;  %s997_s18 = smov %s999_s20 }
 0x133   :  { %13 = sbr.rel (!%p11_p12) target bundleno = 3 (0x3), region = 129 }

// kernel: _lambda_.45
= control target key start
LH: loop header
LB: loop body
LE: loop exit
PB: predicated region body
PF: predicated region fallthrough
CT: control target
= control target key end

     0   :  { %s877_s15 = smov 0   ;;  %s879_s16 = smov 0   ;;  %s985_s0 = inlined_call_operand.vmem [shape: bf16[16,2304], index: 0, kind: input, shape index: {}]   ;;  %s986_s1 = inlined_call_operand.vmem [shape: bf16[2304,256], index: 1, kind: input, shape index: {}]   ;;  %s987_s2 = inlined_call_operand.vmem [shape: f32[1,256], index: 2, kind: input, shape index: {}]   ;;  %s988_s3 = inlined_call_operand.vmem [shape: f32[1,256], index: 3, kind: input, shape index: {}]   ;;  %s989_s4 = inlined_call_operand.vmem [shape: f32[16,256], index: 4, kind: output, shape index: {}]  }
   0x1   :  { %s881_s17 = smov 0   ;;  %s883_s18 = smov 0  }
   0x2   :  { %s885_s19 = smov 0  }
   0x3 LB: > { %s26_s20 = sadd.s32 1, %s844_s18  ;;  %p49_p1 = scmp.ne.s32.totalorder %s836_s16, %s832_s15  ;;  %s848_s19 = sphi %s885_s19, %s14_s19   ;;  %s844_s18 = sphi %s883_s18, %s993_s18   ;;  %s840_s17 = sphi %s881_s17, %s992_s17   ;;  %s836_s16 = sphi %s879_s16, %s991_s16   ;;  %s832_s15 = sphi %s877_s15, %s990_s15  }
   0x4   : > { %p27_p0 = scmp.ge.s32.totalorder %s26_s20, 18  ;;  %p50_p2 = scmp.eq.s32.totalorder %s848_s19, 0 }
   0x5   : > { %s42_s22 = sadd.s32 1, %s836_s16  ;;  %p711_p5 = scmp.ge.s32.totalorder %s848_s19, 18 }
   0x6   : > { %s995_s20 = smov (%p27_p0, %s26_s20), 0  ;;  %p51_p3 = por %p50_p2, %p49_p1 }
   0x7   : > { %s38_s21 = ssub.s32 %s844_s18, %s995_s20  ;;  %199 = sbr.rel (%p711_p5) target bundleno = 21 (0x15), region = 24 }
   0x8   : > { %p40_p4 = scmp.eq.s32.totalorder %s38_s21, 0 }
   0xa   : > { %s912_s23 = scalar_select %p40_p4, %s836_s16, %s42_s22  }
   0xe   : > { %202 = sbr.rel (!%p51_p3) target bundleno = 21 (0x15), region = 28  ;;  %s204_s24 = sand.u32 (%p51_p3), 1, %s836_s16  }
   0xf   : > { %s713_s25 = sshll.u32 (%p51_p3), %s844_s18, 2  ;;  %s712_s26 = sshll.u32 (%p51_p3), %s204_s24, 3 }
  0x10   : > { %s211_s29 = scalar_lea.vmem (%p51_p3), %s985_s0, %s713_s25  ;;  %s206_s30 = scalar_lea.vmem (%p51_p3), [#allocation3], %s712_s26 }
  0x11   : > { %v227_v0 = vld [vmem:[%s211_s29] sm:$0xf] (%p51_p3)  ;;  %v229_v1 = vld [vmem:[%s211_s29 + $0x48] sm:$0xf] (%p51_p3) }
  0x12   : > { %228 = vst [vmem:[%s206_s30] sm:$0xf] (%p51_p3), %v227_v0  ;;  %230 = vst [vmem:[%s206_s30 + $0x4] sm:$0xf] (%p51_p3), %v229_v1 }
  0x15 PF: > { %p714_p6 = scmp.ge.s32.totalorder %s848_s19, 1  ;;  %p271_p7 = scmp.lt.s32.totalorder %s848_s19, 19 }
  0x17   : > { %p272_p8 = pnand %p714_p6, %p271_p7 }
  0x18   : > { %s278_s5 = sand.u32 (!%p272_p8), 1, %s832_s15   ;;  %s716_s6 = sshll.u32 (!%p272_p8), %s840_s17, 4 }
  0x19   : > { %275 = sbr.rel (%p272_p8) target bundleno = 302 (0x12e), region = 73  ;;  %s924_s7 = sshll.u32 (!%p272_p8), %s278_s5, 3 }
  0x1a   : > { %p329_p9 = scmp.lt.s32.totalorder (!%p272_p8), %s716_s6, 287  ;;  %s280_s12 = scalar_lea.vmem (!%p272_p8), [#allocation3], %s924_s7 }
  0x1b   : > { %p719_p10 = scmp.ne.s32.totalorder (!%p272_p8), %s840_s17, 0 }
  0x20   : > { %s997_s6 = smov (!%p329_p9, %s716_s6), 287  ;;  %365 = sbr.rel (%p719_p10) target bundleno = 39 (0x27), region = 81 }
  0x21   : > { %s742_s8 = sshll.u32 %s997_s6, 3  ;;  %v850_v2 = vmov (!%p719_p10), 0.0  }
  0x22   : > { %s929_s11 = scalar_lea.vmem %s986_s1, %s742_s8  ;;  %366 = vst [vmem:[#allocation2] sm:$0xff] (!%p719_p10), %v850_v2  ;;  %367 = vst [vmem:[#allocation2 + $0x8] sm:$0xff] (!%p719_p10), %v850_v2 }
  0x23   : > { %368 = vst [vmem:[#allocation2 + $0x10] sm:$0xff] (!%p719_p10), %v850_v2  ;;  %369 = vst [vmem:[#allocation2 + $0x18] sm:$0xff] (!%p719_p10), %v850_v2 }
  0x27 PF: > { %v785_v3 = vld [vmem:[%s929_s11 + $0x4] ss:$8 sps:$4 sm:$0xff]   ;;  %v787_v4 = vld [vmem:[%s929_s11] ss:$8 sps:$4 sm:$0xff]   ;;  %v851_v5 = vmov 0   ;;  %p737_p11 = scmp.ne.s32.totalorder %s840_s17, 17 }
  0x28   : > { %510 = vmatprep.mubr.bf16.mxu0 %v851_v5  ;;  %478 = vmatprep.subr.bf16.mxu0 %v785_v3  ;;  %v788_v6 = vld [vmem:[%s929_s11 + $0x14] ss:$8 sps:$4 sm:$0xff]   ;;  %v790_v7 = vld [vmem:[%s929_s11 + $0x10] ss:$8 sps:$4 sm:$0xff]   ;;  %v791_v8 = vld [vmem:[%s929_s11 + $0x24] ss:$8 sps:$4 sm:$0xff]   ;;  %v539_v33 = vlaneseq (!%p737_p11) }
  0x29   : > { %479 = vmatpush1.bf16.msra.mxu0 %v787_v4  ;;  %v793_v9 = vld [vmem:[%s929_s11 + $0x20] ss:$8 sps:$4 sm:$0xff]   ;;  %v794_v10 = vld [vmem:[%s929_s11 + $0x34] ss:$8 sps:$4 sm:$0xff]   ;;  %v796_v11 = vld [vmem:[%s929_s11 + $0x30] ss:$8 sps:$4 sm:$0xff]  }
  0x2a   : > { %480 = vmatprep.subr.bf16.mxu0 %v788_v6  ;;  %v797_v12 = vld [vmem:[%s929_s11 + $0x44] ss:$8 sps:$4 sm:$0xff]   ;;  %v799_v13 = vld [vmem:[%s929_s11 + $0x40] ss:$8 sps:$4 sm:$0xff]   ;;  %v800_v14 = vld [vmem:[%s929_s11 + $0x54] ss:$8 sps:$4 sm:$0xff]  }
  0x2b   : > { %v802_v15 = vld [vmem:[%s929_s11 + $0x50] ss:$8 sps:$4 sm:$0xff]   ;;  %v803_v16 = vld [vmem:[%s929_s11 + $0x64] ss:$8 sps:$4 sm:$0xff]   ;;  %v805_v17 = vld [vmem:[%s929_s11 + $0x60] ss:$8 sps:$4 sm:$0xff]  }
  0x2c   : > { %v806_v18 = vld [vmem:[%s929_s11 + $0x74] ss:$8 sps:$4 sm:$0xff]   ;;  %v808_v19 = vld [vmem:[%s929_s11 + $0x70] ss:$8 sps:$4 sm:$0xff]   ;;  %v809_v20 = vld [vmem:[%s280_s12] sm:$0xff]   ;;  %v540_v34 = vshrl.u32 (!%p737_p11), %v539_v33, 7 }
  0x2d   : > { %481 = vmatpush1.bf16.msra.mxu0 %v790_v7  ;;  %v370_v21 = vld [vmem:[#allocation2] sm:$0xff]  ;;  %v371_v22 = vld [vmem:[#allocation2 + $0x8] sm:$0xff]  ;;  %v372_v24 = vld [vmem:[#allocation2 + $0x10] sm:$0xff] }
  0x2e   : > { %482 = vmatprep.subr.bf16.mxu0 %v791_v8  ;;  %v373_v27 = vld [vmem:[#allocation2 + $0x18] sm:$0xff]  ;;  %v537_v35 = vld [vmem:[%s987_s2] sm:$0x3] (!%p737_p11)  ;;  %v541_v38 = vsub.s32 (!%p737_p11), 0, %v540_v34  ;;  %v545_v39 = vsub.s32 (!%p737_p11), 1, %v540_v34 }
  0x2f   : > { %v553_v36 = vld [vmem:[%s988_s3] sm:$0x3] (!%p737_p11) }
  0x30   : > { %v542_v43 = vrot.slane (!%p737_p11), %v537_v35, %v541_v38  ;;  %v558_v44 = vrot.slane (!%p737_p11), %v553_v36, %v541_v38  ;;  %v546_v45 = vrot.slane (!%p737_p11), %v537_v35, %v545_v39  ;;  %v562_v46 = vrot.slane (!%p737_p11), %v553_v36, %v545_v39 }
  0x31   : > { %483 = vmatpush1.bf16.msra.mxu0 %v793_v9 }
  0x32   : > { %484 = vmatprep.subr.bf16.mxu0 %v794_v10 }
  0x35   : > { %485 = vmatpush1.bf16.msra.mxu0 %v796_v11 }
  0x36   : > { %486 = vmatprep.subr.bf16.mxu0 %v797_v12 }
  0x39   : > { %487 = vmatpush1.bf16.msra.mxu0 %v799_v13 }
  0x3a   : > { %488 = vmatprep.subr.bf16.mxu0 %v800_v14 }
  0x3d   : > { %489 = vmatpush1.bf16.msra.mxu0 %v802_v15 }
  0x3e   : > { %490 = vmatprep.subr.bf16.mxu0 %v803_v16 }
  0x41   : > { %491 = vmatpush1.bf16.msra.mxu0 %v805_v17 }
  0x42   : > { %492 = vmatprep.subr.bf16.mxu0 %v806_v18 }
  0x45   : > { %493 = vmatpush1.bf16.msra.mxu0 %v808_v19 }
  0x48   : > { %511 = vmatmul.mubr.bf16.vlgmr.msra.gmra.mrb[0].mxu0 %v809_v20 }
 0x11b   : > { %v512_v23 = vpop.f32.mrb[0].mxu0  ;;  %532 = sbr.rel (%p737_p11) target bundleno = 302 (0x12e), region = 85 }
 0x11c   : > { %v521_v25 = vadd.f32 %v512_v23, %v370_v21  ;;  %v514_v26 = vpop.f32.mrb[1].mxu0 }
 0x11d   : > { %v522_v28 = vadd.f32 %v514_v26, %v371_v22  ;;  %v516_v29 = vpop.f32.mrb[2].mxu0 }
 0x11e   : > { %525 = vst [vmem:[#allocation2] sm:$0xff] %v521_v25  ;;  %v523_v30 = vadd.f32 %v516_v29, %v372_v24  ;;  %v518_v31 = vpop.f32.mrb[3].mxu0 }
 0x11f   : > { %526 = vst [vmem:[#allocation2 + $0x8] sm:$0xff] %v522_v28  ;;  %v524_v32 = vadd.f32 %v518_v31, %v373_v27 }
 0x120   : > { %527 = vst [vmem:[#allocation2 + $0x10] sm:$0xff] %v523_v30 }
 0x121   : > { %528 = vst [vmem:[#allocation2 + $0x18] sm:$0xff] %v524_v32 }
 0x125   : > { %v533_v37 = vld [vmem:[#allocation2] sm:$0xff] }
 0x126   : > { %v534_v40 = vld [vmem:[#allocation2 + $0x8] sm:$0xff]  ;;  %v549_v47 = vmul.f32 %v542_v43, %v533_v37 }
 0x127   : > { %v535_v41 = vld [vmem:[#allocation2 + $0x10] sm:$0xff]  ;;  %v550_v48 = vmul.f32 %v546_v45, %v534_v40 }
 0x128   : > { %v536_v42 = vld [vmem:[#allocation2 + $0x18] sm:$0xff]  ;;  %v551_v49 = vmul.f32 %v542_v43, %v535_v41  ;;  %v565_v51 = vadd.f32 %v558_v44, %v549_v47 }
 0x129   : > { %v552_v50 = vmul.f32 %v546_v45, %v536_v42  ;;  %v566_v52 = vadd.f32 %v562_v46, %v550_v48 }
 0x12a   : > { %v567_v53 = vadd.f32 %v558_v44, %v551_v49  ;;  %569 = vst [vmem:[%s989_s4] sm:$0xff] %v565_v51 }
 0x12b   : > { %v568_v54 = vadd.f32 %v562_v46, %v552_v50  ;;  %570 = vst [vmem:[%s989_s4 + $0x8] sm:$0xff] %v566_v52 }
 0x12c   : > { %571 = vst [vmem:[%s989_s4 + $0x10] sm:$0xff] %v567_v53 }
 0x12d   : > { %572 = vst [vmem:[%s989_s4 + $0x18] sm:$0xff] %v568_v54 }
 0x12e PF: > { %s14_s19 = sadd.s32 1, %s848_s19   ;;  %s990_s15 = smov %s836_s16 }
 0x12f   : > { %p11_p12 = scmp.ge.s32.totalorder %s14_s19, 20   ;;  %s991_s16 = smov %s912_s23 }
 0x130   : > { %s992_s17 = smov %s844_s18  ;;  %s993_s18 = smov %s995_s20 }
 0x131   :  { %13 = sbr.rel (!%p11_p12) target bundleno = 3 (0x3), region = 129 }

// kernel: _lambda_.46
= control target key start
LH: loop header
LB: loop body
LE: loop exit
PB: predicated region body
PF: predicated region fallthrough
CT: control target
= control target key end

     0   :  { %v275_v1 = vmov 0   ;;  %v194_v18 = vlaneseq  ;;  %s370_s1 = inlined_call_operand.vmem [shape: bf16[128,256], index: 1, kind: input, shape index: {}]   ;;  %s371_s0 = inlined_call_operand.vmem [shape: bf16[16,128], index: 0, kind: input, shape index: {}]   ;;  %s372_s2 = inlined_call_operand.vmem [shape: f32[1,256], index: 2, kind: input, shape index: {}]   ;;  %s373_s3 = inlined_call_operand.vmem [shape: f32[1,256], index: 3, kind: input, shape index: {}]   ;;  %s374_s4 = inlined_call_operand.vmem [shape: f32[16,256], index: 4, kind: output, shape index: {}]  }
   0x1   :  { %v250_v0 = vld [vmem:[%s370_s1 + $0x4] ss:$8 sps:$4 sm:$0xff]   ;;  %166 = vmatprep.mubr.bf16.mxu0 %v275_v1  ;;  %v252_v2 = vld [vmem:[%s370_s1] ss:$8 sps:$4 sm:$0xff]   ;;  %v253_v3 = vld [vmem:[%s370_s1 + $0x14] ss:$8 sps:$4 sm:$0xff]  }
   0x2   :  { %134 = vmatprep.subr.bf16.mxu0 %v250_v0  ;;  %v255_v4 = vld [vmem:[%s370_s1 + $0x10] ss:$8 sps:$4 sm:$0xff]   ;;  %v256_v5 = vld [vmem:[%s370_s1 + $0x24] ss:$8 sps:$4 sm:$0xff]   ;;  %v258_v6 = vld [vmem:[%s370_s1 + $0x20] ss:$8 sps:$4 sm:$0xff]  }
   0x3   :  { %135 = vmatpush1.bf16.msra.mxu0 %v252_v2  ;;  %v259_v7 = vld [vmem:[%s370_s1 + $0x34] ss:$8 sps:$4 sm:$0xff]   ;;  %v261_v8 = vld [vmem:[%s370_s1 + $0x30] ss:$8 sps:$4 sm:$0xff]   ;;  %v262_v9 = vld [vmem:[%s370_s1 + $0x44] ss:$8 sps:$4 sm:$0xff]  }
   0x4   :  { %136 = vmatprep.subr.bf16.mxu0 %v253_v3  ;;  %v264_v10 = vld [vmem:[%s370_s1 + $0x40] ss:$8 sps:$4 sm:$0xff]   ;;  %v265_v11 = vld [vmem:[%s370_s1 + $0x54] ss:$8 sps:$4 sm:$0xff]   ;;  %v267_v12 = vld [vmem:[%s370_s1 + $0x50] ss:$8 sps:$4 sm:$0xff]  }
   0x5   :  { %v268_v13 = vld [vmem:[%s370_s1 + $0x64] ss:$8 sps:$4 sm:$0xff]   ;;  %v270_v14 = vld [vmem:[%s370_s1 + $0x60] ss:$8 sps:$4 sm:$0xff]   ;;  %v271_v15 = vld [vmem:[%s370_s1 + $0x74] ss:$8 sps:$4 sm:$0xff]  }
   0x6   :  { %v273_v16 = vld [vmem:[%s370_s1 + $0x70] ss:$8 sps:$4 sm:$0xff]   ;;  %v274_v17 = vld [vmem:[%s371_s0] sm:$0xff]   ;;  %v195_v19 = vshrl.u32 %v194_v18, 7 }
   0x7   :  { %137 = vmatpush1.bf16.msra.mxu0 %v255_v4  ;;  %v192_v21 = vld [vmem:[%s372_s2] sm:$0x3] }
   0x8   :  { %138 = vmatprep.subr.bf16.mxu0 %v256_v5  ;;  %v196_v20 = vsub.s32 0, %v195_v19  ;;  %v200_v22 = vsub.s32 1, %v195_v19  ;;  %v208_v23 = vld [vmem:[%s373_s3] sm:$0x3] }
   0xa   :  { %v197_v24 = vrot.slane %v192_v21, %v196_v20  ;;  %v201_v25 = vrot.slane %v192_v21, %v200_v22  ;;  %v213_v26 = vrot.slane %v208_v23, %v196_v20  ;;  %v217_v28 = vrot.slane %v208_v23, %v200_v22 }
   0xb   :  { %139 = vmatpush1.bf16.msra.mxu0 %v258_v6 }
   0xc   :  { %140 = vmatprep.subr.bf16.mxu0 %v259_v7 }
   0xf   :  { %141 = vmatpush1.bf16.msra.mxu0 %v261_v8 }
  0x10   :  { %142 = vmatprep.subr.bf16.mxu0 %v262_v9 }
  0x13   :  { %143 = vmatpush1.bf16.msra.mxu0 %v264_v10 }
  0x14   :  { %144 = vmatprep.subr.bf16.mxu0 %v265_v11 }
  0x17   :  { %145 = vmatpush1.bf16.msra.mxu0 %v267_v12 }
  0x18   :  { %146 = vmatprep.subr.bf16.mxu0 %v268_v13 }
  0x1b   :  { %147 = vmatpush1.bf16.msra.mxu0 %v270_v14 }
  0x1c   :  { %148 = vmatprep.subr.bf16.mxu0 %v271_v15 }
  0x1f   :  { %149 = vmatpush1.bf16.msra.mxu0 %v273_v16 }
  0x22   :  { %167 = vmatmul.mubr.bf16.vlgmr.msra.gmra.mrb[0].mxu0 %v274_v17 }
  0xf5   :  { %v168_v27 = vpop.f32.mrb[0].mxu0 }
  0xf6   :  { %v204_v29 = vmul.f32 %v197_v24, %v168_v27  ;;  %v170_v30 = vpop.f32.mrb[1].mxu0 }
  0xf7   :  { %v205_v31 = vmul.f32 %v201_v25, %v170_v30  ;;  %v172_v32 = vpop.f32.mrb[2].mxu0 }
  0xf8   :  { %v220_v33 = vadd.f32 %v213_v26, %v204_v29  ;;  %v206_v34 = vmul.f32 %v197_v24, %v172_v32  ;;  %v174_v35 = vpop.f32.mrb[3].mxu0 }
  0xf9   :  { %v221_v36 = vadd.f32 %v217_v28, %v205_v31  ;;  %v207_v37 = vmul.f32 %v201_v25, %v174_v35 }
  0xfa   :  { %224 = vst [vmem:[%s374_s4] sm:$0xff] %v220_v33  ;;  %v222_v38 = vadd.f32 %v213_v26, %v206_v34 }
  0xfb   :  { %225 = vst [vmem:[%s374_s4 + $0x8] sm:$0xff] %v221_v36  ;;  %v223_v39 = vadd.f32 %v217_v28, %v207_v37 }
  0xfc   :  { %226 = vst [vmem:[%s374_s4 + $0x10] sm:$0xff] %v222_v38 }
  0xfd   :  { %227 = vst [vmem:[%s374_s4 + $0x18] sm:$0xff] %v223_v39 }

// kernel: _lambda_.51
= control target key start
LH: loop header
LB: loop body
LE: loop exit
PB: predicated region body
PF: predicated region fallthrough
CT: control target
= control target key end

     0   :  { %s1116_s15 = smov 0   ;;  %s1118_s16 = smov 0   ;;  %s1252_s0 = inlined_call_operand.vmem [shape: bf16[16,2304], index: 0, kind: input, shape index: {}]   ;;  %s1253_s1 = inlined_call_operand.vmem [shape: bf16[2304,512], index: 1, kind: input, shape index: {}]   ;;  %s1254_s2 = inlined_call_operand.vmem [shape: f32[1,512], index: 2, kind: input, shape index: {}]   ;;  %s1255_s3 = inlined_call_operand.vmem [shape: f32[1,512], index: 3, kind: input, shape index: {}]   ;;  %s1256_s4 = inlined_call_operand.vmem [shape: f32[16,512], index: 4, kind: output, shape index: {}]  }
   0x1   :  { %s1120_s17 = smov 0   ;;  %s1122_s18 = smov 0  }
   0x2   :  { %s1124_s19 = smov 0  }
   0x3 LB: > { %s26_s20 = sadd.s32 1, %s1083_s18  ;;  %p49_p1 = scmp.ne.s32.totalorder %s1075_s16, %s1071_s15  ;;  %s1087_s19 = sphi %s1124_s19, %s14_s19   ;;  %s1083_s18 = sphi %s1122_s18, %s1260_s18   ;;  %s1079_s17 = sphi %s1120_s17, %s1259_s17   ;;  %s1075_s16 = sphi %s1118_s16, %s1258_s16   ;;  %s1071_s15 = sphi %s1116_s15, %s1257_s15  }
   0x4   : > { %p27_p0 = scmp.ge.s32.totalorder %s26_s20, 18  ;;  %p50_p2 = scmp.eq.s32.totalorder %s1087_s19, 0 }
   0x5   : > { %s42_s22 = sadd.s32 1, %s1075_s16  ;;  %p910_p5 = scmp.ge.s32.totalorder %s1087_s19, 18 }
   0x6   : > { %s1262_s20 = smov (%p27_p0, %s26_s20), 0  ;;  %p51_p3 = por %p50_p2, %p49_p1 }
   0x7   : > { %s38_s21 = ssub.s32 %s1083_s18, %s1262_s20  ;;  %199 = sbr.rel (%p910_p5) target bundleno = 21 (0x15), region = 24 }
   0x8   : > { %p40_p4 = scmp.eq.s32.totalorder %s38_s21, 0 }
   0xa   : > { %s1151_s23 = scalar_select %p40_p4, %s1075_s16, %s42_s22  }
   0xe   : > { %202 = sbr.rel (!%p51_p3) target bundleno = 21 (0x15), region = 28  ;;  %s204_s24 = sand.u32 (%p51_p3), 1, %s1075_s16  }
   0xf   : > { %s912_s25 = sshll.u32 (%p51_p3), %s1083_s18, 2  ;;  %s911_s26 = sshll.u32 (%p51_p3), %s204_s24, 3 }
  0x10   : > { %s211_s29 = scalar_lea.vmem (%p51_p3), %s1252_s0, %s912_s25  ;;  %s206_s30 = scalar_lea.vmem (%p51_p3), [#allocation3], %s911_s26 }
  0x11   : > { %v227_v0 = vld [vmem:[%s211_s29] sm:$0xf] (%p51_p3)  ;;  %v229_v1 = vld [vmem:[%s211_s29 + $0x48] sm:$0xf] (%p51_p3) }
  0x12   : > { %228 = vst [vmem:[%s206_s30] sm:$0xf] (%p51_p3), %v227_v0  ;;  %230 = vst [vmem:[%s206_s30 + $0x4] sm:$0xf] (%p51_p3), %v229_v1 }
  0x15 PF: > { %p913_p6 = scmp.ge.s32.totalorder %s1087_s19, 1  ;;  %p271_p7 = scmp.lt.s32.totalorder %s1087_s19, 19 }
  0x17   : > { %p272_p8 = pnand %p913_p6, %p271_p7 }
  0x18   : > { %s278_s5 = sand.u32 (!%p272_p8), 1, %s1071_s15   ;;  %s915_s6 = sshll.u32 (!%p272_p8), %s1079_s17, 4 }
  0x19   : > { %275 = sbr.rel (%p272_p8) target bundleno = 305 (0x131), region = 73  ;;  %s1163_s7 = sshll.u32 (!%p272_p8), %s278_s5, 3 }
  0x1a   : > { %p329_p9 = scmp.lt.s32.totalorder (!%p272_p8), %s915_s6, 287  ;;  %s280_s12 = scalar_lea.vmem (!%p272_p8), [#allocation3], %s1163_s7 }
  0x1b   : > { %p918_p10 = scmp.ne.s32.totalorder (!%p272_p8), %s1079_s17, 0 }
  0x20   : > { %s1264_s6 = smov (!%p329_p9, %s915_s6), 287  ;;  %365 = sbr.rel (%p918_p10) target bundleno = 39 (0x27), region = 81 }
  0x21   : > { %s957_s8 = sshll.u32 %s1264_s6, 4  ;;  %v1089_v2 = vmov (!%p918_p10), 0.0  }
  0x22   : > { %s1168_s11 = scalar_lea.vmem %s1253_s1, %s957_s8  ;;  %366 = vst [vmem:[#allocation2] sm:$0xff] (!%p918_p10), %v1089_v2  ;;  %367 = vst [vmem:[#allocation2 + $0x8] sm:$0xff] (!%p918_p10), %v1089_v2 }
  0x23   : > { %368 = vst [vmem:[#allocation2 + $0x10] sm:$0xff] (!%p918_p10), %v1089_v2  ;;  %369 = vst [vmem:[#allocation2 + $0x18] sm:$0xff] (!%p918_p10), %v1089_v2 }
  0x24   : > { %370 = vst [vmem:[#allocation2 + $0x20] sm:$0xff] (!%p918_p10), %v1089_v2  ;;  %371 = vst [vmem:[#allocation2 + $0x28] sm:$0xff] (!%p918_p10), %v1089_v2 }
  0x25   : > { %372 = vst [vmem:[#allocation2 + $0x30] sm:$0xff] (!%p918_p10), %v1089_v2  ;;  %373 = vst [vmem:[#allocation2 + $0x38] sm:$0xff] (!%p918_p10), %v1089_v2 }
  0x27 PF: > { %v1000_v3 = vld [vmem:[%s1168_s11 + $0x4] ss:$16 sps:$4 sm:$0xff]   ;;  %v1002_v4 = vld [vmem:[%s1168_s11 + $0xc] ss:$16 sps:$4 sm:$0xff]   ;;  %v1090_v5 = vmov 0   ;;  %p952_p11 = scmp.ne.s32.totalorder %s1079_s17, 17 }
  0x28   : > { %614 = vmatprep.mubr.bf16.mxu0 %v1090_v5  ;;  %657 = vmatprep.mubr.bf16.mxu1 %v1090_v5  ;;  %v1004_v6 = vld [vmem:[%s1168_s11] ss:$16 sps:$4 sm:$0xff]   ;;  %v1005_v7 = vld [vmem:[%s1168_s11 + $0x8] ss:$16 sps:$4 sm:$0xff]   ;;  %v1006_v8 = vld [vmem:[%s1168_s11 + $0x24] ss:$16 sps:$4 sm:$0xff]   ;;  %v698_v61 = vlaneseq (!%p952_p11) }
  0x29   : > { %582 = vmatprep.subr.bf16.mxu0 %v1000_v3  ;;  %625 = vmatprep.subr.bf16.mxu1 %v1002_v4  ;;  %v1008_v9 = vld [vmem:[%s1168_s11 + $0x2c] ss:$16 sps:$4 sm:$0xff]   ;;  %v1010_v10 = vld [vmem:[%s1168_s11 + $0x20] ss:$16 sps:$4 sm:$0xff]   ;;  %v1011_v11 = vld [vmem:[%s1168_s11 + $0x28] ss:$16 sps:$4 sm:$0xff]  }
  0x2a   : > { %583 = vmatpush1.bf16.msra.mxu0 %v1004_v6  ;;  %626 = vmatpush1.bf16.msra.mxu1 %v1005_v7  ;;  %v1012_v12 = vld [vmem:[%s1168_s11 + $0x44] ss:$16 sps:$4 sm:$0xff]   ;;  %v1014_v13 = vld [vmem:[%s1168_s11 + $0x4c] ss:$16 sps:$4 sm:$0xff]   ;;  %v1016_v14 = vld [vmem:[%s1168_s11 + $0x40] ss:$16 sps:$4 sm:$0xff]  }
  0x2b   : > { %584 = vmatprep.subr.bf16.mxu0 %v1006_v8  ;;  %627 = vmatprep.subr.bf16.mxu1 %v1008_v9  ;;  %v1017_v15 = vld [vmem:[%s1168_s11 + $0x48] ss:$16 sps:$4 sm:$0xff]   ;;  %v1018_v16 = vld [vmem:[%s1168_s11 + $0x64] ss:$16 sps:$4 sm:$0xff]   ;;  %v1020_v17 = vld [vmem:[%s1168_s11 + $0x6c] ss:$16 sps:$4 sm:$0xff]  }
  0x2c   : > { %v1022_v18 = vld [vmem:[%s1168_s11 + $0x60] ss:$16 sps:$4 sm:$0xff]   ;;  %v1023_v19 = vld [vmem:[%s1168_s11 + $0x68] ss:$16 sps:$4 sm:$0xff]   ;;  %v1024_v20 = vld [vmem:[%s1168_s11 + $0x84] ss:$16 sps:$4 sm:$0xff]  }
  0x2d   : > { %v1026_v21 = vld [vmem:[%s1168_s11 + $0x8c] ss:$16 sps:$4 sm:$0xff]   ;;  %v1028_v22 = vld [vmem:[%s1168_s11 + $0x80] ss:$16 sps:$4 sm:$0xff]   ;;  %v1029_v23 = vld [vmem:[%s1168_s11 + $0x88] ss:$16 sps:$4 sm:$0xff]  }
  0x2e   : > { %585 = vmatpush1.bf16.msra.mxu0 %v1010_v10  ;;  %628 = vmatpush1.bf16.msra.mxu1 %v1011_v11  ;;  %v1030_v24 = vld [vmem:[%s1168_s11 + $0xa4] ss:$16 sps:$4 sm:$0xff]   ;;  %v1032_v25 = vld [vmem:[%s1168_s11 + $0xac] ss:$16 sps:$4 sm:$0xff]   ;;  %v1034_v26 = vld [vmem:[%s1168_s11 + $0xa0] ss:$16 sps:$4 sm:$0xff]  }
  0x2f   : > { %586 = vmatprep.subr.bf16.mxu0 %v1012_v12  ;;  %629 = vmatprep.subr.bf16.mxu1 %v1014_v13  ;;  %v1035_v27 = vld [vmem:[%s1168_s11 + $0xa8] ss:$16 sps:$4 sm:$0xff]   ;;  %v1036_v28 = vld [vmem:[%s1168_s11 + $0xc4] ss:$16 sps:$4 sm:$0xff]   ;;  %v1038_v29 = vld [vmem:[%s1168_s11 + $0xcc] ss:$16 sps:$4 sm:$0xff]  }
  0x30   : > { %v1040_v30 = vld [vmem:[%s1168_s11 + $0xc0] ss:$16 sps:$4 sm:$0xff]   ;;  %v1041_v31 = vld [vmem:[%s1168_s11 + $0xc8] ss:$16 sps:$4 sm:$0xff]   ;;  %v1042_v32 = vld [vmem:[%s1168_s11 + $0xe4] ss:$16 sps:$4 sm:$0xff]  }
  0x31   : > { %v1044_v33 = vld [vmem:[%s1168_s11 + $0xec] ss:$16 sps:$4 sm:$0xff]   ;;  %v1046_v34 = vld [vmem:[%s1168_s11 + $0xe0] ss:$16 sps:$4 sm:$0xff]   ;;  %v1047_v35 = vld [vmem:[%s1168_s11 + $0xe8] ss:$16 sps:$4 sm:$0xff]  }
  0x32   : > { %587 = vmatpush1.bf16.msra.mxu0 %v1016_v14  ;;  %630 = vmatpush1.bf16.msra.mxu1 %v1017_v15  ;;  %v1048_v36 = vld [vmem:[%s280_s12] sm:$0xff]   ;;  %v376_v38 = vld [vmem:[#allocation2 + $0x10] sm:$0xff]  ;;  %v377_v40 = vld [vmem:[#allocation2 + $0x18] sm:$0xff]  ;;  %v699_v62 = vshrl.u32 (!%p952_p11), %v698_v61, 7 }
  0x33   : > { %588 = vmatprep.subr.bf16.mxu0 %v1018_v16  ;;  %631 = vmatprep.subr.bf16.mxu1 %v1020_v17  ;;  %v374_v37 = vld [vmem:[#allocation2] sm:$0xff]  ;;  %v375_v39 = vld [vmem:[#allocation2 + $0x8] sm:$0xff]  ;;  %v380_v44 = vld [vmem:[#allocation2 + $0x30] sm:$0xff] }
  0x34   : > { %v378_v43 = vld [vmem:[#allocation2 + $0x20] sm:$0xff]  ;;  %v379_v49 = vld [vmem:[#allocation2 + $0x28] sm:$0xff]  ;;  %v381_v50 = vld [vmem:[#allocation2 + $0x38] sm:$0xff]  ;;  %v700_v2 = vsub.s32 (!%p952_p11), 0, %v699_v62  ;;  %v704_v4 = vsub.s32 (!%p952_p11), 1, %v699_v62  ;;  %v708_v5 = vsub.s32 (!%p952_p11), 2, %v699_v62 }
  0x35   : > { %v696_v63 = vld [vmem:[%s1254_s2] sm:$0xf] (!%p952_p11)  ;;  %v712_v6 = vsub.s32 (!%p952_p11), 3, %v699_v62 }
  0x36   : > { %589 = vmatpush1.bf16.msra.mxu0 %v1022_v18  ;;  %632 = vmatpush1.bf16.msra.mxu1 %v1023_v19  ;;  %v726_v0 = vld [vmem:[%s1255_s3] sm:$0xf] (!%p952_p11)  ;;  %v701_v10 = vrot.slane (!%p952_p11), %v696_v63, %v700_v2  ;;  %v705_v12 = vrot.slane (!%p952_p11), %v696_v63, %v704_v4  ;;  %v709_v17 = vrot.slane (!%p952_p11), %v696_v63, %v708_v5 }
  0x37   : > { %590 = vmatprep.subr.bf16.mxu0 %v1024_v20  ;;  %633 = vmatprep.subr.bf16.mxu1 %v1026_v21  ;;  %v731_v11 = vrot.slane (!%p952_p11), %v726_v0, %v700_v2  ;;  %v735_v13 = vrot.slane (!%p952_p11), %v726_v0, %v704_v4  ;;  %v739_v18 = vrot.slane (!%p952_p11), %v726_v0, %v708_v5 }
  0x38   : > { %v713_v19 = vrot.slane (!%p952_p11), %v696_v63, %v712_v6  ;;  %v743_v20 = vrot.slane (!%p952_p11), %v726_v0, %v712_v6 }
  0x3a   : > { %591 = vmatpush1.bf16.msra.mxu0 %v1028_v22  ;;  %634 = vmatpush1.bf16.msra.mxu1 %v1029_v23 }
  0x3b   : > { %592 = vmatprep.subr.bf16.mxu0 %v1030_v24  ;;  %635 = vmatprep.subr.bf16.mxu1 %v1032_v25 }
  0x3e   : > { %593 = vmatpush1.bf16.msra.mxu0 %v1034_v26  ;;  %636 = vmatpush1.bf16.msra.mxu1 %v1035_v27 }
  0x3f   : > { %594 = vmatprep.subr.bf16.mxu0 %v1036_v28  ;;  %637 = vmatprep.subr.bf16.mxu1 %v1038_v29 }
  0x42   : > { %595 = vmatpush1.bf16.msra.mxu0 %v1040_v30  ;;  %638 = vmatpush1.bf16.msra.mxu1 %v1041_v31 }
  0x43   : > { %596 = vmatprep.subr.bf16.mxu0 %v1042_v32  ;;  %639 = vmatprep.subr.bf16.mxu1 %v1044_v33 }
  0x46   : > { %597 = vmatpush1.bf16.msra.mxu0 %v1046_v34  ;;  %640 = vmatpush1.bf16.msra.mxu1 %v1047_v35 }
  0x49   : > { %615 = vmatmul.mubr.bf16.vlgmr.msra.gmra.mrb[0].mxu0 %v1048_v36  ;;  %658 = vmatmul.mubr.bf16.vlgmr.msra.gmra.mrb[0].mxu1 %v1048_v36 }
 0x11c   : > { %v616_v41 = vpop.f32.mrb[0].mxu0  ;;  %v659_v42 = vpop.f32.mrb[0].mxu1  ;;  %687 = sbr.rel (%p952_p11) target bundleno = 305 (0x131), region = 85 }
 0x11d   : > { %v668_v45 = vadd.f32 %v616_v41, %v374_v37  ;;  %v670_v46 = vadd.f32 %v659_v42, %v376_v38  ;;  %v618_v47 = vpop.f32.mrb[1].mxu0  ;;  %v661_v48 = vpop.f32.mrb[1].mxu1 }
 0x11e   : > { %v669_v51 = vadd.f32 %v618_v47, %v375_v39  ;;  %v671_v52 = vadd.f32 %v661_v48, %v377_v40  ;;  %v620_v53 = vpop.f32.mrb[2].mxu0  ;;  %v663_v54 = vpop.f32.mrb[2].mxu1 }
 0x11f   : > { %676 = vst [vmem:[#allocation2] sm:$0xff] %v668_v45  ;;  %678 = vst [vmem:[#allocation2 + $0x10] sm:$0xff] %v670_v46  ;;  %v672_v55 = vadd.f32 %v620_v53, %v378_v43  ;;  %v674_v56 = vadd.f32 %v663_v54, %v380_v44  ;;  %v622_v57 = vpop.f32.mrb[3].mxu0  ;;  %v665_v58 = vpop.f32.mrb[3].mxu1 }
 0x120   : > { %677 = vst [vmem:[#allocation2 + $0x8] sm:$0xff] %v669_v51  ;;  %679 = vst [vmem:[#allocation2 + $0x18] sm:$0xff] %v671_v52  ;;  %v673_v59 = vadd.f32 %v622_v57, %v379_v49  ;;  %v675_v60 = vadd.f32 %v665_v58, %v381_v50 }
 0x121   : > { %680 = vst [vmem:[#allocation2 + $0x20] sm:$0xff] %v672_v55  ;;  %682 = vst [vmem:[#allocation2 + $0x30] sm:$0xff] %v674_v56 }
 0x122   : > { %681 = vst [vmem:[#allocation2 + $0x28] sm:$0xff] %v673_v59  ;;  %683 = vst [vmem:[#allocation2 + $0x38] sm:$0xff] %v675_v60 }
 0x126   : > { %v688_v1 = vld [vmem:[#allocation2] sm:$0xff]  ;;  %v690_v7 = vld [vmem:[#allocation2 + $0x10] sm:$0xff] }
 0x127   : > { %v689_v3 = vld [vmem:[#allocation2 + $0x8] sm:$0xff]  ;;  %v691_v14 = vld [vmem:[#allocation2 + $0x18] sm:$0xff]  ;;  %v718_v21 = vmul.f32 %v701_v10, %v688_v1  ;;  %v720_v25 = vmul.f32 %v709_v17, %v690_v7 }
 0x128   : > { %v692_v8 = vld [vmem:[#allocation2 + $0x20] sm:$0xff]  ;;  %v694_v15 = vld [vmem:[#allocation2 + $0x30] sm:$0xff]  ;;  %v719_v22 = vmul.f32 %v705_v12, %v689_v3  ;;  %v721_v26 = vmul.f32 %v713_v19, %v691_v14 }
 0x129   : > { %v693_v9 = vld [vmem:[#allocation2 + $0x28] sm:$0xff]  ;;  %v695_v16 = vld [vmem:[#allocation2 + $0x38] sm:$0xff]  ;;  %v722_v23 = vmul.f32 %v701_v10, %v692_v8  ;;  %v724_v27 = vmul.f32 %v709_v17, %v694_v15  ;;  %v748_v29 = vadd.f32 %v731_v11, %v718_v21  ;;  %v750_v33 = vadd.f32 %v739_v18, %v720_v25 }
 0x12a   : > { %v723_v24 = vmul.f32 %v705_v12, %v693_v9  ;;  %v725_v28 = vmul.f32 %v713_v19, %v695_v16  ;;  %v749_v30 = vadd.f32 %v735_v13, %v719_v22  ;;  %v751_v34 = vadd.f32 %v743_v20, %v721_v26 }
 0x12b   : > { %v752_v31 = vadd.f32 %v731_v11, %v722_v23  ;;  %v754_v35 = vadd.f32 %v739_v18, %v724_v27  ;;  %v756_v37 = vmax.f32 %v748_v29, 0.0  ;;  %v758_v41 = vmax.f32 %v750_v33, 0.0 }
 0x12c   : > { %v753_v32 = vadd.f32 %v735_v13, %v723_v24  ;;  %v755_v36 = vadd.f32 %v743_v20, %v725_v28  ;;  %v757_v38 = vmax.f32 %v749_v30, 0.0  ;;  %v759_v42 = vmax.f32 %v751_v34, 0.0 }
 0x12d   : > { %v760_v39 = vmax.f32 %v752_v31, 0.0  ;;  %v762_v43 = vmax.f32 %v754_v35, 0.0  ;;  %764 = vst [vmem:[%s1256_s4] sm:$0xff] %v756_v37  ;;  %766 = vst [vmem:[%s1256_s4 + $0x10] sm:$0xff] %v758_v41 }
 0x12e   : > { %v761_v40 = vmax.f32 %v753_v32, 0.0  ;;  %v763_v44 = vmax.f32 %v755_v36, 0.0  ;;  %765 = vst [vmem:[%s1256_s4 + $0x8] sm:$0xff] %v757_v38  ;;  %767 = vst [vmem:[%s1256_s4 + $0x18] sm:$0xff] %v759_v42 }
 0x12f   : > { %768 = vst [vmem:[%s1256_s4 + $0x20] sm:$0xff] %v760_v39  ;;  %770 = vst [vmem:[%s1256_s4 + $0x30] sm:$0xff] %v762_v43 }
 0x130   : > { %769 = vst [vmem:[%s1256_s4 + $0x28] sm:$0xff] %v761_v40  ;;  %771 = vst [vmem:[%s1256_s4 + $0x38] sm:$0xff] %v763_v44 }
 0x131 PF: > { %s14_s19 = sadd.s32 1, %s1087_s19   ;;  %s1257_s15 = smov %s1075_s16 }
 0x132   : > { %p11_p12 = scmp.ge.s32.totalorder %s14_s19, 20   ;;  %s1258_s16 = smov %s1151_s23 }
 0x133   : > { %s1259_s17 = smov %s1083_s18  ;;  %s1260_s18 = smov %s1262_s20 }
 0x134   :  { %13 = sbr.rel (!%p11_p12) target bundleno = 3 (0x3), region = 129 }

// kernel: _lambda_.52
= control target key start
LH: loop header
LB: loop body
LE: loop exit
PB: predicated region body
PF: predicated region fallthrough
CT: control target
= control target key end

     0   :  { %s1108_s15 = smov 0   ;;  %s1110_s16 = smov 0   ;;  %s1244_s0 = inlined_call_operand.vmem [shape: bf16[16,4608], index: 0, kind: input, shape index: {}]   ;;  %s1245_s1 = inlined_call_operand.vmem [shape: bf16[4608,512], index: 1, kind: input, shape index: {}]   ;;  %s1246_s2 = inlined_call_operand.vmem [shape: f32[1,512], index: 2, kind: input, shape index: {}]   ;;  %s1247_s3 = inlined_call_operand.vmem [shape: f32[1,512], index: 3, kind: input, shape index: {}]   ;;  %s1248_s4 = inlined_call_operand.vmem [shape: f32[16,512], index: 4, kind: output, shape index: {}]  }
   0x1   :  { %s1112_s17 = smov 0   ;;  %s1114_s18 = smov 0  }
   0x2   :  { %s1116_s19 = smov 0  }
   0x3 LB: > { %s26_s20 = sadd.s32 1, %s1075_s18  ;;  %p49_p1 = scmp.ne.s32.totalorder %s1067_s16, %s1063_s15  ;;  %s1079_s19 = sphi %s1116_s19, %s14_s19   ;;  %s1075_s18 = sphi %s1114_s18, %s1252_s18   ;;  %s1071_s17 = sphi %s1112_s17, %s1251_s17   ;;  %s1067_s16 = sphi %s1110_s16, %s1250_s16   ;;  %s1063_s15 = sphi %s1108_s15, %s1249_s15  }
   0x4   : > { %p27_p0 = scmp.ge.s32.totalorder %s26_s20, 36  ;;  %p50_p2 = scmp.eq.s32.totalorder %s1079_s19, 0 }
   0x5   : > { %s42_s22 = sadd.s32 1, %s1067_s16  ;;  %p902_p5 = scmp.ge.s32.totalorder %s1079_s19, 36 }
   0x6   : > { %s1254_s20 = smov (%p27_p0, %s26_s20), 0  ;;  %p51_p3 = por %p50_p2, %p49_p1 }
   0x7   : > { %s38_s21 = ssub.s32 %s1075_s18, %s1254_s20  ;;  %199 = sbr.rel (%p902_p5) target bundleno = 21 (0x15), region = 24 }
   0x8   : > { %p40_p4 = scmp.eq.s32.totalorder %s38_s21, 0 }
   0xa   : > { %s1143_s23 = scalar_select %p40_p4, %s1067_s16, %s42_s22  }
   0xe   : > { %202 = sbr.rel (!%p51_p3) target bundleno = 21 (0x15), region = 28  ;;  %s204_s24 = sand.u32 (%p51_p3), 1, %s1067_s16  }
   0xf   : > { %s904_s25 = sshll.u32 (%p51_p3), %s1075_s18, 2  ;;  %s903_s26 = sshll.u32 (%p51_p3), %s204_s24, 3 }
  0x10   : > { %s211_s29 = scalar_lea.vmem (%p51_p3), %s1244_s0, %s904_s25  ;;  %s206_s30 = scalar_lea.vmem (%p51_p3), [#allocation3], %s903_s26 }
  0x11   : > { %v227_v0 = vld [vmem:[%s211_s29] sm:$0xf] (%p51_p3)  ;;  %v229_v1 = vld [vmem:[%s211_s29 + $0x90] sm:$0xf] (%p51_p3) }
  0x12   : > { %228 = vst [vmem:[%s206_s30] sm:$0xf] (%p51_p3), %v227_v0  ;;  %230 = vst [vmem:[%s206_s30 + $0x4] sm:$0xf] (%p51_p3), %v229_v1 }
  0x15 PF: > { %p905_p6 = scmp.ge.s32.totalorder %s1079_s19, 1  ;;  %p271_p7 = scmp.lt.s32.totalorder %s1079_s19, 37 }
  0x17   : > { %p272_p8 = pnand %p905_p6, %p271_p7 }
  0x18   : > { %s278_s5 = sand.u32 (!%p272_p8), 1, %s1063_s15   ;;  %s907_s6 = sshll.u32 (!%p272_p8), %s1071_s17, 4 }
  0x19   : > { %275 = sbr.rel (%p272_p8) target bundleno = 303 (0x12f), region = 73  ;;  %s1155_s7 = sshll.u32 (!%p272_p8), %s278_s5, 3 }
  0x1a   : > { %p329_p9 = scmp.lt.s32.totalorder (!%p272_p8), %s907_s6, 575  ;;  %s280_s12 = scalar_lea.vmem (!%p272_p8), [#allocation3], %s1155_s7 }
  0x1b   : > { %p910_p10 = scmp.ne.s32.totalorder (!%p272_p8), %s1071_s17, 0 }
  0x20   : > { %s1256_s6 = smov (!%p329_p9, %s907_s6), 575  ;;  %365 = sbr.rel (%p910_p10) target bundleno = 39 (0x27), region = 81 }
  0x21   : > { %s949_s8 = sshll.u32 %s1256_s6, 4  ;;  %v1081_v2 = vmov (!%p910_p10), 0.0  }
  0x22   : > { %s1160_s11 = scalar_lea.vmem %s1245_s1, %s949_s8  ;;  %366 = vst [vmem:[#allocation2] sm:$0xff] (!%p910_p10), %v1081_v2  ;;  %367 = vst [vmem:[#allocation2 + $0x8] sm:$0xff] (!%p910_p10), %v1081_v2 }
  0x23   : > { %368 = vst [vmem:[#allocation2 + $0x10] sm:$0xff] (!%p910_p10), %v1081_v2  ;;  %369 = vst [vmem:[#allocation2 + $0x18] sm:$0xff] (!%p910_p10), %v1081_v2 }
  0x24   : > { %370 = vst [vmem:[#allocation2 + $0x20] sm:$0xff] (!%p910_p10), %v1081_v2  ;;  %371 = vst [vmem:[#allocation2 + $0x28] sm:$0xff] (!%p910_p10), %v1081_v2 }
  0x25   : > { %372 = vst [vmem:[#allocation2 + $0x30] sm:$0xff] (!%p910_p10), %v1081_v2  ;;  %373 = vst [vmem:[#allocation2 + $0x38] sm:$0xff] (!%p910_p10), %v1081_v2 }
  0x27 PF: > { %v992_v3 = vld [vmem:[%s1160_s11 + $0x4] ss:$16 sps:$4 sm:$0xff]   ;;  %v994_v4 = vld [vmem:[%s1160_s11 + $0xc] ss:$16 sps:$4 sm:$0xff]   ;;  %v1082_v5 = vmov 0   ;;  %p944_p11 = scmp.ne.s32.totalorder %s1071_s17, 35 }
  0x28   : > { %614 = vmatprep.mubr.bf16.mxu0 %v1082_v5  ;;  %657 = vmatprep.mubr.bf16.mxu1 %v1082_v5  ;;  %v996_v6 = vld [vmem:[%s1160_s11] ss:$16 sps:$4 sm:$0xff]   ;;  %v997_v7 = vld [vmem:[%s1160_s11 + $0x8] ss:$16 sps:$4 sm:$0xff]   ;;  %v998_v8 = vld [vmem:[%s1160_s11 + $0x24] ss:$16 sps:$4 sm:$0xff]   ;;  %v698_v61 = vlaneseq (!%p944_p11) }
  0x29   : > { %582 = vmatprep.subr.bf16.mxu0 %v992_v3  ;;  %625 = vmatprep.subr.bf16.mxu1 %v994_v4  ;;  %v1000_v9 = vld [vmem:[%s1160_s11 + $0x2c] ss:$16 sps:$4 sm:$0xff]   ;;  %v1002_v10 = vld [vmem:[%s1160_s11 + $0x20] ss:$16 sps:$4 sm:$0xff]   ;;  %v1003_v11 = vld [vmem:[%s1160_s11 + $0x28] ss:$16 sps:$4 sm:$0xff]  }
  0x2a   : > { %583 = vmatpush1.bf16.msra.mxu0 %v996_v6  ;;  %626 = vmatpush1.bf16.msra.mxu1 %v997_v7  ;;  %v1004_v12 = vld [vmem:[%s1160_s11 + $0x44] ss:$16 sps:$4 sm:$0xff]   ;;  %v1006_v13 = vld [vmem:[%s1160_s11 + $0x4c] ss:$16 sps:$4 sm:$0xff]   ;;  %v1008_v14 = vld [vmem:[%s1160_s11 + $0x40] ss:$16 sps:$4 sm:$0xff]  }
  0x2b   : > { %584 = vmatprep.subr.bf16.mxu0 %v998_v8  ;;  %627 = vmatprep.subr.bf16.mxu1 %v1000_v9  ;;  %v1009_v15 = vld [vmem:[%s1160_s11 + $0x48] ss:$16 sps:$4 sm:$0xff]   ;;  %v1010_v16 = vld [vmem:[%s1160_s11 + $0x64] ss:$16 sps:$4 sm:$0xff]   ;;  %v1012_v17 = vld [vmem:[%s1160_s11 + $0x6c] ss:$16 sps:$4 sm:$0xff]  }
  0x2c   : > { %v1014_v18 = vld [vmem:[%s1160_s11 + $0x60] ss:$16 sps:$4 sm:$0xff]   ;;  %v1015_v19 = vld [vmem:[%s1160_s11 + $0x68] ss:$16 sps:$4 sm:$0xff]   ;;  %v1016_v20 = vld [vmem:[%s1160_s11 + $0x84] ss:$16 sps:$4 sm:$0xff]  }
  0x2d   : > { %v1018_v21 = vld [vmem:[%s1160_s11 + $0x8c] ss:$16 sps:$4 sm:$0xff]   ;;  %v1020_v22 = vld [vmem:[%s1160_s11 + $0x80] ss:$16 sps:$4 sm:$0xff]   ;;  %v1021_v23 = vld [vmem:[%s1160_s11 + $0x88] ss:$16 sps:$4 sm:$0xff]  }
  0x2e   : > { %585 = vmatpush1.bf16.msra.mxu0 %v1002_v10  ;;  %628 = vmatpush1.bf16.msra.mxu1 %v1003_v11  ;;  %v1022_v24 = vld [vmem:[%s1160_s11 + $0xa4] ss:$16 sps:$4 sm:$0xff]   ;;  %v1024_v25 = vld [vmem:[%s1160_s11 + $0xac] ss:$16 sps:$4 sm:$0xff]   ;;  %v1026_v26 = vld [vmem:[%s1160_s11 + $0xa0] ss:$16 sps:$4 sm:$0xff]  }
  0x2f   : > { %586 = vmatprep.subr.bf16.mxu0 %v1004_v12  ;;  %629 = vmatprep.subr.bf16.mxu1 %v1006_v13  ;;  %v1027_v27 = vld [vmem:[%s1160_s11 + $0xa8] ss:$16 sps:$4 sm:$0xff]   ;;  %v1028_v28 = vld [vmem:[%s1160_s11 + $0xc4] ss:$16 sps:$4 sm:$0xff]   ;;  %v1030_v29 = vld [vmem:[%s1160_s11 + $0xcc] ss:$16 sps:$4 sm:$0xff]  }
  0x30   : > { %v1032_v30 = vld [vmem:[%s1160_s11 + $0xc0] ss:$16 sps:$4 sm:$0xff]   ;;  %v1033_v31 = vld [vmem:[%s1160_s11 + $0xc8] ss:$16 sps:$4 sm:$0xff]   ;;  %v1034_v32 = vld [vmem:[%s1160_s11 + $0xe4] ss:$16 sps:$4 sm:$0xff]  }
  0x31   : > { %v1036_v33 = vld [vmem:[%s1160_s11 + $0xec] ss:$16 sps:$4 sm:$0xff]   ;;  %v1038_v34 = vld [vmem:[%s1160_s11 + $0xe0] ss:$16 sps:$4 sm:$0xff]   ;;  %v1039_v35 = vld [vmem:[%s1160_s11 + $0xe8] ss:$16 sps:$4 sm:$0xff]  }
  0x32   : > { %587 = vmatpush1.bf16.msra.mxu0 %v1008_v14  ;;  %630 = vmatpush1.bf16.msra.mxu1 %v1009_v15  ;;  %v1040_v36 = vld [vmem:[%s280_s12] sm:$0xff]   ;;  %v376_v38 = vld [vmem:[#allocation2 + $0x10] sm:$0xff]  ;;  %v377_v40 = vld [vmem:[#allocation2 + $0x18] sm:$0xff]  ;;  %v699_v62 = vshrl.u32 (!%p944_p11), %v698_v61, 7 }
  0x33   : > { %588 = vmatprep.subr.bf16.mxu0 %v1010_v16  ;;  %631 = vmatprep.subr.bf16.mxu1 %v1012_v17  ;;  %v374_v37 = vld [vmem:[#allocation2] sm:$0xff]  ;;  %v375_v39 = vld [vmem:[#allocation2 + $0x8] sm:$0xff]  ;;  %v380_v44 = vld [vmem:[#allocation2 + $0x30] sm:$0xff] }
  0x34   : > { %v378_v43 = vld [vmem:[#allocation2 + $0x20] sm:$0xff]  ;;  %v379_v49 = vld [vmem:[#allocation2 + $0x28] sm:$0xff]  ;;  %v381_v50 = vld [vmem:[#allocation2 + $0x38] sm:$0xff]  ;;  %v700_v2 = vsub.s32 (!%p944_p11), 0, %v699_v62  ;;  %v704_v4 = vsub.s32 (!%p944_p11), 1, %v699_v62  ;;  %v708_v5 = vsub.s32 (!%p944_p11), 2, %v699_v62 }
  0x35   : > { %v696_v63 = vld [vmem:[%s1246_s2] sm:$0xf] (!%p944_p11)  ;;  %v712_v6 = vsub.s32 (!%p944_p11), 3, %v699_v62 }
  0x36   : > { %589 = vmatpush1.bf16.msra.mxu0 %v1014_v18  ;;  %632 = vmatpush1.bf16.msra.mxu1 %v1015_v19  ;;  %v726_v0 = vld [vmem:[%s1247_s3] sm:$0xf] (!%p944_p11)  ;;  %v701_v10 = vrot.slane (!%p944_p11), %v696_v63, %v700_v2  ;;  %v705_v12 = vrot.slane (!%p944_p11), %v696_v63, %v704_v4  ;;  %v709_v17 = vrot.slane (!%p944_p11), %v696_v63, %v708_v5 }
  0x37   : > { %590 = vmatprep.subr.bf16.mxu0 %v1016_v20  ;;  %633 = vmatprep.subr.bf16.mxu1 %v1018_v21  ;;  %v731_v11 = vrot.slane (!%p944_p11), %v726_v0, %v700_v2  ;;  %v735_v13 = vrot.slane (!%p944_p11), %v726_v0, %v704_v4  ;;  %v739_v18 = vrot.slane (!%p944_p11), %v726_v0, %v708_v5 }
  0x38   : > { %v713_v19 = vrot.slane (!%p944_p11), %v696_v63, %v712_v6  ;;  %v743_v20 = vrot.slane (!%p944_p11), %v726_v0, %v712_v6 }
  0x3a   : > { %591 = vmatpush1.bf16.msra.mxu0 %v1020_v22  ;;  %634 = vmatpush1.bf16.msra.mxu1 %v1021_v23 }
  0x3b   : > { %592 = vmatprep.subr.bf16.mxu0 %v1022_v24  ;;  %635 = vmatprep.subr.bf16.mxu1 %v1024_v25 }
  0x3e   : > { %593 = vmatpush1.bf16.msra.mxu0 %v1026_v26  ;;  %636 = vmatpush1.bf16.msra.mxu1 %v1027_v27 }
  0x3f   : > { %594 = vmatprep.subr.bf16.mxu0 %v1028_v28  ;;  %637 = vmatprep.subr.bf16.mxu1 %v1030_v29 }
  0x42   : > { %595 = vmatpush1.bf16.msra.mxu0 %v1032_v30  ;;  %638 = vmatpush1.bf16.msra.mxu1 %v1033_v31 }
  0x43   : > { %596 = vmatprep.subr.bf16.mxu0 %v1034_v32  ;;  %639 = vmatprep.subr.bf16.mxu1 %v1036_v33 }
  0x46   : > { %597 = vmatpush1.bf16.msra.mxu0 %v1038_v34  ;;  %640 = vmatpush1.bf16.msra.mxu1 %v1039_v35 }
  0x49   : > { %615 = vmatmul.mubr.bf16.vlgmr.msra.gmra.mrb[0].mxu0 %v1040_v36  ;;  %658 = vmatmul.mubr.bf16.vlgmr.msra.gmra.mrb[0].mxu1 %v1040_v36 }
 0x11c   : > { %v616_v41 = vpop.f32.mrb[0].mxu0  ;;  %v659_v42 = vpop.f32.mrb[0].mxu1  ;;  %687 = sbr.rel (%p944_p11) target bundleno = 303 (0x12f), region = 85 }
 0x11d   : > { %v668_v45 = vadd.f32 %v616_v41, %v374_v37  ;;  %v670_v46 = vadd.f32 %v659_v42, %v376_v38  ;;  %v618_v47 = vpop.f32.mrb[1].mxu0  ;;  %v661_v48 = vpop.f32.mrb[1].mxu1 }
 0x11e   : > { %v669_v51 = vadd.f32 %v618_v47, %v375_v39  ;;  %v671_v52 = vadd.f32 %v661_v48, %v377_v40  ;;  %v620_v53 = vpop.f32.mrb[2].mxu0  ;;  %v663_v54 = vpop.f32.mrb[2].mxu1 }
 0x11f   : > { %676 = vst [vmem:[#allocation2] sm:$0xff] %v668_v45  ;;  %678 = vst [vmem:[#allocation2 + $0x10] sm:$0xff] %v670_v46  ;;  %v672_v55 = vadd.f32 %v620_v53, %v378_v43  ;;  %v674_v56 = vadd.f32 %v663_v54, %v380_v44  ;;  %v622_v57 = vpop.f32.mrb[3].mxu0  ;;  %v665_v58 = vpop.f32.mrb[3].mxu1 }
 0x120   : > { %677 = vst [vmem:[#allocation2 + $0x8] sm:$0xff] %v669_v51  ;;  %679 = vst [vmem:[#allocation2 + $0x18] sm:$0xff] %v671_v52  ;;  %v673_v59 = vadd.f32 %v622_v57, %v379_v49  ;;  %v675_v60 = vadd.f32 %v665_v58, %v381_v50 }
 0x121   : > { %680 = vst [vmem:[#allocation2 + $0x20] sm:$0xff] %v672_v55  ;;  %682 = vst [vmem:[#allocation2 + $0x30] sm:$0xff] %v674_v56 }
 0x122   : > { %681 = vst [vmem:[#allocation2 + $0x28] sm:$0xff] %v673_v59  ;;  %683 = vst [vmem:[#allocation2 + $0x38] sm:$0xff] %v675_v60 }
 0x126   : > { %v688_v1 = vld [vmem:[#allocation2] sm:$0xff]  ;;  %v690_v7 = vld [vmem:[#allocation2 + $0x10] sm:$0xff] }
 0x127   : > { %v689_v3 = vld [vmem:[#allocation2 + $0x8] sm:$0xff]  ;;  %v691_v14 = vld [vmem:[#allocation2 + $0x18] sm:$0xff]  ;;  %v718_v21 = vmul.f32 %v701_v10, %v688_v1  ;;  %v720_v25 = vmul.f32 %v709_v17, %v690_v7 }
 0x128   : > { %v692_v8 = vld [vmem:[#allocation2 + $0x20] sm:$0xff]  ;;  %v694_v15 = vld [vmem:[#allocation2 + $0x30] sm:$0xff]  ;;  %v719_v22 = vmul.f32 %v705_v12, %v689_v3  ;;  %v721_v26 = vmul.f32 %v713_v19, %v691_v14 }
 0x129   : > { %v693_v9 = vld [vmem:[#allocation2 + $0x28] sm:$0xff]  ;;  %v695_v16 = vld [vmem:[#allocation2 + $0x38] sm:$0xff]  ;;  %v722_v23 = vmul.f32 %v701_v10, %v692_v8  ;;  %v724_v27 = vmul.f32 %v709_v17, %v694_v15  ;;  %v748_v29 = vadd.f32 %v731_v11, %v718_v21  ;;  %v750_v33 = vadd.f32 %v739_v18, %v720_v25 }
 0x12a   : > { %v723_v24 = vmul.f32 %v705_v12, %v693_v9  ;;  %v725_v28 = vmul.f32 %v713_v19, %v695_v16  ;;  %v749_v30 = vadd.f32 %v735_v13, %v719_v22  ;;  %v751_v34 = vadd.f32 %v743_v20, %v721_v26 }
 0x12b   : > { %v752_v31 = vadd.f32 %v731_v11, %v722_v23  ;;  %v754_v35 = vadd.f32 %v739_v18, %v724_v27  ;;  %756 = vst [vmem:[%s1248_s4] sm:$0xff] %v748_v29  ;;  %758 = vst [vmem:[%s1248_s4 + $0x10] sm:$0xff] %v750_v33 }
 0x12c   : > { %v753_v32 = vadd.f32 %v735_v13, %v723_v24  ;;  %v755_v36 = vadd.f32 %v743_v20, %v725_v28  ;;  %757 = vst [vmem:[%s1248_s4 + $0x8] sm:$0xff] %v749_v30  ;;  %759 = vst [vmem:[%s1248_s4 + $0x18] sm:$0xff] %v751_v34 }
 0x12d   : > { %760 = vst [vmem:[%s1248_s4 + $0x20] sm:$0xff] %v752_v31  ;;  %762 = vst [vmem:[%s1248_s4 + $0x30] sm:$0xff] %v754_v35 }
 0x12e   : > { %761 = vst [vmem:[%s1248_s4 + $0x28] sm:$0xff] %v753_v32  ;;  %763 = vst [vmem:[%s1248_s4 + $0x38] sm:$0xff] %v755_v36 }
 0x12f PF: > { %s14_s19 = sadd.s32 1, %s1079_s19   ;;  %s1249_s15 = smov %s1067_s16 }
 0x130   : > { %p11_p12 = scmp.ge.s32.totalorder %s14_s19, 38   ;;  %s1250_s16 = smov %s1143_s23 }
 0x131   : > { %s1251_s17 = smov %s1075_s18  ;;  %s1252_s18 = smov %s1254_s20 }
 0x132   :  { %13 = sbr.rel (!%p11_p12) target bundleno = 3 (0x3), region = 129 }

// kernel: _lambda_.53
= control target key start
LH: loop header
LB: loop body
LE: loop exit
PB: predicated region body
PF: predicated region fallthrough
CT: control target
= control target key end

     0   :  { %s1108_s15 = smov 0   ;;  %s1110_s16 = smov 0   ;;  %s1244_s0 = inlined_call_operand.vmem [shape: bf16[16,256], index: 0, kind: input, shape index: {}]   ;;  %s1245_s1 = inlined_call_operand.vmem [shape: bf16[256,512], index: 1, kind: input, shape index: {}]   ;;  %s1246_s2 = inlined_call_operand.vmem [shape: f32[1,512], index: 2, kind: input, shape index: {}]   ;;  %s1247_s3 = inlined_call_operand.vmem [shape: f32[1,512], index: 3, kind: input, shape index: {}]   ;;  %s1248_s4 = inlined_call_operand.vmem [shape: f32[16,512], index: 4, kind: output, shape index: {}]  }
   0x1   :  { %s1112_s17 = smov 0   ;;  %s1114_s18 = smov 0  }
   0x2   :  { %s1116_s19 = smov 0  }
   0x3 LB: > { %s26_s20 = sadd.s32 1, %s1075_s18  ;;  %p49_p1 = scmp.ne.s32.totalorder %s1067_s16, %s1063_s15  ;;  %s1079_s19 = sphi %s1116_s19, %s14_s19   ;;  %s1075_s18 = sphi %s1114_s18, %s1252_s18   ;;  %s1071_s17 = sphi %s1112_s17, %s1251_s17   ;;  %s1067_s16 = sphi %s1110_s16, %s1250_s16   ;;  %s1063_s15 = sphi %s1108_s15, %s1249_s15  }
   0x4   : > { %p27_p0 = scmp.ge.s32.totalorder %s26_s20, 2  ;;  %p50_p2 = scmp.eq.s32.totalorder %s1079_s19, 0 }
   0x5   : > { %s42_s22 = sadd.s32 1, %s1067_s16  ;;  %p902_p5 = scmp.ge.s32.totalorder %s1079_s19, 2 }
   0x6   : > { %s1254_s20 = smov (%p27_p0, %s26_s20), 0  ;;  %p51_p3 = por %p50_p2, %p49_p1 }
   0x7   : > { %s38_s21 = ssub.s32 %s1075_s18, %s1254_s20  ;;  %199 = sbr.rel (%p902_p5) target bundleno = 21 (0x15), region = 24 }
   0x8   : > { %p40_p4 = scmp.eq.s32.totalorder %s38_s21, 0 }
   0xa   : > { %s1143_s23 = scalar_select %p40_p4, %s1067_s16, %s42_s22  }
   0xe   : > { %202 = sbr.rel (!%p51_p3) target bundleno = 21 (0x15), region = 28  ;;  %s204_s24 = sand.u32 (%p51_p3), 1, %s1067_s16  }
   0xf   : > { %s904_s25 = sshll.u32 (%p51_p3), %s1075_s18, 2  ;;  %s903_s26 = sshll.u32 (%p51_p3), %s204_s24, 3 }
  0x10   : > { %s211_s29 = scalar_lea.vmem (%p51_p3), %s1244_s0, %s904_s25  ;;  %s206_s30 = scalar_lea.vmem (%p51_p3), [#allocation3], %s903_s26 }
  0x11   : > { %v227_v0 = vld [vmem:[%s211_s29] sm:$0xf] (%p51_p3)  ;;  %v229_v1 = vld [vmem:[%s211_s29 + $0x8] sm:$0xf] (%p51_p3) }
  0x12   : > { %228 = vst [vmem:[%s206_s30] sm:$0xf] (%p51_p3), %v227_v0  ;;  %230 = vst [vmem:[%s206_s30 + $0x4] sm:$0xf] (%p51_p3), %v229_v1 }
  0x15 PF: > { %p905_p6 = scmp.ge.s32.totalorder %s1079_s19, 1  ;;  %p271_p7 = scmp.lt.s32.totalorder %s1079_s19, 3 }
  0x17   : > { %p272_p8 = pnand %p905_p6, %p271_p7 }
  0x18   : > { %s278_s5 = sand.u32 (!%p272_p8), 1, %s1063_s15   ;;  %s907_s6 = sshll.u32 (!%p272_p8), %s1071_s17, 4 }
  0x19   : > { %275 = sbr.rel (%p272_p8) target bundleno = 303 (0x12f), region = 73  ;;  %s1155_s7 = sshll.u32 (!%p272_p8), %s278_s5, 3 }
  0x1a   : > { %p329_p9 = scmp.lt.s32.totalorder (!%p272_p8), %s907_s6, 31  ;;  %s280_s12 = scalar_lea.vmem (!%p272_p8), [#allocation3], %s1155_s7 }
  0x1b   : > { %p910_p10 = scmp.ne.s32.totalorder (!%p272_p8), %s1071_s17, 0 }
  0x20   : > { %s1256_s6 = smov (!%p329_p9, %s907_s6), 31  ;;  %365 = sbr.rel (%p910_p10) target bundleno = 39 (0x27), region = 81 }
  0x21   : > { %s949_s8 = sshll.u32 %s1256_s6, 4  ;;  %v1081_v2 = vmov (!%p910_p10), 0.0  }
  0x22   : > { %s1160_s11 = scalar_lea.vmem %s1245_s1, %s949_s8  ;;  %366 = vst [vmem:[#allocation2] sm:$0xff] (!%p910_p10), %v1081_v2  ;;  %367 = vst [vmem:[#allocation2 + $0x8] sm:$0xff] (!%p910_p10), %v1081_v2 }
  0x23   : > { %368 = vst [vmem:[#allocation2 + $0x10] sm:$0xff] (!%p910_p10), %v1081_v2  ;;  %369 = vst [vmem:[#allocation2 + $0x18] sm:$0xff] (!%p910_p10), %v1081_v2 }
  0x24   : > { %370 = vst [vmem:[#allocation2 + $0x20] sm:$0xff] (!%p910_p10), %v1081_v2  ;;  %371 = vst [vmem:[#allocation2 + $0x28] sm:$0xff] (!%p910_p10), %v1081_v2 }
  0x25   : > { %372 = vst [vmem:[#allocation2 + $0x30] sm:$0xff] (!%p910_p10), %v1081_v2  ;;  %373 = vst [vmem:[#allocation2 + $0x38] sm:$0xff] (!%p910_p10), %v1081_v2 }
  0x27 PF: > { %v992_v3 = vld [vmem:[%s1160_s11 + $0x4] ss:$16 sps:$4 sm:$0xff]   ;;  %v994_v4 = vld [vmem:[%s1160_s11 + $0xc] ss:$16 sps:$4 sm:$0xff]   ;;  %v1082_v5 = vmov 0   ;;  %p944_p11 = scmp.ne.s32.totalorder %s1071_s17, 1 }
  0x28   : > { %614 = vmatprep.mubr.bf16.mxu0 %v1082_v5  ;;  %657 = vmatprep.mubr.bf16.mxu1 %v1082_v5  ;;  %v996_v6 = vld [vmem:[%s1160_s11] ss:$16 sps:$4 sm:$0xff]   ;;  %v997_v7 = vld [vmem:[%s1160_s11 + $0x8] ss:$16 sps:$4 sm:$0xff]   ;;  %v998_v8 = vld [vmem:[%s1160_s11 + $0x24] ss:$16 sps:$4 sm:$0xff]   ;;  %v698_v61 = vlaneseq (!%p944_p11) }
  0x29   : > { %582 = vmatprep.subr.bf16.mxu0 %v992_v3  ;;  %625 = vmatprep.subr.bf16.mxu1 %v994_v4  ;;  %v1000_v9 = vld [vmem:[%s1160_s11 + $0x2c] ss:$16 sps:$4 sm:$0xff]   ;;  %v1002_v10 = vld [vmem:[%s1160_s11 + $0x20] ss:$16 sps:$4 sm:$0xff]   ;;  %v1003_v11 = vld [vmem:[%s1160_s11 + $0x28] ss:$16 sps:$4 sm:$0xff]  }
  0x2a   : > { %583 = vmatpush1.bf16.msra.mxu0 %v996_v6  ;;  %626 = vmatpush1.bf16.msra.mxu1 %v997_v7  ;;  %v1004_v12 = vld [vmem:[%s1160_s11 + $0x44] ss:$16 sps:$4 sm:$0xff]   ;;  %v1006_v13 = vld [vmem:[%s1160_s11 + $0x4c] ss:$16 sps:$4 sm:$0xff]   ;;  %v1008_v14 = vld [vmem:[%s1160_s11 + $0x40] ss:$16 sps:$4 sm:$0xff]  }
  0x2b   : > { %584 = vmatprep.subr.bf16.mxu0 %v998_v8  ;;  %627 = vmatprep.subr.bf16.mxu1 %v1000_v9  ;;  %v1009_v15 = vld [vmem:[%s1160_s11 + $0x48] ss:$16 sps:$4 sm:$0xff]   ;;  %v1010_v16 = vld [vmem:[%s1160_s11 + $0x64] ss:$16 sps:$4 sm:$0xff]   ;;  %v1012_v17 = vld [vmem:[%s1160_s11 + $0x6c] ss:$16 sps:$4 sm:$0xff]  }
  0x2c   : > { %v1014_v18 = vld [vmem:[%s1160_s11 + $0x60] ss:$16 sps:$4 sm:$0xff]   ;;  %v1015_v19 = vld [vmem:[%s1160_s11 + $0x68] ss:$16 sps:$4 sm:$0xff]   ;;  %v1016_v20 = vld [vmem:[%s1160_s11 + $0x84] ss:$16 sps:$4 sm:$0xff]  }
  0x2d   : > { %v1018_v21 = vld [vmem:[%s1160_s11 + $0x8c] ss:$16 sps:$4 sm:$0xff]   ;;  %v1020_v22 = vld [vmem:[%s1160_s11 + $0x80] ss:$16 sps:$4 sm:$0xff]   ;;  %v1021_v23 = vld [vmem:[%s1160_s11 + $0x88] ss:$16 sps:$4 sm:$0xff]  }
  0x2e   : > { %585 = vmatpush1.bf16.msra.mxu0 %v1002_v10  ;;  %628 = vmatpush1.bf16.msra.mxu1 %v1003_v11  ;;  %v1022_v24 = vld [vmem:[%s1160_s11 + $0xa4] ss:$16 sps:$4 sm:$0xff]   ;;  %v1024_v25 = vld [vmem:[%s1160_s11 + $0xac] ss:$16 sps:$4 sm:$0xff]   ;;  %v1026_v26 = vld [vmem:[%s1160_s11 + $0xa0] ss:$16 sps:$4 sm:$0xff]  }
  0x2f   : > { %586 = vmatprep.subr.bf16.mxu0 %v1004_v12  ;;  %629 = vmatprep.subr.bf16.mxu1 %v1006_v13  ;;  %v1027_v27 = vld [vmem:[%s1160_s11 + $0xa8] ss:$16 sps:$4 sm:$0xff]   ;;  %v1028_v28 = vld [vmem:[%s1160_s11 + $0xc4] ss:$16 sps:$4 sm:$0xff]   ;;  %v1030_v29 = vld [vmem:[%s1160_s11 + $0xcc] ss:$16 sps:$4 sm:$0xff]  }
  0x30   : > { %v1032_v30 = vld [vmem:[%s1160_s11 + $0xc0] ss:$16 sps:$4 sm:$0xff]   ;;  %v1033_v31 = vld [vmem:[%s1160_s11 + $0xc8] ss:$16 sps:$4 sm:$0xff]   ;;  %v1034_v32 = vld [vmem:[%s1160_s11 + $0xe4] ss:$16 sps:$4 sm:$0xff]  }
  0x31   : > { %v1036_v33 = vld [vmem:[%s1160_s11 + $0xec] ss:$16 sps:$4 sm:$0xff]   ;;  %v1038_v34 = vld [vmem:[%s1160_s11 + $0xe0] ss:$16 sps:$4 sm:$0xff]   ;;  %v1039_v35 = vld [vmem:[%s1160_s11 + $0xe8] ss:$16 sps:$4 sm:$0xff]  }
  0x32   : > { %587 = vmatpush1.bf16.msra.mxu0 %v1008_v14  ;;  %630 = vmatpush1.bf16.msra.mxu1 %v1009_v15  ;;  %v1040_v36 = vld [vmem:[%s280_s12] sm:$0xff]   ;;  %v376_v38 = vld [vmem:[#allocation2 + $0x10] sm:$0xff]  ;;  %v377_v40 = vld [vmem:[#allocation2 + $0x18] sm:$0xff]  ;;  %v699_v62 = vshrl.u32 (!%p944_p11), %v698_v61, 7 }
  0x33   : > { %588 = vmatprep.subr.bf16.mxu0 %v1010_v16  ;;  %631 = vmatprep.subr.bf16.mxu1 %v1012_v17  ;;  %v374_v37 = vld [vmem:[#allocation2] sm:$0xff]  ;;  %v375_v39 = vld [vmem:[#allocation2 + $0x8] sm:$0xff]  ;;  %v380_v44 = vld [vmem:[#allocation2 + $0x30] sm:$0xff] }
  0x34   : > { %v378_v43 = vld [vmem:[#allocation2 + $0x20] sm:$0xff]  ;;  %v379_v49 = vld [vmem:[#allocation2 + $0x28] sm:$0xff]  ;;  %v381_v50 = vld [vmem:[#allocation2 + $0x38] sm:$0xff]  ;;  %v700_v2 = vsub.s32 (!%p944_p11), 0, %v699_v62  ;;  %v704_v4 = vsub.s32 (!%p944_p11), 1, %v699_v62  ;;  %v708_v5 = vsub.s32 (!%p944_p11), 2, %v699_v62 }
  0x35   : > { %v696_v63 = vld [vmem:[%s1246_s2] sm:$0xf] (!%p944_p11)  ;;  %v712_v6 = vsub.s32 (!%p944_p11), 3, %v699_v62 }
  0x36   : > { %589 = vmatpush1.bf16.msra.mxu0 %v1014_v18  ;;  %632 = vmatpush1.bf16.msra.mxu1 %v1015_v19  ;;  %v726_v0 = vld [vmem:[%s1247_s3] sm:$0xf] (!%p944_p11)  ;;  %v701_v10 = vrot.slane (!%p944_p11), %v696_v63, %v700_v2  ;;  %v705_v12 = vrot.slane (!%p944_p11), %v696_v63, %v704_v4  ;;  %v709_v17 = vrot.slane (!%p944_p11), %v696_v63, %v708_v5 }
  0x37   : > { %590 = vmatprep.subr.bf16.mxu0 %v1016_v20  ;;  %633 = vmatprep.subr.bf16.mxu1 %v1018_v21  ;;  %v731_v11 = vrot.slane (!%p944_p11), %v726_v0, %v700_v2  ;;  %v735_v13 = vrot.slane (!%p944_p11), %v726_v0, %v704_v4  ;;  %v739_v18 = vrot.slane (!%p944_p11), %v726_v0, %v708_v5 }
  0x38   : > { %v713_v19 = vrot.slane (!%p944_p11), %v696_v63, %v712_v6  ;;  %v743_v20 = vrot.slane (!%p944_p11), %v726_v0, %v712_v6 }
  0x3a   : > { %591 = vmatpush1.bf16.msra.mxu0 %v1020_v22  ;;  %634 = vmatpush1.bf16.msra.mxu1 %v1021_v23 }
  0x3b   : > { %592 = vmatprep.subr.bf16.mxu0 %v1022_v24  ;;  %635 = vmatprep.subr.bf16.mxu1 %v1024_v25 }
  0x3e   : > { %593 = vmatpush1.bf16.msra.mxu0 %v1026_v26  ;;  %636 = vmatpush1.bf16.msra.mxu1 %v1027_v27 }
  0x3f   : > { %594 = vmatprep.subr.bf16.mxu0 %v1028_v28  ;;  %637 = vmatprep.subr.bf16.mxu1 %v1030_v29 }
  0x42   : > { %595 = vmatpush1.bf16.msra.mxu0 %v1032_v30  ;;  %638 = vmatpush1.bf16.msra.mxu1 %v1033_v31 }
  0x43   : > { %596 = vmatprep.subr.bf16.mxu0 %v1034_v32  ;;  %639 = vmatprep.subr.bf16.mxu1 %v1036_v33 }
  0x46   : > { %597 = vmatpush1.bf16.msra.mxu0 %v1038_v34  ;;  %640 = vmatpush1.bf16.msra.mxu1 %v1039_v35 }
  0x49   : > { %615 = vmatmul.mubr.bf16.vlgmr.msra.gmra.mrb[0].mxu0 %v1040_v36  ;;  %658 = vmatmul.mubr.bf16.vlgmr.msra.gmra.mrb[0].mxu1 %v1040_v36 }
 0x11c   : > { %v616_v41 = vpop.f32.mrb[0].mxu0  ;;  %v659_v42 = vpop.f32.mrb[0].mxu1  ;;  %687 = sbr.rel (%p944_p11) target bundleno = 303 (0x12f), region = 85 }
 0x11d   : > { %v668_v45 = vadd.f32 %v616_v41, %v374_v37  ;;  %v670_v46 = vadd.f32 %v659_v42, %v376_v38  ;;  %v618_v47 = vpop.f32.mrb[1].mxu0  ;;  %v661_v48 = vpop.f32.mrb[1].mxu1 }
 0x11e   : > { %v669_v51 = vadd.f32 %v618_v47, %v375_v39  ;;  %v671_v52 = vadd.f32 %v661_v48, %v377_v40  ;;  %v620_v53 = vpop.f32.mrb[2].mxu0  ;;  %v663_v54 = vpop.f32.mrb[2].mxu1 }
 0x11f   : > { %676 = vst [vmem:[#allocation2] sm:$0xff] %v668_v45  ;;  %678 = vst [vmem:[#allocation2 + $0x10] sm:$0xff] %v670_v46  ;;  %v672_v55 = vadd.f32 %v620_v53, %v378_v43  ;;  %v674_v56 = vadd.f32 %v663_v54, %v380_v44  ;;  %v622_v57 = vpop.f32.mrb[3].mxu0  ;;  %v665_v58 = vpop.f32.mrb[3].mxu1 }
 0x120   : > { %677 = vst [vmem:[#allocation2 + $0x8] sm:$0xff] %v669_v51  ;;  %679 = vst [vmem:[#allocation2 + $0x18] sm:$0xff] %v671_v52  ;;  %v673_v59 = vadd.f32 %v622_v57, %v379_v49  ;;  %v675_v60 = vadd.f32 %v665_v58, %v381_v50 }
 0x121   : > { %680 = vst [vmem:[#allocation2 + $0x20] sm:$0xff] %v672_v55  ;;  %682 = vst [vmem:[#allocation2 + $0x30] sm:$0xff] %v674_v56 }
 0x122   : > { %681 = vst [vmem:[#allocation2 + $0x28] sm:$0xff] %v673_v59  ;;  %683 = vst [vmem:[#allocation2 + $0x38] sm:$0xff] %v675_v60 }
 0x126   : > { %v688_v1 = vld [vmem:[#allocation2] sm:$0xff]  ;;  %v690_v7 = vld [vmem:[#allocation2 + $0x10] sm:$0xff] }
 0x127   : > { %v689_v3 = vld [vmem:[#allocation2 + $0x8] sm:$0xff]  ;;  %v691_v14 = vld [vmem:[#allocation2 + $0x18] sm:$0xff]  ;;  %v718_v21 = vmul.f32 %v701_v10, %v688_v1  ;;  %v720_v25 = vmul.f32 %v709_v17, %v690_v7 }
 0x128   : > { %v692_v8 = vld [vmem:[#allocation2 + $0x20] sm:$0xff]  ;;  %v694_v15 = vld [vmem:[#allocation2 + $0x30] sm:$0xff]  ;;  %v719_v22 = vmul.f32 %v705_v12, %v689_v3  ;;  %v721_v26 = vmul.f32 %v713_v19, %v691_v14 }
 0x129   : > { %v693_v9 = vld [vmem:[#allocation2 + $0x28] sm:$0xff]  ;;  %v695_v16 = vld [vmem:[#allocation2 + $0x38] sm:$0xff]  ;;  %v722_v23 = vmul.f32 %v701_v10, %v692_v8  ;;  %v724_v27 = vmul.f32 %v709_v17, %v694_v15  ;;  %v748_v29 = vadd.f32 %v731_v11, %v718_v21  ;;  %v750_v33 = vadd.f32 %v739_v18, %v720_v25 }
 0x12a   : > { %v723_v24 = vmul.f32 %v705_v12, %v693_v9  ;;  %v725_v28 = vmul.f32 %v713_v19, %v695_v16  ;;  %v749_v30 = vadd.f32 %v735_v13, %v719_v22  ;;  %v751_v34 = vadd.f32 %v743_v20, %v721_v26 }
 0x12b   : > { %v752_v31 = vadd.f32 %v731_v11, %v722_v23  ;;  %v754_v35 = vadd.f32 %v739_v18, %v724_v27  ;;  %756 = vst [vmem:[%s1248_s4] sm:$0xff] %v748_v29  ;;  %758 = vst [vmem:[%s1248_s4 + $0x10] sm:$0xff] %v750_v33 }
 0x12c   : > { %v753_v32 = vadd.f32 %v735_v13, %v723_v24  ;;  %v755_v36 = vadd.f32 %v743_v20, %v725_v28  ;;  %757 = vst [vmem:[%s1248_s4 + $0x8] sm:$0xff] %v749_v30  ;;  %759 = vst [vmem:[%s1248_s4 + $0x18] sm:$0xff] %v751_v34 }
 0x12d   : > { %760 = vst [vmem:[%s1248_s4 + $0x20] sm:$0xff] %v752_v31  ;;  %762 = vst [vmem:[%s1248_s4 + $0x30] sm:$0xff] %v754_v35 }
 0x12e   : > { %761 = vst [vmem:[%s1248_s4 + $0x28] sm:$0xff] %v753_v32  ;;  %763 = vst [vmem:[%s1248_s4 + $0x38] sm:$0xff] %v755_v36 }
 0x12f PF: > { %s14_s19 = sadd.s32 1, %s1079_s19   ;;  %s1249_s15 = smov %s1067_s16 }
 0x130   : > { %p11_p12 = scmp.ge.s32.totalorder %s14_s19, 4   ;;  %s1250_s16 = smov %s1143_s23 }
 0x131   : > { %s1251_s17 = smov %s1075_s18  ;;  %s1252_s18 = smov %s1254_s20 }
 0x132   :  { %13 = sbr.rel (!%p11_p12) target bundleno = 3 (0x3), region = 129 }

// kernel: _lambda_.55
= control target key start
LH: loop header
LB: loop body
LE: loop exit
PB: predicated region body
PF: predicated region fallthrough
CT: control target
= control target key end

     0   :  { %s1116_s15 = smov 0   ;;  %s1118_s16 = smov 0   ;;  %s1252_s0 = inlined_call_operand.vmem [shape: bf16[16,4608], index: 0, kind: input, shape index: {}]   ;;  %s1253_s1 = inlined_call_operand.vmem [shape: bf16[4608,512], index: 1, kind: input, shape index: {}]   ;;  %s1254_s2 = inlined_call_operand.vmem [shape: f32[1,512], index: 2, kind: input, shape index: {}]   ;;  %s1255_s3 = inlined_call_operand.vmem [shape: f32[1,512], index: 3, kind: input, shape index: {}]   ;;  %s1256_s4 = inlined_call_operand.vmem [shape: f32[16,512], index: 4, kind: output, shape index: {}]  }
   0x1   :  { %s1120_s17 = smov 0   ;;  %s1122_s18 = smov 0  }
   0x2   :  { %s1124_s19 = smov 0  }
   0x3 LB: > { %s26_s20 = sadd.s32 1, %s1083_s18  ;;  %p49_p1 = scmp.ne.s32.totalorder %s1075_s16, %s1071_s15  ;;  %s1087_s19 = sphi %s1124_s19, %s14_s19   ;;  %s1083_s18 = sphi %s1122_s18, %s1260_s18   ;;  %s1079_s17 = sphi %s1120_s17, %s1259_s17   ;;  %s1075_s16 = sphi %s1118_s16, %s1258_s16   ;;  %s1071_s15 = sphi %s1116_s15, %s1257_s15  }
   0x4   : > { %p27_p0 = scmp.ge.s32.totalorder %s26_s20, 36  ;;  %p50_p2 = scmp.eq.s32.totalorder %s1087_s19, 0 }
   0x5   : > { %s42_s22 = sadd.s32 1, %s1075_s16  ;;  %p910_p5 = scmp.ge.s32.totalorder %s1087_s19, 36 }
   0x6   : > { %s1262_s20 = smov (%p27_p0, %s26_s20), 0  ;;  %p51_p3 = por %p50_p2, %p49_p1 }
   0x7   : > { %s38_s21 = ssub.s32 %s1083_s18, %s1262_s20  ;;  %199 = sbr.rel (%p910_p5) target bundleno = 21 (0x15), region = 24 }
   0x8   : > { %p40_p4 = scmp.eq.s32.totalorder %s38_s21, 0 }
   0xa   : > { %s1151_s23 = scalar_select %p40_p4, %s1075_s16, %s42_s22  }
   0xe   : > { %202 = sbr.rel (!%p51_p3) target bundleno = 21 (0x15), region = 28  ;;  %s204_s24 = sand.u32 (%p51_p3), 1, %s1075_s16  }
   0xf   : > { %s912_s25 = sshll.u32 (%p51_p3), %s1083_s18, 2  ;;  %s911_s26 = sshll.u32 (%p51_p3), %s204_s24, 3 }
  0x10   : > { %s211_s29 = scalar_lea.vmem (%p51_p3), %s1252_s0, %s912_s25  ;;  %s206_s30 = scalar_lea.vmem (%p51_p3), [#allocation3], %s911_s26 }
  0x11   : > { %v227_v0 = vld [vmem:[%s211_s29] sm:$0xf] (%p51_p3)  ;;  %v229_v1 = vld [vmem:[%s211_s29 + $0x90] sm:$0xf] (%p51_p3) }
  0x12   : > { %228 = vst [vmem:[%s206_s30] sm:$0xf] (%p51_p3), %v227_v0  ;;  %230 = vst [vmem:[%s206_s30 + $0x4] sm:$0xf] (%p51_p3), %v229_v1 }
  0x15 PF: > { %p913_p6 = scmp.ge.s32.totalorder %s1087_s19, 1  ;;  %p271_p7 = scmp.lt.s32.totalorder %s1087_s19, 37 }
  0x17   : > { %p272_p8 = pnand %p913_p6, %p271_p7 }
  0x18   : > { %s278_s5 = sand.u32 (!%p272_p8), 1, %s1071_s15   ;;  %s915_s6 = sshll.u32 (!%p272_p8), %s1079_s17, 4 }
  0x19   : > { %275 = sbr.rel (%p272_p8) target bundleno = 305 (0x131), region = 73  ;;  %s1163_s7 = sshll.u32 (!%p272_p8), %s278_s5, 3 }
  0x1a   : > { %p329_p9 = scmp.lt.s32.totalorder (!%p272_p8), %s915_s6, 575  ;;  %s280_s12 = scalar_lea.vmem (!%p272_p8), [#allocation3], %s1163_s7 }
  0x1b   : > { %p918_p10 = scmp.ne.s32.totalorder (!%p272_p8), %s1079_s17, 0 }
  0x20   : > { %s1264_s6 = smov (!%p329_p9, %s915_s6), 575  ;;  %365 = sbr.rel (%p918_p10) target bundleno = 39 (0x27), region = 81 }
  0x21   : > { %s957_s8 = sshll.u32 %s1264_s6, 4  ;;  %v1089_v2 = vmov (!%p918_p10), 0.0  }
  0x22   : > { %s1168_s11 = scalar_lea.vmem %s1253_s1, %s957_s8  ;;  %366 = vst [vmem:[#allocation2] sm:$0xff] (!%p918_p10), %v1089_v2  ;;  %367 = vst [vmem:[#allocation2 + $0x8] sm:$0xff] (!%p918_p10), %v1089_v2 }
  0x23   : > { %368 = vst [vmem:[#allocation2 + $0x10] sm:$0xff] (!%p918_p10), %v1089_v2  ;;  %369 = vst [vmem:[#allocation2 + $0x18] sm:$0xff] (!%p918_p10), %v1089_v2 }
  0x24   : > { %370 = vst [vmem:[#allocation2 + $0x20] sm:$0xff] (!%p918_p10), %v1089_v2  ;;  %371 = vst [vmem:[#allocation2 + $0x28] sm:$0xff] (!%p918_p10), %v1089_v2 }
  0x25   : > { %372 = vst [vmem:[#allocation2 + $0x30] sm:$0xff] (!%p918_p10), %v1089_v2  ;;  %373 = vst [vmem:[#allocation2 + $0x38] sm:$0xff] (!%p918_p10), %v1089_v2 }
  0x27 PF: > { %v1000_v3 = vld [vmem:[%s1168_s11 + $0x4] ss:$16 sps:$4 sm:$0xff]   ;;  %v1002_v4 = vld [vmem:[%s1168_s11 + $0xc] ss:$16 sps:$4 sm:$0xff]   ;;  %v1090_v5 = vmov 0   ;;  %p952_p11 = scmp.ne.s32.totalorder %s1079_s17, 35 }
  0x28   : > { %614 = vmatprep.mubr.bf16.mxu0 %v1090_v5  ;;  %657 = vmatprep.mubr.bf16.mxu1 %v1090_v5  ;;  %v1004_v6 = vld [vmem:[%s1168_s11] ss:$16 sps:$4 sm:$0xff]   ;;  %v1005_v7 = vld [vmem:[%s1168_s11 + $0x8] ss:$16 sps:$4 sm:$0xff]   ;;  %v1006_v8 = vld [vmem:[%s1168_s11 + $0x24] ss:$16 sps:$4 sm:$0xff]   ;;  %v698_v61 = vlaneseq (!%p952_p11) }
  0x29   : > { %582 = vmatprep.subr.bf16.mxu0 %v1000_v3  ;;  %625 = vmatprep.subr.bf16.mxu1 %v1002_v4  ;;  %v1008_v9 = vld [vmem:[%s1168_s11 + $0x2c] ss:$16 sps:$4 sm:$0xff]   ;;  %v1010_v10 = vld [vmem:[%s1168_s11 + $0x20] ss:$16 sps:$4 sm:$0xff]   ;;  %v1011_v11 = vld [vmem:[%s1168_s11 + $0x28] ss:$16 sps:$4 sm:$0xff]  }
  0x2a   : > { %583 = vmatpush1.bf16.msra.mxu0 %v1004_v6  ;;  %626 = vmatpush1.bf16.msra.mxu1 %v1005_v7  ;;  %v1012_v12 = vld [vmem:[%s1168_s11 + $0x44] ss:$16 sps:$4 sm:$0xff]   ;;  %v1014_v13 = vld [vmem:[%s1168_s11 + $0x4c] ss:$16 sps:$4 sm:$0xff]   ;;  %v1016_v14 = vld [vmem:[%s1168_s11 + $0x40] ss:$16 sps:$4 sm:$0xff]  }
  0x2b   : > { %584 = vmatprep.subr.bf16.mxu0 %v1006_v8  ;;  %627 = vmatprep.subr.bf16.mxu1 %v1008_v9  ;;  %v1017_v15 = vld [vmem:[%s1168_s11 + $0x48] ss:$16 sps:$4 sm:$0xff]   ;;  %v1018_v16 = vld [vmem:[%s1168_s11 + $0x64] ss:$16 sps:$4 sm:$0xff]   ;;  %v1020_v17 = vld [vmem:[%s1168_s11 + $0x6c] ss:$16 sps:$4 sm:$0xff]  }
  0x2c   : > { %v1022_v18 = vld [vmem:[%s1168_s11 + $0x60] ss:$16 sps:$4 sm:$0xff]   ;;  %v1023_v19 = vld [vmem:[%s1168_s11 + $0x68] ss:$16 sps:$4 sm:$0xff]   ;;  %v1024_v20 = vld [vmem:[%s1168_s11 + $0x84] ss:$16 sps:$4 sm:$0xff]  }
  0x2d   : > { %v1026_v21 = vld [vmem:[%s1168_s11 + $0x8c] ss:$16 sps:$4 sm:$0xff]   ;;  %v1028_v22 = vld [vmem:[%s1168_s11 + $0x80] ss:$16 sps:$4 sm:$0xff]   ;;  %v1029_v23 = vld [vmem:[%s1168_s11 + $0x88] ss:$16 sps:$4 sm:$0xff]  }
  0x2e   : > { %585 = vmatpush1.bf16.msra.mxu0 %v1010_v10  ;;  %628 = vmatpush1.bf16.msra.mxu1 %v1011_v11  ;;  %v1030_v24 = vld [vmem:[%s1168_s11 + $0xa4] ss:$16 sps:$4 sm:$0xff]   ;;  %v1032_v25 = vld [vmem:[%s1168_s11 + $0xac] ss:$16 sps:$4 sm:$0xff]   ;;  %v1034_v26 = vld [vmem:[%s1168_s11 + $0xa0] ss:$16 sps:$4 sm:$0xff]  }
  0x2f   : > { %586 = vmatprep.subr.bf16.mxu0 %v1012_v12  ;;  %629 = vmatprep.subr.bf16.mxu1 %v1014_v13  ;;  %v1035_v27 = vld [vmem:[%s1168_s11 + $0xa8] ss:$16 sps:$4 sm:$0xff]   ;;  %v1036_v28 = vld [vmem:[%s1168_s11 + $0xc4] ss:$16 sps:$4 sm:$0xff]   ;;  %v1038_v29 = vld [vmem:[%s1168_s11 + $0xcc] ss:$16 sps:$4 sm:$0xff]  }
  0x30   : > { %v1040_v30 = vld [vmem:[%s1168_s11 + $0xc0] ss:$16 sps:$4 sm:$0xff]   ;;  %v1041_v31 = vld [vmem:[%s1168_s11 + $0xc8] ss:$16 sps:$4 sm:$0xff]   ;;  %v1042_v32 = vld [vmem:[%s1168_s11 + $0xe4] ss:$16 sps:$4 sm:$0xff]  }
  0x31   : > { %v1044_v33 = vld [vmem:[%s1168_s11 + $0xec] ss:$16 sps:$4 sm:$0xff]   ;;  %v1046_v34 = vld [vmem:[%s1168_s11 + $0xe0] ss:$16 sps:$4 sm:$0xff]   ;;  %v1047_v35 = vld [vmem:[%s1168_s11 + $0xe8] ss:$16 sps:$4 sm:$0xff]  }
  0x32   : > { %587 = vmatpush1.bf16.msra.mxu0 %v1016_v14  ;;  %630 = vmatpush1.bf16.msra.mxu1 %v1017_v15  ;;  %v1048_v36 = vld [vmem:[%s280_s12] sm:$0xff]   ;;  %v376_v38 = vld [vmem:[#allocation2 + $0x10] sm:$0xff]  ;;  %v377_v40 = vld [vmem:[#allocation2 + $0x18] sm:$0xff]  ;;  %v699_v62 = vshrl.u32 (!%p952_p11), %v698_v61, 7 }
  0x33   : > { %588 = vmatprep.subr.bf16.mxu0 %v1018_v16  ;;  %631 = vmatprep.subr.bf16.mxu1 %v1020_v17  ;;  %v374_v37 = vld [vmem:[#allocation2] sm:$0xff]  ;;  %v375_v39 = vld [vmem:[#allocation2 + $0x8] sm:$0xff]  ;;  %v380_v44 = vld [vmem:[#allocation2 + $0x30] sm:$0xff] }
  0x34   : > { %v378_v43 = vld [vmem:[#allocation2 + $0x20] sm:$0xff]  ;;  %v379_v49 = vld [vmem:[#allocation2 + $0x28] sm:$0xff]  ;;  %v381_v50 = vld [vmem:[#allocation2 + $0x38] sm:$0xff]  ;;  %v700_v2 = vsub.s32 (!%p952_p11), 0, %v699_v62  ;;  %v704_v4 = vsub.s32 (!%p952_p11), 1, %v699_v62  ;;  %v708_v5 = vsub.s32 (!%p952_p11), 2, %v699_v62 }
  0x35   : > { %v696_v63 = vld [vmem:[%s1254_s2] sm:$0xf] (!%p952_p11)  ;;  %v712_v6 = vsub.s32 (!%p952_p11), 3, %v699_v62 }
  0x36   : > { %589 = vmatpush1.bf16.msra.mxu0 %v1022_v18  ;;  %632 = vmatpush1.bf16.msra.mxu1 %v1023_v19  ;;  %v726_v0 = vld [vmem:[%s1255_s3] sm:$0xf] (!%p952_p11)  ;;  %v701_v10 = vrot.slane (!%p952_p11), %v696_v63, %v700_v2  ;;  %v705_v12 = vrot.slane (!%p952_p11), %v696_v63, %v704_v4  ;;  %v709_v17 = vrot.slane (!%p952_p11), %v696_v63, %v708_v5 }
  0x37   : > { %590 = vmatprep.subr.bf16.mxu0 %v1024_v20  ;;  %633 = vmatprep.subr.bf16.mxu1 %v1026_v21  ;;  %v731_v11 = vrot.slane (!%p952_p11), %v726_v0, %v700_v2  ;;  %v735_v13 = vrot.slane (!%p952_p11), %v726_v0, %v704_v4  ;;  %v739_v18 = vrot.slane (!%p952_p11), %v726_v0, %v708_v5 }
  0x38   : > { %v713_v19 = vrot.slane (!%p952_p11), %v696_v63, %v712_v6  ;;  %v743_v20 = vrot.slane (!%p952_p11), %v726_v0, %v712_v6 }
  0x3a   : > { %591 = vmatpush1.bf16.msra.mxu0 %v1028_v22  ;;  %634 = vmatpush1.bf16.msra.mxu1 %v1029_v23 }
  0x3b   : > { %592 = vmatprep.subr.bf16.mxu0 %v1030_v24  ;;  %635 = vmatprep.subr.bf16.mxu1 %v1032_v25 }
  0x3e   : > { %593 = vmatpush1.bf16.msra.mxu0 %v1034_v26  ;;  %636 = vmatpush1.bf16.msra.mxu1 %v1035_v27 }
  0x3f   : > { %594 = vmatprep.subr.bf16.mxu0 %v1036_v28  ;;  %637 = vmatprep.subr.bf16.mxu1 %v1038_v29 }
  0x42   : > { %595 = vmatpush1.bf16.msra.mxu0 %v1040_v30  ;;  %638 = vmatpush1.bf16.msra.mxu1 %v1041_v31 }
  0x43   : > { %596 = vmatprep.subr.bf16.mxu0 %v1042_v32  ;;  %639 = vmatprep.subr.bf16.mxu1 %v1044_v33 }
  0x46   : > { %597 = vmatpush1.bf16.msra.mxu0 %v1046_v34  ;;  %640 = vmatpush1.bf16.msra.mxu1 %v1047_v35 }
  0x49   : > { %615 = vmatmul.mubr.bf16.vlgmr.msra.gmra.mrb[0].mxu0 %v1048_v36  ;;  %658 = vmatmul.mubr.bf16.vlgmr.msra.gmra.mrb[0].mxu1 %v1048_v36 }
 0x11c   : > { %v616_v41 = vpop.f32.mrb[0].mxu0  ;;  %v659_v42 = vpop.f32.mrb[0].mxu1  ;;  %687 = sbr.rel (%p952_p11) target bundleno = 305 (0x131), region = 85 }
 0x11d   : > { %v668_v45 = vadd.f32 %v616_v41, %v374_v37  ;;  %v670_v46 = vadd.f32 %v659_v42, %v376_v38  ;;  %v618_v47 = vpop.f32.mrb[1].mxu0  ;;  %v661_v48 = vpop.f32.mrb[1].mxu1 }
 0x11e   : > { %v669_v51 = vadd.f32 %v618_v47, %v375_v39  ;;  %v671_v52 = vadd.f32 %v661_v48, %v377_v40  ;;  %v620_v53 = vpop.f32.mrb[2].mxu0  ;;  %v663_v54 = vpop.f32.mrb[2].mxu1 }
 0x11f   : > { %676 = vst [vmem:[#allocation2] sm:$0xff] %v668_v45  ;;  %678 = vst [vmem:[#allocation2 + $0x10] sm:$0xff] %v670_v46  ;;  %v672_v55 = vadd.f32 %v620_v53, %v378_v43  ;;  %v674_v56 = vadd.f32 %v663_v54, %v380_v44  ;;  %v622_v57 = vpop.f32.mrb[3].mxu0  ;;  %v665_v58 = vpop.f32.mrb[3].mxu1 }
 0x120   : > { %677 = vst [vmem:[#allocation2 + $0x8] sm:$0xff] %v669_v51  ;;  %679 = vst [vmem:[#allocation2 + $0x18] sm:$0xff] %v671_v52  ;;  %v673_v59 = vadd.f32 %v622_v57, %v379_v49  ;;  %v675_v60 = vadd.f32 %v665_v58, %v381_v50 }
 0x121   : > { %680 = vst [vmem:[#allocation2 + $0x20] sm:$0xff] %v672_v55  ;;  %682 = vst [vmem:[#allocation2 + $0x30] sm:$0xff] %v674_v56 }
 0x122   : > { %681 = vst [vmem:[#allocation2 + $0x28] sm:$0xff] %v673_v59  ;;  %683 = vst [vmem:[#allocation2 + $0x38] sm:$0xff] %v675_v60 }
 0x126   : > { %v688_v1 = vld [vmem:[#allocation2] sm:$0xff]  ;;  %v690_v7 = vld [vmem:[#allocation2 + $0x10] sm:$0xff] }
 0x127   : > { %v689_v3 = vld [vmem:[#allocation2 + $0x8] sm:$0xff]  ;;  %v691_v14 = vld [vmem:[#allocation2 + $0x18] sm:$0xff]  ;;  %v718_v21 = vmul.f32 %v701_v10, %v688_v1  ;;  %v720_v25 = vmul.f32 %v709_v17, %v690_v7 }
 0x128   : > { %v692_v8 = vld [vmem:[#allocation2 + $0x20] sm:$0xff]  ;;  %v694_v15 = vld [vmem:[#allocation2 + $0x30] sm:$0xff]  ;;  %v719_v22 = vmul.f32 %v705_v12, %v689_v3  ;;  %v721_v26 = vmul.f32 %v713_v19, %v691_v14 }
 0x129   : > { %v693_v9 = vld [vmem:[#allocation2 + $0x28] sm:$0xff]  ;;  %v695_v16 = vld [vmem:[#allocation2 + $0x38] sm:$0xff]  ;;  %v722_v23 = vmul.f32 %v701_v10, %v692_v8  ;;  %v724_v27 = vmul.f32 %v709_v17, %v694_v15  ;;  %v748_v29 = vadd.f32 %v731_v11, %v718_v21  ;;  %v750_v33 = vadd.f32 %v739_v18, %v720_v25 }
 0x12a   : > { %v723_v24 = vmul.f32 %v705_v12, %v693_v9  ;;  %v725_v28 = vmul.f32 %v713_v19, %v695_v16  ;;  %v749_v30 = vadd.f32 %v735_v13, %v719_v22  ;;  %v751_v34 = vadd.f32 %v743_v20, %v721_v26 }
 0x12b   : > { %v752_v31 = vadd.f32 %v731_v11, %v722_v23  ;;  %v754_v35 = vadd.f32 %v739_v18, %v724_v27  ;;  %v756_v37 = vmax.f32 %v748_v29, 0.0  ;;  %v758_v41 = vmax.f32 %v750_v33, 0.0 }
 0x12c   : > { %v753_v32 = vadd.f32 %v735_v13, %v723_v24  ;;  %v755_v36 = vadd.f32 %v743_v20, %v725_v28  ;;  %v757_v38 = vmax.f32 %v749_v30, 0.0  ;;  %v759_v42 = vmax.f32 %v751_v34, 0.0 }
 0x12d   : > { %v760_v39 = vmax.f32 %v752_v31, 0.0  ;;  %v762_v43 = vmax.f32 %v754_v35, 0.0  ;;  %764 = vst [vmem:[%s1256_s4] sm:$0xff] %v756_v37  ;;  %766 = vst [vmem:[%s1256_s4 + $0x10] sm:$0xff] %v758_v41 }
 0x12e   : > { %v761_v40 = vmax.f32 %v753_v32, 0.0  ;;  %v763_v44 = vmax.f32 %v755_v36, 0.0  ;;  %765 = vst [vmem:[%s1256_s4 + $0x8] sm:$0xff] %v757_v38  ;;  %767 = vst [vmem:[%s1256_s4 + $0x18] sm:$0xff] %v759_v42 }
 0x12f   : > { %768 = vst [vmem:[%s1256_s4 + $0x20] sm:$0xff] %v760_v39  ;;  %770 = vst [vmem:[%s1256_s4 + $0x30] sm:$0xff] %v762_v43 }
 0x130   : > { %769 = vst [vmem:[%s1256_s4 + $0x28] sm:$0xff] %v761_v40  ;;  %771 = vst [vmem:[%s1256_s4 + $0x38] sm:$0xff] %v763_v44 }
 0x131 PF: > { %s14_s19 = sadd.s32 1, %s1087_s19   ;;  %s1257_s15 = smov %s1075_s16 }
 0x132   : > { %p11_p12 = scmp.ge.s32.totalorder %s14_s19, 38   ;;  %s1258_s16 = smov %s1151_s23 }
 0x133   : > { %s1259_s17 = smov %s1083_s18  ;;  %s1260_s18 = smov %s1262_s20 }
 0x134   :  { %13 = sbr.rel (!%p11_p12) target bundleno = 3 (0x3), region = 129 }

</bundles_post_ra>
